<compile_context>
chip_gen: v7x
topology: tpu7x:2x2x1
jax: 0.10.0
libtpu: 0.0.40
codegen_flags: <defaults>
</compile_context>

<pallas_src>
import numpy as np
import jax
import jax.numpy as jnp
from jax.experimental import pallas as pl
from jax.experimental.pallas import tpu as pltpu


# ----------------------------------------------------------------------------
# Fixed (non-learned) filter definitions
# ----------------------------------------------------------------------------
H1 = np.array([1.0, 4.0, 6.0, 4.0, 1.0], dtype=np.float32) / 16.0    # analysis lowpass
G1 = np.array([1.0, -4.0, 6.0, -4.0, 1.0], dtype=np.float32) / 16.0  # QMF highpass
P1 = (2.0 * H1).astype(np.float32)                                   # interpolation (G2D = P1 (x) P1)
H2D = np.outer(H1, H1).astype(np.float32)                            # pyramid lowpass
G2D = (4.0 * np.outer(H1, H1)).astype(np.float32)                    # interpolation filter

_D0 = np.array([[-1, -2, -1], [0, 0, 0], [1, 2, 1]], dtype=np.float32) / 4.0
_D1 = _D0.T.copy()
_D2 = np.array([[-2, -1, 0], [-1, 0, 1], [0, 1, 2]], dtype=np.float32) / 4.0
_D3 = np.fliplr(_D2).copy()
DIR_FILTERS = [_D0, _D1, _D2, _D3]                                   # 4 orientations

# --- polyphase tap tables (decimation folded into the stencils) --------------
# 5-tap analysis lowpass split by input parity p: tap i = 2k+p at coarse offset k
LP_TAPS = {0: [(0, float(H1[0])), (1, float(H1[2])), (2, float(H1[4]))],
           1: [(0, float(H1[1])), (1, float(H1[3]))]}
# interpolation filter split by *output* parity r: only taps hitting the
# non-zero (even) samples of the zero-inserted upsample survive
RES_TAPS = {0: [(-1, float(P1[0])), (0, float(P1[2])), (1, float(P1[4]))],
            1: [(0, float(P1[1])), (1, float(P1[3]))]}
# 3-tap directional filter: tap index i -> (row/col parity of xhi, coarse offset)
IDX3 = {0: (1, -1), 1: (0, 0), 2: (1, 0)}


# ----------------------------------------------------------------------------
# Fused Pallas kernel: whole pdfbdec for one channel block
# ----------------------------------------------------------------------------
def _make_pdfb_kernel(H, W, CB):
    HH, WH = H // 2, W // 2
    HQ, WQ = H // 4, W // 4

    def kernel(xph_ref, xlo_ref, whi_ref, dhi_ref, lo_pad, hi_ph):
        f32 = jnp.float32

        # Polyphase planes of the 2-zero-padded input (built once, in JAX):
        #   xpp[(p, q)][a, b, c] = x[2a + p - 2, 2b + q - 2, c]   (zero outside)
        xpp = {(p, q): xph_ref[2 * p + q, :, :, :].astype(f32)
               for p in (0, 1) for q in (0, 1)}                     # (HH+2, WH+2, CB)

        # --- level-1 lowpass, decimated by 2 (separable, polyphase) ----------
        # vertical pass, shared across the horizontal taps
        T = {}
        for q in (0, 1):
            acc = None
            for p in (0, 1):
                for k, w in LP_TAPS[p]:
                    t = w * xpp[(p, q)][k:k + HH, :, :]
                    acc = t if acc is None else acc + t
            T[q] = acc                                              # (HH, WH+2, CB)
        xlo1 = None
        for q in (0, 1):
            for l, w in LP_TAPS[q]:
                t = w * T[q][:, l:l + WH, :]
                xlo1 = t if xlo1 is None else xlo1 + t              # (HH, WH, CB)

        # keep a 2-zero-padded copy in VMEM (shared by residual + wavelet stage)
        lo_pad[...] = jnp.zeros_like(lo_pad)
        lo_pad[2:2 + HH, 2:2 + WH, :] = xlo1
        xlp = lo_pad[...]                                           # (HH+4, WH+4, CB)

        # --- Laplacian residual, polyphase (no zero-inserted upsample) -------
        V = {}
        for r in (0, 1):
            acc = None
            for k, w in RES_TAPS[r]:
                t = w * xlp[2 + k:2 + k + HH, :, :]
                acc = t if acc is None else acc + t
            V[r] = acc                                              # (HH, WH+4, CB)
        for r in (0, 1):
            for s in (0, 1):
                acc = None
                for l, w in RES_TAPS[s]:
                    t = w * V[r][:, 2 + l:2 + l + WH, :]
                    acc = t if acc is None else acc + t
                cen = xpp[(r, s)][1:1 + HH, 1:1 + WH, :]            # x at phase (r, s)
                hi_ph[2 * r + s, :, :, :] = jnp.zeros((HH + 2, WH + 2, CB), f32)
                hi_ph[2 * r + s, 1:1 + HH, 1:1 + WH, :] = cen - acc

        # --- 4-direction filter bank on the bandpass, decimated by 2 ---------
        xh = {(r, s): hi_ph[2 * r + s, :, :, :]
              for r in (0, 1) for s in (0, 1)}                      # (HH+2, WH+2, CB)
        for d, filt in enumerate(DIR_FILTERS):
            acc = None
            for i in range(3):
                pi, ki = IDX3[i]
                for j in range(3):
                    w = float(filt[i, j])
                    if w == 0.0:            # skip structurally-zero taps
                        continue
                    pj, kj = IDX3[j]
                    t = w * xh[(pi, pj)][1 + ki:1 + ki + HH, 1 + kj:1 + kj + WH, :]
                    acc = t if acc is None else acc + t
            dhi_ref[d, :, :, :] = acc.astype(dhi_ref.dtype)

        # --- wavelet split of the lowpass, decimated by 2 --------------------
        # row passes, decimated in H, shared by LL/LH (H1 rows) and HL/HH (G1 rows)
        rh, rg = [], []
        for m2 in range(HQ):
            ah, ag = None, None
            for i in range(5):
                row = xlp[2 * m2 + i, :, :]                         # (WH+4, CB)
                th = float(H1[i]) * row
                tg = float(G1[i]) * row
                ah = th if ah is None else ah + th
                ag = tg if ag is None else ag + tg
            rh.append(ah)
            rg.append(ag)
        rhs = jnp.stack(rh, axis=0)                                 # (HQ, WH+4, CB)
        rgs = jnp.stack(rg, axis=0)

        # column passes, decimated in W, one output column at a time
        combos = ((rhs, H1, None),   # LL -> xlo
                  (rhs, G1, 0),      # LH
                  (rgs, H1, 1),      # HL
                  (rgs, G1, 2))      # HH
        for rows, cvec, sub in combos:
            for n2 in range(WQ):
                acc = None
                for j in range(5):
                    c = 2 * n2 + j
                    t = float(cvec[j]) * rows[:, c:c + 1, :]        # (HQ, 1, CB)
                    acc = t if acc is None else acc + t
                if sub is None:
                    xlo_ref[:, n2:n2 + 1, :] = acc.astype(xlo_ref.dtype)
                else:
                    whi_ref[sub, :, n2:n2 + 1, :] = acc.astype(whi_ref.dtype)

    return kernel


# ----------------------------------------------------------------------------
# Wrapper: layout change + single pallas_call
# ----------------------------------------------------------------------------
def _pdfb_pallas(x):
    N, C, H, W = x.shape
    assert H % 4 == 0 and W % 4 == 0, "spatial dims must be multiples of 4"
    NC = N * C
    HH, WH, HQ, WQ = H // 2, W // 2, H // 4, W // 4

    # channel block on the 128-lane axis
    if NC <= 128:
        CB, NCP = NC, NC
    else:
        CB = 128
        NCP = ((NC + 127) // 128) * 128

    # channels-last, zero 'same' padding by 2 (done ONCE), mod-2 polyphase split
    xc = x.reshape(NC, H, W).transpose(1, 2, 0)                    # (H, W, NC)
    if NCP != NC:
        xc = jnp.pad(xc, ((0, 0), (0, 0), (0, NCP - NC)))
    xpad = jnp.pad(xc, ((2, 2), (2, 2), (0, 0)))                   # (H+4, W+4, NCP)
    xph = jnp.stack([xpad[p::2, q::2, :] for p in (0, 1) for q in (0, 1)],
                    axis=0)                                        # (4, HH+2, WH+2, NCP)

    kernel = _make_pdfb_kernel(H, W, CB)
    grid = (NCP // CB,)
    out_shape = (
        jax.ShapeDtypeStruct((HQ, WQ, NCP), x.dtype),              # LL
        jax.ShapeDtypeStruct((3, HQ, WQ, NCP), x.dtype),           # LH / HL / HH
        jax.ShapeDtypeStruct((4, HH, WH, NCP), x.dtype),           # 4 directional subbands
    )
    xlo_c, whi_c, dhi_c = pl.pallas_call(
        kernel,
        out_shape=out_shape,
        grid_spec=pltpu.PrefetchScalarGridSpec(
            num_scalar_prefetch=0,
            grid=grid,
            in_specs=[pl.BlockSpec((4, HH + 2, WH + 2, CB),
                                   lambda b: (0, 0, 0, b))],
            out_specs=(
                pl.BlockSpec((HQ, WQ, CB), lambda b: (0, 0, b)),
                pl.BlockSpec((3, HQ, WQ, CB), lambda b: (0, 0, 0, b)),
                pl.BlockSpec((4, HH, WH, CB), lambda b: (0, 0, 0, b)),
            ),
            scratch_shapes=[
                pltpu.VMEM((HH + 4, WH + 4, CB), jnp.float32),       # padded level-1 lowpass
                pltpu.VMEM((4, HH + 2, WH + 2, CB), jnp.float32),    # padded bandpass phases
            ]),
        compiler_params=pltpu.CompilerParams(
            dimension_semantics=("parallel",),                       # megacore on v7x
            vmem_limit_bytes=32 * 1024 * 1024),
    )(xph)

    # back to the module's NCHW channel-stacked layout
    def _to_nchw(sub):                       # (F, h, w, NCP) -> (N, F*C, h, w)
        F, h, w = sub.shape[0], sub.shape[1], sub.shape[2]
        s = sub[..., :NC].transpose(3, 0, 1, 2).reshape(N, C, F, h, w)
        return s.transpose(0, 2, 1, 3, 4).reshape(N, F * C, h, w)

    xlo = xlo_c[..., :NC].transpose(2, 0, 1).reshape(N, C, HQ, WQ)
    xhi_coarse = _to_nchw(whi_c)
    xhi_fine = _to_nchw(dhi_c)
    return xlo, (xhi_coarse, xhi_fine)


@jax.jit
def sspcab_forward(x):
    """SSPCAB.forward: pdfbdec(x, 'maxflat', 'dmaxflat7', nlevs=[0, 2]).

    Returns (xlo, (xhi_coarse, xhi_fine)):
      xlo:        (N, C,  H/4, W/4)  coarsest lowpass
      xhi_coarse: (N, 3C, H/4, W/4)  wavelet details (nlevs[0] == 0 level)
      xhi_fine:   (N, 4C, H/2, W/2)  4 directional subbands (nlevs[1] == 2 level)
    """
    return _pdfb_pallas(x)


# ----------------------------------------------------------------------------
# Pure-JAX reference (un-fused conv-then-decimate, identical to prior version)
# ----------------------------------------------------------------------------
def _conv_same_ref(img, f):
    K0, K1 = f.shape
    p0, p1 = (K0 - 1) // 2, K0 - 1 - (K0 - 1) // 2
    B, Hh, Ww = img.shape
    xp = jnp.pad(img, ((0, 0), (p0, p1), (p0, p1)))
    acc = jnp.zeros((B, Hh, Ww), jnp.float32)
    for i in range(K0):
        for j in range(K1):
            acc = acc + float(f[i, j]) * xp[:, i:i + Hh, j:j + Ww]
    return acc


def sspcab_reference(x):
    N, C, H, W = x.shape
    B = N * C
    xb = x.reshape(B, H, W).astype(jnp.float32)
    lo = _conv_same_ref(xb, H2D)
    xlo1 = lo[:, ::2, ::2]
    up = jnp.zeros((B, H, W), jnp.float32).at[:, ::2, ::2].set(xlo1)
    xhi = xb - _conv_same_ref(up, G2D)
    dirs = [_conv_same_ref(xhi, d)[:, ::2, ::2] for d in DIR_FILTERS]
    ll = _conv_same_ref(xlo1, np.outer(H1, H1))[:, ::2, ::2]
    lh = _conv_same_ref(xlo1, np.outer(H1, G1))[:, ::2, ::2]
    hl = _conv_same_ref(xlo1, np.outer(G1, H1))[:, ::2, ::2]
    hh = _conv_same_ref(xlo1, np.outer(G1, G1))[:, ::2, ::2]

    def stack_subs(subs):
        s = jnp.stack(subs, axis=1)                        # (B, F, h, w)
        F, h, w = s.shape[1], s.shape[2], s.shape[3]
        s = s.reshape(N, C, F, h, w).transpose(0, 2, 1, 3, 4)
        return s.reshape(N, F * C, h, w).astype(x.dtype)

    xlo = ll.reshape(N, C, H // 4, W // 4).astype(x.dtype)
    return xlo, (stack_subs([lh, hl, hh]), stack_subs(dirs))


# ----------------------------------------------------------------------------
if __name__ == "__main__":
    key = jax.random.PRNGKey(0)
    x = jax.random.normal(key, (2, 4, 16, 16), dtype=jnp.float32)   # NCHW

    xlo, (xhi_coarse, xhi_fine) = sspcab_forward(x)
    jax.block_until_ready((xlo, xhi_coarse, xhi_fine))

    assert xlo.shape == (2, 4, 4, 4)
    assert xhi_coarse.shape == (2, 12, 4, 4)
    assert xhi_fine.shape == (2, 16, 8, 8)
    assert xlo.dtype == jnp.float32

    # validate the fused/polyphase kernel against the straightforward reference
    rlo, (rcoarse, rfine) = jax.jit(sspcab_reference)(x)
    jax.block_until_ready((rlo, rcoarse, rfine))
    assert jnp.allclose(xlo, rlo, atol=1e-4, rtol=1e-4)
    assert jnp.allclose(xhi_coarse, rcoarse, atol=1e-4, rtol=1e-4)
    assert jnp.allclose(xhi_fine, rfine, atol=1e-4, rtol=1e-4)

    print("KERNEL_OK")
</pallas_src>

<mosaic_0001>
module attributes {stable_mosaic.version = 11 : i64} {
  func.func @kernel(%arg0: i32, %arg1: memref<4x10x10x8xf32, #tpu.memory_space<vmem>>, %arg2: memref<4x4x8xf32, #tpu.memory_space<vmem>>, %arg3: memref<3x4x4x8xf32, #tpu.memory_space<vmem>>, %arg4: memref<4x8x8x8xf32, #tpu.memory_space<vmem>>, %arg5: memref<12x12x8xf32, #tpu.memory_space<vmem>>, %arg6: memref<4x10x10x8xf32, #tpu.memory_space<vmem>>) attributes {dimension_semantics = [#tpu.dimension_semantics<parallel>], iteration_bounds = array<i64: 1>, scalar_prefetch = 0 : i64, scratch_operands = 2 : i64, tpu.core_type = #tpu.core_type<tc>, window_params = [{transform_indices = @transform_0, window_bounds = array<i64: 4, 10, 10, 8>}, {transform_indices = @transform_1, window_bounds = array<i64: 4, 4, 8>}, {transform_indices = @transform_2, window_bounds = array<i64: 3, 4, 4, 8>}, {transform_indices = @transform_3, window_bounds = array<i64: 4, 8, 8, 8>}]} {
    %c0 = arith.constant 0 : index
    %c0_0 = arith.constant 0 : index
    %c0_1 = arith.constant 0 : index
    %c0_2 = arith.constant 0 : index
    %0 = vector.load %arg1[%c0, %c0_0, %c0_1, %c0_2] : memref<4x10x10x8xf32, #tpu.memory_space<vmem>>, vector<1x10x10x8xf32>
    %1 = vector.shape_cast %0 : vector<1x10x10x8xf32> to vector<10x10x8xf32>
    %c1 = arith.constant 1 : index
    %c0_3 = arith.constant 0 : index
    %c0_4 = arith.constant 0 : index
    %c0_5 = arith.constant 0 : index
    %2 = vector.load %arg1[%c1, %c0_3, %c0_4, %c0_5] : memref<4x10x10x8xf32, #tpu.memory_space<vmem>>, vector<1x10x10x8xf32>
    %3 = vector.shape_cast %2 : vector<1x10x10x8xf32> to vector<10x10x8xf32>
    %c2 = arith.constant 2 : index
    %c0_6 = arith.constant 0 : index
    %c0_7 = arith.constant 0 : index
    %c0_8 = arith.constant 0 : index
    %4 = vector.load %arg1[%c2, %c0_6, %c0_7, %c0_8] : memref<4x10x10x8xf32, #tpu.memory_space<vmem>>, vector<1x10x10x8xf32>
    %5 = vector.shape_cast %4 : vector<1x10x10x8xf32> to vector<10x10x8xf32>
    %c3 = arith.constant 3 : index
    %c0_9 = arith.constant 0 : index
    %c0_10 = arith.constant 0 : index
    %c0_11 = arith.constant 0 : index
    %6 = vector.load %arg1[%c3, %c0_9, %c0_10, %c0_11] : memref<4x10x10x8xf32, #tpu.memory_space<vmem>>, vector<1x10x10x8xf32>
    %7 = vector.shape_cast %6 : vector<1x10x10x8xf32> to vector<10x10x8xf32>
    %8 = vector.extract_strided_slice %1 {offsets = [0, 0, 0], sizes = [8, 10, 8], strides = [1, 1, 1]} : vector<10x10x8xf32> to vector<8x10x8xf32>
    %cst = arith.constant 6.250000e-02 : f32
    %9 = vector.broadcast %cst : f32 to vector<8x10x8xf32>
    %10 = arith.mulf %9, %8 : vector<8x10x8xf32>
    %11 = vector.extract_strided_slice %1 {offsets = [1, 0, 0], sizes = [8, 10, 8], strides = [1, 1, 1]} : vector<10x10x8xf32> to vector<8x10x8xf32>
    %cst_12 = arith.constant 3.750000e-01 : f32
    %12 = vector.broadcast %cst_12 : f32 to vector<8x10x8xf32>
    %13 = arith.mulf %12, %11 : vector<8x10x8xf32>
    %14 = arith.addf %10, %13 : vector<8x10x8xf32>
    %15 = vector.extract_strided_slice %1 {offsets = [2, 0, 0], sizes = [8, 10, 8], strides = [1, 1, 1]} : vector<10x10x8xf32> to vector<8x10x8xf32>
    %cst_13 = arith.constant 6.250000e-02 : f32
    %16 = vector.broadcast %cst_13 : f32 to vector<8x10x8xf32>
    %17 = arith.mulf %16, %15 : vector<8x10x8xf32>
    %18 = arith.addf %14, %17 : vector<8x10x8xf32>
    %19 = vector.extract_strided_slice %5 {offsets = [0, 0, 0], sizes = [8, 10, 8], strides = [1, 1, 1]} : vector<10x10x8xf32> to vector<8x10x8xf32>
    %cst_14 = arith.constant 2.500000e-01 : f32
    %20 = vector.broadcast %cst_14 : f32 to vector<8x10x8xf32>
    %21 = arith.mulf %20, %19 : vector<8x10x8xf32>
    %22 = arith.addf %18, %21 : vector<8x10x8xf32>
    %23 = vector.extract_strided_slice %5 {offsets = [1, 0, 0], sizes = [8, 10, 8], strides = [1, 1, 1]} : vector<10x10x8xf32> to vector<8x10x8xf32>
    %cst_15 = arith.constant 2.500000e-01 : f32
    %24 = vector.broadcast %cst_15 : f32 to vector<8x10x8xf32>
    %25 = arith.mulf %24, %23 : vector<8x10x8xf32>
    %26 = arith.addf %22, %25 : vector<8x10x8xf32>
    %27 = vector.extract_strided_slice %3 {offsets = [0, 0, 0], sizes = [8, 10, 8], strides = [1, 1, 1]} : vector<10x10x8xf32> to vector<8x10x8xf32>
    %cst_16 = arith.constant 6.250000e-02 : f32
    %28 = vector.broadcast %cst_16 : f32 to vector<8x10x8xf32>
    %29 = arith.mulf %28, %27 : vector<8x10x8xf32>
    %30 = vector.extract_strided_slice %3 {offsets = [1, 0, 0], sizes = [8, 10, 8], strides = [1, 1, 1]} : vector<10x10x8xf32> to vector<8x10x8xf32>
    %cst_17 = arith.constant 3.750000e-01 : f32
    %31 = vector.broadcast %cst_17 : f32 to vector<8x10x8xf32>
    %32 = arith.mulf %31, %30 : vector<8x10x8xf32>
    %33 = arith.addf %29, %32 : vector<8x10x8xf32>
    %34 = vector.extract_strided_slice %3 {offsets = [2, 0, 0], sizes = [8, 10, 8], strides = [1, 1, 1]} : vector<10x10x8xf32> to vector<8x10x8xf32>
    %cst_18 = arith.constant 6.250000e-02 : f32
    %35 = vector.broadcast %cst_18 : f32 to vector<8x10x8xf32>
    %36 = arith.mulf %35, %34 : vector<8x10x8xf32>
    %37 = arith.addf %33, %36 : vector<8x10x8xf32>
    %38 = vector.extract_strided_slice %7 {offsets = [0, 0, 0], sizes = [8, 10, 8], strides = [1, 1, 1]} : vector<10x10x8xf32> to vector<8x10x8xf32>
    %cst_19 = arith.constant 2.500000e-01 : f32
    %39 = vector.broadcast %cst_19 : f32 to vector<8x10x8xf32>
    %40 = arith.mulf %39, %38 : vector<8x10x8xf32>
    %41 = arith.addf %37, %40 : vector<8x10x8xf32>
    %42 = vector.extract_strided_slice %7 {offsets = [1, 0, 0], sizes = [8, 10, 8], strides = [1, 1, 1]} : vector<10x10x8xf32> to vector<8x10x8xf32>
    %cst_20 = arith.constant 2.500000e-01 : f32
    %43 = vector.broadcast %cst_20 : f32 to vector<8x10x8xf32>
    %44 = arith.mulf %43, %42 : vector<8x10x8xf32>
    %45 = arith.addf %41, %44 : vector<8x10x8xf32>
    %46 = vector.extract_strided_slice %26 {offsets = [0, 0, 0], sizes = [8, 8, 8], strides = [1, 1, 1]} : vector<8x10x8xf32> to vector<8x8x8xf32>
    %cst_21 = arith.constant 6.250000e-02 : f32
    %47 = vector.broadcast %cst_21 : f32 to vector<8x8x8xf32>
    %48 = arith.mulf %47, %46 : vector<8x8x8xf32>
    %49 = vector.extract_strided_slice %26 {offsets = [0, 1, 0], sizes = [8, 8, 8], strides = [1, 1, 1]} : vector<8x10x8xf32> to vector<8x8x8xf32>
    %cst_22 = arith.constant 3.750000e-01 : f32
    %50 = vector.broadcast %cst_22 : f32 to vector<8x8x8xf32>
    %51 = arith.mulf %50, %49 : vector<8x8x8xf32>
    %52 = arith.addf %48, %51 : vector<8x8x8xf32>
    %53 = vector.extract_strided_slice %26 {offsets = [0, 2, 0], sizes = [8, 8, 8], strides = [1, 1, 1]} : vector<8x10x8xf32> to vector<8x8x8xf32>
    %cst_23 = arith.constant 6.250000e-02 : f32
    %54 = vector.broadcast %cst_23 : f32 to vector<8x8x8xf32>
    %55 = arith.mulf %54, %53 : vector<8x8x8xf32>
    %56 = arith.addf %52, %55 : vector<8x8x8xf32>
    %57 = vector.extract_strided_slice %45 {offsets = [0, 0, 0], sizes = [8, 8, 8], strides = [1, 1, 1]} : vector<8x10x8xf32> to vector<8x8x8xf32>
    %cst_24 = arith.constant 2.500000e-01 : f32
    %58 = vector.broadcast %cst_24 : f32 to vector<8x8x8xf32>
    %59 = arith.mulf %58, %57 : vector<8x8x8xf32>
    %60 = arith.addf %56, %59 : vector<8x8x8xf32>
    %61 = vector.extract_strided_slice %45 {offsets = [0, 1, 0], sizes = [8, 8, 8], strides = [1, 1, 1]} : vector<8x10x8xf32> to vector<8x8x8xf32>
    %cst_25 = arith.constant 2.500000e-01 : f32
    %62 = vector.broadcast %cst_25 : f32 to vector<8x8x8xf32>
    %63 = arith.mulf %62, %61 : vector<8x8x8xf32>
    %64 = arith.addf %60, %63 : vector<8x8x8xf32>
    %cst_26 = arith.constant 0.000000e+00 : f32
    %65 = vector.broadcast %cst_26 : f32 to vector<12x12x8xf32>
    %c0_27 = arith.constant 0 : index
    %c0_28 = arith.constant 0 : index
    %c0_29 = arith.constant 0 : index
    %66 = vector.load %arg5[%c0_27, %c0_28, %c0_29] : memref<12x12x8xf32, #tpu.memory_space<vmem>>, vector<12x12x8xf32>
    tpu.vector_store %arg5[%c0_27, %c0_28, %c0_29], %65 {strides = array<i32>} : memref<12x12x8xf32, #tpu.memory_space<vmem>>, vector<12x12x8xf32>,
    %c2_30 = arith.constant 2 : index
    %c2_31 = arith.constant 2 : index
    %c0_32 = arith.constant 0 : index
    %67 = vector.load %arg5[%c2_30, %c2_31, %c0_32] : memref<12x12x8xf32, #tpu.memory_space<vmem>>, vector<8x8x8xf32>
    tpu.vector_store %arg5[%c2_30, %c2_31, %c0_32], %64 {strides = array<i32>} : memref<12x12x8xf32, #tpu.memory_space<vmem>>, vector<8x8x8xf32>,
    %c0_33 = arith.constant 0 : index
    %c0_34 = arith.constant 0 : index
    %c0_35 = arith.constant 0 : index
    %68 = vector.load %arg5[%c0_33, %c0_34, %c0_35] : memref<12x12x8xf32, #tpu.memory_space<vmem>>, vector<12x12x8xf32>
    %69 = vector.extract_strided_slice %68 {offsets = [1, 0, 0], sizes = [8, 12, 8], strides = [1, 1, 1]} : vector<12x12x8xf32> to vector<8x12x8xf32>
    %cst_36 = arith.constant 1.250000e-01 : f32
    %70 = vector.broadcast %cst_36 : f32 to vector<8x12x8xf32>
    %71 = arith.mulf %70, %69 : vector<8x12x8xf32>
    %72 = vector.extract_strided_slice %68 {offsets = [2, 0, 0], sizes = [8, 12, 8], strides = [1, 1, 1]} : vector<12x12x8xf32> to vector<8x12x8xf32>
    %cst_37 = arith.constant 7.500000e-01 : f32
    %73 = vector.broadcast %cst_37 : f32 to vector<8x12x8xf32>
    %74 = arith.mulf %73, %72 : vector<8x12x8xf32>
    %75 = arith.addf %71, %74 : vector<8x12x8xf32>
    %76 = vector.extract_strided_slice %68 {offsets = [3, 0, 0], sizes = [8, 12, 8], strides = [1, 1, 1]} : vector<12x12x8xf32> to vector<8x12x8xf32>
    %cst_38 = arith.constant 1.250000e-01 : f32
    %77 = vector.broadcast %cst_38 : f32 to vector<8x12x8xf32>
    %78 = arith.mulf %77, %76 : vector<8x12x8xf32>
    %79 = arith.addf %75, %78 : vector<8x12x8xf32>
    %80 = vector.extract_strided_slice %68 {offsets = [2, 0, 0], sizes = [8, 12, 8], strides = [1, 1, 1]} : vector<12x12x8xf32> to vector<8x12x8xf32>
    %cst_39 = arith.constant 5.000000e-01 : f32
    %81 = vector.broadcast %cst_39 : f32 to vector<8x12x8xf32>
    %82 = arith.mulf %81, %80 : vector<8x12x8xf32>
    %83 = vector.extract_strided_slice %68 {offsets = [3, 0, 0], sizes = [8, 12, 8], strides = [1, 1, 1]} : vector<12x12x8xf32> to vector<8x12x8xf32>
    %cst_40 = arith.constant 5.000000e-01 : f32
    %84 = vector.broadcast %cst_40 : f32 to vector<8x12x8xf32>
    %85 = arith.mulf %84, %83 : vector<8x12x8xf32>
    %86 = arith.addf %82, %85 : vector<8x12x8xf32>
    %87 = vector.extract_strided_slice %79 {offsets = [0, 1, 0], sizes = [8, 8, 8], strides = [1, 1, 1]} : vector<8x12x8xf32> to vector<8x8x8xf32>
    %cst_41 = arith.constant 1.250000e-01 : f32
    %88 = vector.broadcast %cst_41 : f32 to vector<8x8x8xf32>
    %89 = arith.mulf %88, %87 : vector<8x8x8xf32>
    %90 = vector.extract_strided_slice %79 {offsets = [0, 2, 0], sizes = [8, 8, 8], strides = [1, 1, 1]} : vector<8x12x8xf32> to vector<8x8x8xf32>
    %cst_42 = arith.constant 7.500000e-01 : f32
    %91 = vector.broadcast %cst_42 : f32 to vector<8x8x8xf32>
    %92 = arith.mulf %91, %90 : vector<8x8x8xf32>
    %93 = arith.addf %89, %92 : vector<8x8x8xf32>
    %94 = vector.extract_strided_slice %79 {offsets = [0, 3, 0], sizes = [8, 8, 8], strides = [1, 1, 1]} : vector<8x12x8xf32> to vector<8x8x8xf32>
    %cst_43 = arith.constant 1.250000e-01 : f32
    %95 = vector.broadcast %cst_43 : f32 to vector<8x8x8xf32>
    %96 = arith.mulf %95, %94 : vector<8x8x8xf32>
    %97 = arith.addf %93, %96 : vector<8x8x8xf32>
    %98 = vector.extract_strided_slice %1 {offsets = [1, 1, 0], sizes = [8, 8, 8], strides = [1, 1, 1]} : vector<10x10x8xf32> to vector<8x8x8xf32>
    %cst_44 = arith.constant 0.000000e+00 : f32
    %99 = vector.broadcast %cst_44 : f32 to vector<10x10x8xf32>
    %c0_45 = arith.constant 0 : index
    %c0_46 = arith.constant 0 : index
    %c0_47 = arith.constant 0 : index
    %c0_48 = arith.constant 0 : index
    %100 = vector.load %arg6[%c0_45, %c0_46, %c0_47, %c0_48] : memref<4x10x10x8xf32, #tpu.memory_space<vmem>>, vector<1x10x10x8xf32>
    %101 = vector.shape_cast %100 : vector<1x10x10x8xf32> to vector<10x10x8xf32>
    %102 = vector.shape_cast %99 : vector<10x10x8xf32> to vector<1x10x10x8xf32>
    tpu.vector_store %arg6[%c0_45, %c0_46, %c0_47, %c0_48], %102 {strides = array<i32>} : memref<4x10x10x8xf32, #tpu.memory_space<vmem>>, vector<1x10x10x8xf32>,
    %103 = arith.subf %98, %97 : vector<8x8x8xf32>
    %c0_49 = arith.constant 0 : index
    %c1_50 = arith.constant 1 : index
    %c1_51 = arith.constant 1 : index
    %c0_52 = arith.constant 0 : index
    %104 = vector.load %arg6[%c0_49, %c1_50, %c1_51, %c0_52] : memref<4x10x10x8xf32, #tpu.memory_space<vmem>>, vector<1x8x8x8xf32>
    %105 = vector.shape_cast %104 : vector<1x8x8x8xf32> to vector<8x8x8xf32>
    %106 = vector.shape_cast %103 : vector<8x8x8xf32> to vector<1x8x8x8xf32>
    tpu.vector_store %arg6[%c0_49, %c1_50, %c1_51, %c0_52], %106 {strides = array<i32>} : memref<4x10x10x8xf32, #tpu.memory_space<vmem>>, vector<1x8x8x8xf32>,
    %107 = vector.extract_strided_slice %79 {offsets = [0, 2, 0], sizes = [8, 8, 8], strides = [1, 1, 1]} : vector<8x12x8xf32> to vector<8x8x8xf32>
    %cst_53 = arith.constant 5.000000e-01 : f32
    %108 = vector.broadcast %cst_53 : f32 to vector<8x8x8xf32>
    %109 = arith.mulf %108, %107 : vector<8x8x8xf32>
    %110 = vector.extract_strided_slice %79 {offsets = [0, 3, 0], sizes = [8, 8, 8], strides = [1, 1, 1]} : vector<8x12x8xf32> to vector<8x8x8xf32>
    %cst_54 = arith.constant 5.000000e-01 : f32
    %111 = vector.broadcast %cst_54 : f32 to vector<8x8x8xf32>
    %112 = arith.mulf %111, %110 : vector<8x8x8xf32>
    %113 = arith.addf %109, %112 : vector<8x8x8xf32>
    %114 = vector.extract_strided_slice %3 {offsets = [1, 1, 0], sizes = [8, 8, 8], strides = [1, 1, 1]} : vector<10x10x8xf32> to vector<8x8x8xf32>
    %cst_55 = arith.constant 0.000000e+00 : f32
    %115 = vector.broadcast %cst_55 : f32 to vector<10x10x8xf32>
    %c1_56 = arith.constant 1 : index
    %c0_57 = arith.constant 0 : index
    %c0_58 = arith.constant 0 : index
    %c0_59 = arith.constant 0 : index
    %116 = vector.load %arg6[%c1_56, %c0_57, %c0_58, %c0_59] : memref<4x10x10x8xf32, #tpu.memory_space<vmem>>, vector<1x10x10x8xf32>
    %117 = vector.shape_cast %116 : vector<1x10x10x8xf32> to vector<10x10x8xf32>
    %118 = vector.shape_cast %115 : vector<10x10x8xf32> to vector<1x10x10x8xf32>
    tpu.vector_store %arg6[%c1_56, %c0_57, %c0_58, %c0_59], %118 {strides = array<i32>} : memref<4x10x10x8xf32, #tpu.memory_space<vmem>>, vector<1x10x10x8xf32>,
    %119 = arith.subf %114, %113 : vector<8x8x8xf32>
    %c1_60 = arith.constant 1 : index
    %c1_61 = arith.constant 1 : index
    %c1_62 = arith.constant 1 : index
    %c0_63 = arith.constant 0 : index
    %120 = vector.load %arg6[%c1_60, %c1_61, %c1_62, %c0_63] : memref<4x10x10x8xf32, #tpu.memory_space<vmem>>, vector<1x8x8x8xf32>
    %121 = vector.shape_cast %120 : vector<1x8x8x8xf32> to vector<8x8x8xf32>
    %122 = vector.shape_cast %119 : vector<8x8x8xf32> to vector<1x8x8x8xf32>
    tpu.vector_store %arg6[%c1_60, %c1_61, %c1_62, %c0_63], %122 {strides = array<i32>} : memref<4x10x10x8xf32, #tpu.memory_space<vmem>>, vector<1x8x8x8xf32>,
    %123 = vector.extract_strided_slice %86 {offsets = [0, 1, 0], sizes = [8, 8, 8], strides = [1, 1, 1]} : vector<8x12x8xf32> to vector<8x8x8xf32>
    %cst_64 = arith.constant 1.250000e-01 : f32
    %124 = vector.broadcast %cst_64 : f32 to vector<8x8x8xf32>
    %125 = arith.mulf %124, %123 : vector<8x8x8xf32>
    %126 = vector.extract_strided_slice %86 {offsets = [0, 2, 0], sizes = [8, 8, 8], strides = [1, 1, 1]} : vector<8x12x8xf32> to vector<8x8x8xf32>
    %cst_65 = arith.constant 7.500000e-01 : f32
    %127 = vector.broadcast %cst_65 : f32 to vector<8x8x8xf32>
    %128 = arith.mulf %127, %126 : vector<8x8x8xf32>
    %129 = arith.addf %125, %128 : vector<8x8x8xf32>
    %130 = vector.extract_strided_slice %86 {offsets = [0, 3, 0], sizes = [8, 8, 8], strides = [1, 1, 1]} : vector<8x12x8xf32> to vector<8x8x8xf32>
    %cst_66 = arith.constant 1.250000e-01 : f32
    %131 = vector.broadcast %cst_66 : f32 to vector<8x8x8xf32>
    %132 = arith.mulf %131, %130 : vector<8x8x8xf32>
    %133 = arith.addf %129, %132 : vector<8x8x8xf32>
    %134 = vector.extract_strided_slice %5 {offsets = [1, 1, 0], sizes = [8, 8, 8], strides = [1, 1, 1]} : vector<10x10x8xf32> to vector<8x8x8xf32>
    %cst_67 = arith.constant 0.000000e+00 : f32
    %135 = vector.broadcast %cst_67 : f32 to vector<10x10x8xf32>
    %c2_68 = arith.constant 2 : index
    %c0_69 = arith.constant 0 : index
    %c0_70 = arith.constant 0 : index
    %c0_71 = arith.constant 0 : index
    %136 = vector.load %arg6[%c2_68, %c0_69, %c0_70, %c0_71] : memref<4x10x10x8xf32, #tpu.memory_space<vmem>>, vector<1x10x10x8xf32>
    %137 = vector.shape_cast %136 : vector<1x10x10x8xf32> to vector<10x10x8xf32>
    %138 = vector.shape_cast %135 : vector<10x10x8xf32> to vector<1x10x10x8xf32>
    tpu.vector_store %arg6[%c2_68, %c0_69, %c0_70, %c0_71], %138 {strides = array<i32>} : memref<4x10x10x8xf32, #tpu.memory_space<vmem>>, vector<1x10x10x8xf32>,
    %139 = arith.subf %134, %133 : vector<8x8x8xf32>
    %c2_72 = arith.constant 2 : index
    %c1_73 = arith.constant 1 : index
    %c1_74 = arith.constant 1 : index
    %c0_75 = arith.constant 0 : index
    %140 = vector.load %arg6[%c2_72, %c1_73, %c1_74, %c0_75] : memref<4x10x10x8xf32, #tpu.memory_space<vmem>>, vector<1x8x8x8xf32>
    %141 = vector.shape_cast %140 : vector<1x8x8x8xf32> to vector<8x8x8xf32>
    %142 = vector.shape_cast %139 : vector<8x8x8xf32> to vector<1x8x8x8xf32>
    tpu.vector_store %arg6[%c2_72, %c1_73, %c1_74, %c0_75], %142 {strides = array<i32>} : memref<4x10x10x8xf32, #tpu.memory_space<vmem>>, vector<1x8x8x8xf32>,
    %143 = vector.extract_strided_slice %86 {offsets = [0, 2, 0], sizes = [8, 8, 8], strides = [1, 1, 1]} : vector<8x12x8xf32> to vector<8x8x8xf32>
    %cst_76 = arith.constant 5.000000e-01 : f32
    %144 = vector.broadcast %cst_76 : f32 to vector<8x8x8xf32>
    %145 = arith.mulf %144, %143 : vector<8x8x8xf32>
    %146 = vector.extract_strided_slice %86 {offsets = [0, 3, 0], sizes = [8, 8, 8], strides = [1, 1, 1]} : vector<8x12x8xf32> to vector<8x8x8xf32>
    %cst_77 = arith.constant 5.000000e-01 : f32
    %147 = vector.broadcast %cst_77 : f32 to vector<8x8x8xf32>
    %148 = arith.mulf %147, %146 : vector<8x8x8xf32>
    %149 = arith.addf %145, %148 : vector<8x8x8xf32>
    %150 = vector.extract_strided_slice %7 {offsets = [1, 1, 0], sizes = [8, 8, 8], strides = [1, 1, 1]} : vector<10x10x8xf32> to vector<8x8x8xf32>
    %cst_78 = arith.constant 0.000000e+00 : f32
    %151 = vector.broadcast %cst_78 : f32 to vector<10x10x8xf32>
    %c3_79 = arith.constant 3 : index
    %c0_80 = arith.constant 0 : index
    %c0_81 = arith.constant 0 : index
    %c0_82 = arith.constant 0 : index
    %152 = vector.load %arg6[%c3_79, %c0_80, %c0_81, %c0_82] : memref<4x10x10x8xf32, #tpu.memory_space<vmem>>, vector<1x10x10x8xf32>
    %153 = vector.shape_cast %152 : vector<1x10x10x8xf32> to vector<10x10x8xf32>
    %154 = vector.shape_cast %151 : vector<10x10x8xf32> to vector<1x10x10x8xf32>
    tpu.vector_store %arg6[%c3_79, %c0_80, %c0_81, %c0_82], %154 {strides = array<i32>} : memref<4x10x10x8xf32, #tpu.memory_space<vmem>>, vector<1x10x10x8xf32>,
    %155 = arith.subf %150, %149 : vector<8x8x8xf32>
    %c3_83 = arith.constant 3 : index
    %c1_84 = arith.constant 1 : index
    %c1_85 = arith.constant 1 : index
    %c0_86 = arith.constant 0 : index
    %156 = vector.load %arg6[%c3_83, %c1_84, %c1_85, %c0_86] : memref<4x10x10x8xf32, #tpu.memory_space<vmem>>, vector<1x8x8x8xf32>
    %157 = vector.shape_cast %156 : vector<1x8x8x8xf32> to vector<8x8x8xf32>
    %158 = vector.shape_cast %155 : vector<8x8x8xf32> to vector<1x8x8x8xf32>
    tpu.vector_store %arg6[%c3_83, %c1_84, %c1_85, %c0_86], %158 {strides = array<i32>} : memref<4x10x10x8xf32, #tpu.memory_space<vmem>>, vector<1x8x8x8xf32>,
    %c1_87 = arith.constant 1 : index
    %c0_88 = arith.constant 0 : index
    %c0_89 = arith.constant 0 : index
    %c0_90 = arith.constant 0 : index
    %159 = vector.load %arg6[%c1_87, %c0_88, %c0_89, %c0_90] : memref<4x10x10x8xf32, #tpu.memory_space<vmem>>, vector<1x10x10x8xf32>
    %160 = vector.shape_cast %159 : vector<1x10x10x8xf32> to vector<10x10x8xf32>
    %c2_91 = arith.constant 2 : index
    %c0_92 = arith.constant 0 : index
    %c0_93 = arith.constant 0 : index
    %c0_94 = arith.constant 0 : index
    %161 = vector.load %arg6[%c2_91, %c0_92, %c0_93, %c0_94] : memref<4x10x10x8xf32, #tpu.memory_space<vmem>>, vector<1x10x10x8xf32>
    %162 = vector.shape_cast %161 : vector<1x10x10x8xf32> to vector<10x10x8xf32>
    %c3_95 = arith.constant 3 : index
    %c0_96 = arith.constant 0 : index
    %c0_97 = arith.constant 0 : index
    %c0_98 = arith.constant 0 : index
    %163 = vector.load %arg6[%c3_95, %c0_96, %c0_97, %c0_98] : memref<4x10x10x8xf32, #tpu.memory_space<vmem>>, vector<1x10x10x8xf32>
    %164 = vector.shape_cast %163 : vector<1x10x10x8xf32> to vector<10x10x8xf32>
    %165 = vector.extract_strided_slice %164 {offsets = [0, 0, 0], sizes = [8, 8, 8], strides = [1, 1, 1]} : vector<10x10x8xf32> to vector<8x8x8xf32>
    %cst_99 = arith.constant -2.500000e-01 : f32
    %166 = vector.broadcast %cst_99 : f32 to vector<8x8x8xf32>
    %167 = arith.mulf %166, %165 : vector<8x8x8xf32>
    %168 = vector.extract_strided_slice %162 {offsets = [0, 1, 0], sizes = [8, 8, 8], strides = [1, 1, 1]} : vector<10x10x8xf32> to vector<8x8x8xf32>
    %cst_100 = arith.constant -5.000000e-01 : f32
    %169 = vector.broadcast %cst_100 : f32 to vector<8x8x8xf32>
    %170 = arith.mulf %169, %168 : vector<8x8x8xf32>
    %171 = arith.addf %167, %170 : vector<8x8x8xf32>
    %172 = vector.extract_strided_slice %164 {offsets = [0, 1, 0], sizes = [8, 8, 8], strides = [1, 1, 1]} : vector<10x10x8xf32> to vector<8x8x8xf32>
    %cst_101 = arith.constant -2.500000e-01 : f32
    %173 = vector.broadcast %cst_101 : f32 to vector<8x8x8xf32>
    %174 = arith.mulf %173, %172 : vector<8x8x8xf32>
    %175 = arith.addf %171, %174 : vector<8x8x8xf32>
    %176 = vector.extract_strided_slice %164 {offsets = [1, 0, 0], sizes = [8, 8, 8], strides = [1, 1, 1]} : vector<10x10x8xf32> to vector<8x8x8xf32>
    %cst_102 = arith.constant 2.500000e-01 : f32
    %177 = vector.broadcast %cst_102 : f32 to vector<8x8x8xf32>
    %178 = arith.mulf %177, %176 : vector<8x8x8xf32>
    %179 = arith.addf %175, %178 : vector<8x8x8xf32>
    %180 = vector.extract_strided_slice %162 {offsets = [1, 1, 0], sizes = [8, 8, 8], strides = [1, 1, 1]} : vector<10x10x8xf32> to vector<8x8x8xf32>
    %cst_103 = arith.constant 5.000000e-01 : f32
    %181 = vector.broadcast %cst_103 : f32 to vector<8x8x8xf32>
    %182 = arith.mulf %181, %180 : vector<8x8x8xf32>
    %183 = arith.addf %179, %182 : vector<8x8x8xf32>
    %184 = vector.extract_strided_slice %164 {offsets = [1, 1, 0], sizes = [8, 8, 8], strides = [1, 1, 1]} : vector<10x10x8xf32> to vector<8x8x8xf32>
    %cst_104 = arith.constant 2.500000e-01 : f32
    %185 = vector.broadcast %cst_104 : f32 to vector<8x8x8xf32>
    %186 = arith.mulf %185, %184 : vector<8x8x8xf32>
    %187 = arith.addf %183, %186 : vector<8x8x8xf32>
    %c0_105 = arith.constant 0 : index
    %c0_106 = arith.constant 0 : index
    %c0_107 = arith.constant 0 : index
    %c0_108 = arith.constant 0 : index
    %188 = vector.load %arg4[%c0_105, %c0_106, %c0_107, %c0_108] : memref<4x8x8x8xf32, #tpu.memory_space<vmem>>, vector<1x8x8x8xf32>
    %189 = vector.shape_cast %188 : vector<1x8x8x8xf32> to vector<8x8x8xf32>
    %190 = vector.shape_cast %187 : vector<8x8x8xf32> to vector<1x8x8x8xf32>
    tpu.vector_store %arg4[%c0_105, %c0_106, %c0_107, %c0_108], %190 {strides = array<i32>} : memref<4x8x8x8xf32, #tpu.memory_space<vmem>>, vector<1x8x8x8xf32>,
    %191 = vector.extract_strided_slice %164 {offsets = [0, 0, 0], sizes = [8, 8, 8], strides = [1, 1, 1]} : vector<10x10x8xf32> to vector<8x8x8xf32>
    %cst_109 = arith.constant -2.500000e-01 : f32
    %192 = vector.broadcast %cst_109 : f32 to vector<8x8x8xf32>
    %193 = arith.mulf %192, %191 : vector<8x8x8xf32>
    %194 = vector.extract_strided_slice %164 {offsets = [0, 1, 0], sizes = [8, 8, 8], strides = [1, 1, 1]} : vector<10x10x8xf32> to vector<8x8x8xf32>
    %cst_110 = arith.constant 2.500000e-01 : f32
    %195 = vector.broadcast %cst_110 : f32 to vector<8x8x8xf32>
    %196 = arith.mulf %195, %194 : vector<8x8x8xf32>
    %197 = arith.addf %193, %196 : vector<8x8x8xf32>
    %198 = vector.extract_strided_slice %160 {offsets = [1, 0, 0], sizes = [8, 8, 8], strides = [1, 1, 1]} : vector<10x10x8xf32> to vector<8x8x8xf32>
    %cst_111 = arith.constant -5.000000e-01 : f32
    %199 = vector.broadcast %cst_111 : f32 to vector<8x8x8xf32>
    %200 = arith.mulf %199, %198 : vector<8x8x8xf32>
    %201 = arith.addf %197, %200 : vector<8x8x8xf32>
    %202 = vector.extract_strided_slice %160 {offsets = [1, 1, 0], sizes = [8, 8, 8], strides = [1, 1, 1]} : vector<10x10x8xf32> to vector<8x8x8xf32>
    %cst_112 = arith.constant 5.000000e-01 : f32
    %203 = vector.broadcast %cst_112 : f32 to vector<8x8x8xf32>
    %204 = arith.mulf %203, %202 : vector<8x8x8xf32>
    %205 = arith.addf %201, %204 : vector<8x8x8xf32>
    %206 = vector.extract_strided_slice %164 {offsets = [1, 0, 0], sizes = [8, 8, 8], strides = [1, 1, 1]} : vector<10x10x8xf32> to vector<8x8x8xf32>
    %cst_113 = arith.constant -2.500000e-01 : f32
    %207 = vector.broadcast %cst_113 : f32 to vector<8x8x8xf32>
    %208 = arith.mulf %207, %206 : vector<8x8x8xf32>
    %209 = arith.addf %205, %208 : vector<8x8x8xf32>
    %210 = vector.extract_strided_slice %164 {offsets = [1, 1, 0], sizes = [8, 8, 8], strides = [1, 1, 1]} : vector<10x10x8xf32> to vector<8x8x8xf32>
    %cst_114 = arith.constant 2.500000e-01 : f32
    %211 = vector.broadcast %cst_114 : f32 to vector<8x8x8xf32>
    %212 = arith.mulf %211, %210 : vector<8x8x8xf32>
    %213 = arith.addf %209, %212 : vector<8x8x8xf32>
    %c1_115 = arith.constant 1 : index
    %c0_116 = arith.constant 0 : index
    %c0_117 = arith.constant 0 : index
    %c0_118 = arith.constant 0 : index
    %214 = vector.load %arg4[%c1_115, %c0_116, %c0_117, %c0_118] : memref<4x8x8x8xf32, #tpu.memory_space<vmem>>, vector<1x8x8x8xf32>
    %215 = vector.shape_cast %214 : vector<1x8x8x8xf32> to vector<8x8x8xf32>
    %216 = vector.shape_cast %213 : vector<8x8x8xf32> to vector<1x8x8x8xf32>
    tpu.vector_store %arg4[%c1_115, %c0_116, %c0_117, %c0_118], %216 {strides = array<i32>} : memref<4x8x8x8xf32, #tpu.memory_space<vmem>>, vector<1x8x8x8xf32>,
    %217 = vector.extract_strided_slice %164 {offsets = [0, 0, 0], sizes = [8, 8, 8], strides = [1, 1, 1]} : vector<10x10x8xf32> to vector<8x8x8xf32>
    %cst_119 = arith.constant -5.000000e-01 : f32
    %218 = vector.broadcast %cst_119 : f32 to vector<8x8x8xf32>
    %219 = arith.mulf %218, %217 : vector<8x8x8xf32>
    %220 = vector.extract_strided_slice %162 {offsets = [0, 1, 0], sizes = [8, 8, 8], strides = [1, 1, 1]} : vector<10x10x8xf32> to vector<8x8x8xf32>
    %cst_120 = arith.constant -2.500000e-01 : f32
    %221 = vector.broadcast %cst_120 : f32 to vector<8x8x8xf32>
    %222 = arith.mulf %221, %220 : vector<8x8x8xf32>
    %223 = arith.addf %219, %222 : vector<8x8x8xf32>
    %224 = vector.extract_strided_slice %160 {offsets = [1, 0, 0], sizes = [8, 8, 8], strides = [1, 1, 1]} : vector<10x10x8xf32> to vector<8x8x8xf32>
    %cst_121 = arith.constant -2.500000e-01 : f32
    %225 = vector.broadcast %cst_121 : f32 to vector<8x8x8xf32>
    %226 = arith.mulf %225, %224 : vector<8x8x8xf32>
    %227 = arith.addf %223, %226 : vector<8x8x8xf32>
    %228 = vector.extract_strided_slice %160 {offsets = [1, 1, 0], sizes = [8, 8, 8], strides = [1, 1, 1]} : vector<10x10x8xf32> to vector<8x8x8xf32>
    %cst_122 = arith.constant 2.500000e-01 : f32
    %229 = vector.broadcast %cst_122 : f32 to vector<8x8x8xf32>
    %230 = arith.mulf %229, %228 : vector<8x8x8xf32>
    %231 = arith.addf %227, %230 : vector<8x8x8xf32>
    %232 = vector.extract_strided_slice %162 {offsets = [1, 1, 0], sizes = [8, 8, 8], strides = [1, 1, 1]} : vector<10x10x8xf32> to vector<8x8x8xf32>
    %cst_123 = arith.constant 2.500000e-01 : f32
    %233 = vector.broadcast %cst_123 : f32 to vector<8x8x8xf32>
    %234 = arith.mulf %233, %232 : vector<8x8x8xf32>
    %235 = arith.addf %231, %234 : vector<8x8x8xf32>
    %236 = vector.extract_strided_slice %164 {offsets = [1, 1, 0], sizes = [8, 8, 8], strides = [1, 1, 1]} : vector<10x10x8xf32> to vector<8x8x8xf32>
    %cst_124 = arith.constant 5.000000e-01 : f32
    %237 = vector.broadcast %cst_124 : f32 to vector<8x8x8xf32>
    %238 = arith.mulf %237, %236 : vector<8x8x8xf32>
    %239 = arith.addf %235, %238 : vector<8x8x8xf32>
    %c2_125 = arith.constant 2 : index
    %c0_126 = arith.constant 0 : index
    %c0_127 = arith.constant 0 : index
    %c0_128 = arith.constant 0 : index
    %240 = vector.load %arg4[%c2_125, %c0_126, %c0_127, %c0_128] : memref<4x8x8x8xf32, #tpu.memory_space<vmem>>, vector<1x8x8x8xf32>
    %241 = vector.shape_cast %240 : vector<1x8x8x8xf32> to vector<8x8x8xf32>
    %242 = vector.shape_cast %239 : vector<8x8x8xf32> to vector<1x8x8x8xf32>
    tpu.vector_store %arg4[%c2_125, %c0_126, %c0_127, %c0_128], %242 {strides = array<i32>} : memref<4x8x8x8xf32, #tpu.memory_space<vmem>>, vector<1x8x8x8xf32>,
    %243 = vector.extract_strided_slice %162 {offsets = [0, 1, 0], sizes = [8, 8, 8], strides = [1, 1, 1]} : vector<10x10x8xf32> to vector<8x8x8xf32>
    %cst_129 = arith.constant -2.500000e-01 : f32
    %244 = vector.broadcast %cst_129 : f32 to vector<8x8x8xf32>
    %245 = arith.mulf %244, %243 : vector<8x8x8xf32>
    %246 = vector.extract_strided_slice %164 {offsets = [0, 1, 0], sizes = [8, 8, 8], strides = [1, 1, 1]} : vector<10x10x8xf32> to vector<8x8x8xf32>
    %cst_130 = arith.constant -5.000000e-01 : f32
    %247 = vector.broadcast %cst_130 : f32 to vector<8x8x8xf32>
    %248 = arith.mulf %247, %246 : vector<8x8x8xf32>
    %249 = arith.addf %245, %248 : vector<8x8x8xf32>
    %250 = vector.extract_strided_slice %160 {offsets = [1, 0, 0], sizes = [8, 8, 8], strides = [1, 1, 1]} : vector<10x10x8xf32> to vector<8x8x8xf32>
    %cst_131 = arith.constant 2.500000e-01 : f32
    %251 = vector.broadcast %cst_131 : f32 to vector<8x8x8xf32>
    %252 = arith.mulf %251, %250 : vector<8x8x8xf32>
    %253 = arith.addf %249, %252 : vector<8x8x8xf32>
    %254 = vector.extract_strided_slice %160 {offsets = [1, 1, 0], sizes = [8, 8, 8], strides = [1, 1, 1]} : vector<10x10x8xf32> to vector<8x8x8xf32>
    %cst_132 = arith.constant -2.500000e-01 : f32
    %255 = vector.broadcast %cst_132 : f32 to vector<8x8x8xf32>
    %256 = arith.mulf %255, %254 : vector<8x8x8xf32>
    %257 = arith.addf %253, %256 : vector<8x8x8xf32>
    %258 = vector.extract_strided_slice %164 {offsets = [1, 0, 0], sizes = [8, 8, 8], strides = [1, 1, 1]} : vector<10x10x8xf32> to vector<8x8x8xf32>
    %cst_133 = arith.constant 5.000000e-01 : f32
    %259 = vector.broadcast %cst_133 : f32 to vector<8x8x8xf32>
    %260 = arith.mulf %259, %258 : vector<8x8x8xf32>
    %261 = arith.addf %257, %260 : vector<8x8x8xf32>
    %262 = vector.extract_strided_slice %162 {offsets = [1, 1, 0], sizes = [8, 8, 8], strides = [1, 1, 1]} : vector<10x10x8xf32> to vector<8x8x8xf32>
    %cst_134 = arith.constant 2.500000e-01 : f32
    %263 = vector.broadcast %cst_134 : f32 to vector<8x8x8xf32>
    %264 = arith.mulf %263, %262 : vector<8x8x8xf32>
    %265 = arith.addf %261, %264 : vector<8x8x8xf32>
    %c3_135 = arith.constant 3 : index
    %c0_136 = arith.constant 0 : index
    %c0_137 = arith.constant 0 : index
    %c0_138 = arith.constant 0 : index
    %266 = vector.load %arg4[%c3_135, %c0_136, %c0_137, %c0_138] : memref<4x8x8x8xf32, #tpu.memory_space<vmem>>, vector<1x8x8x8xf32>
    %267 = vector.shape_cast %266 : vector<1x8x8x8xf32> to vector<8x8x8xf32>
    %268 = vector.shape_cast %265 : vector<8x8x8xf32> to vector<1x8x8x8xf32>
    tpu.vector_store %arg4[%c3_135, %c0_136, %c0_137, %c0_138], %268 {strides = array<i32>} : memref<4x8x8x8xf32, #tpu.memory_space<vmem>>, vector<1x8x8x8xf32>,
    %269 = vector.extract_strided_slice %68 {offsets = [0, 0, 0], sizes = [1, 12, 8], strides = [1, 1, 1]} : vector<12x12x8xf32> to vector<1x12x8xf32>
    %270 = vector.shape_cast %269 : vector<1x12x8xf32> to vector<12x8xf32>
    %cst_139 = arith.constant 6.250000e-02 : f32
    %271 = vector.broadcast %cst_139 : f32 to vector<12x8xf32>
    %272 = arith.mulf %271, %270 : vector<12x8xf32>
    %cst_140 = arith.constant 6.250000e-02 : f32
    %273 = vector.broadcast %cst_140 : f32 to vector<12x8xf32>
    %274 = arith.mulf %273, %270 : vector<12x8xf32>
    %275 = vector.extract_strided_slice %68 {offsets = [1, 0, 0], sizes = [1, 12, 8], strides = [1, 1, 1]} : vector<12x12x8xf32> to vector<1x12x8xf32>
    %276 = vector.shape_cast %275 : vector<1x12x8xf32> to vector<12x8xf32>
    %cst_141 = arith.constant 2.500000e-01 : f32
    %277 = vector.broadcast %cst_141 : f32 to vector<12x8xf32>
    %278 = arith.mulf %277, %276 : vector<12x8xf32>
    %cst_142 = arith.constant -2.500000e-01 : f32
    %279 = vector.broadcast %cst_142 : f32 to vector<12x8xf32>
    %280 = arith.mulf %279, %276 : vector<12x8xf32>
    %281 = arith.addf %272, %278 : vector<12x8xf32>
    %282 = arith.addf %274, %280 : vector<12x8xf32>
    %283 = vector.extract_strided_slice %68 {offsets = [2, 0, 0], sizes = [1, 12, 8], strides = [1, 1, 1]} : vector<12x12x8xf32> to vector<1x12x8xf32>
    %284 = vector.shape_cast %283 : vector<1x12x8xf32> to vector<12x8xf32>
    %cst_143 = arith.constant 3.750000e-01 : f32
    %285 = vector.broadcast %cst_143 : f32 to vector<12x8xf32>
    %286 = arith.mulf %285, %284 : vector<12x8xf32>
    %cst_144 = arith.constant 3.750000e-01 : f32
    %287 = vector.broadcast %cst_144 : f32 to vector<12x8xf32>
    %288 = arith.mulf %287, %284 : vector<12x8xf32>
    %289 = arith.addf %281, %286 : vector<12x8xf32>
    %290 = arith.addf %282, %288 : vector<12x8xf32>
    %291 = vector.extract_strided_slice %68 {offsets = [3, 0, 0], sizes = [1, 12, 8], strides = [1, 1, 1]} : vector<12x12x8xf32> to vector<1x12x8xf32>
    %292 = vector.shape_cast %291 : vector<1x12x8xf32> to vector<12x8xf32>
    %cst_145 = arith.constant 2.500000e-01 : f32
    %293 = vector.broadcast %cst_145 : f32 to vector<12x8xf32>
    %294 = arith.mulf %293, %292 : vector<12x8xf32>
    %cst_146 = arith.constant -2.500000e-01 : f32
    %295 = vector.broadcast %cst_146 : f32 to vector<12x8xf32>
    %296 = arith.mulf %295, %292 : vector<12x8xf32>
    %297 = arith.addf %289, %294 : vector<12x8xf32>
    %298 = arith.addf %290, %296 : vector<12x8xf32>
    %299 = vector.extract_strided_slice %68 {offsets = [4, 0, 0], sizes = [1, 12, 8], strides = [1, 1, 1]} : vector<12x12x8xf32> to vector<1x12x8xf32>
    %300 = vector.shape_cast %299 : vector<1x12x8xf32> to vector<12x8xf32>
    %cst_147 = arith.constant 6.250000e-02 : f32
    %301 = vector.broadcast %cst_147 : f32 to vector<12x8xf32>
    %302 = arith.mulf %301, %300 : vector<12x8xf32>
    %cst_148 = arith.constant 6.250000e-02 : f32
    %303 = vector.broadcast %cst_148 : f32 to vector<12x8xf32>
    %304 = arith.mulf %303, %300 : vector<12x8xf32>
    %305 = arith.addf %297, %302 : vector<12x8xf32>
    %306 = arith.addf %298, %304 : vector<12x8xf32>
    %307 = vector.extract_strided_slice %68 {offsets = [2, 0, 0], sizes = [1, 12, 8], strides = [1, 1, 1]} : vector<12x12x8xf32> to vector<1x12x8xf32>
    %308 = vector.shape_cast %307 : vector<1x12x8xf32> to vector<12x8xf32>
    %cst_149 = arith.constant 6.250000e-02 : f32
    %309 = vector.broadcast %cst_149 : f32 to vector<12x8xf32>
    %310 = arith.mulf %309, %308 : vector<12x8xf32>
    %cst_150 = arith.constant 6.250000e-02 : f32
    %311 = vector.broadcast %cst_150 : f32 to vector<12x8xf32>
    %312 = arith.mulf %311, %308 : vector<12x8xf32>
    %313 = vector.extract_strided_slice %68 {offsets = [3, 0, 0], sizes = [1, 12, 8], strides = [1, 1, 1]} : vector<12x12x8xf32> to vector<1x12x8xf32>
    %314 = vector.shape_cast %313 : vector<1x12x8xf32> to vector<12x8xf32>
    %cst_151 = arith.constant 2.500000e-01 : f32
    %315 = vector.broadcast %cst_151 : f32 to vector<12x8xf32>
    %316 = arith.mulf %315, %314 : vector<12x8xf32>
    %cst_152 = arith.constant -2.500000e-01 : f32
    %317 = vector.broadcast %cst_152 : f32 to vector<12x8xf32>
    %318 = arith.mulf %317, %314 : vector<12x8xf32>
    %319 = arith.addf %310, %316 : vector<12x8xf32>
    %320 = arith.addf %312, %318 : vector<12x8xf32>
    %321 = vector.extract_strided_slice %68 {offsets = [4, 0, 0], sizes = [1, 12, 8], strides = [1, 1, 1]} : vector<12x12x8xf32> to vector<1x12x8xf32>
    %322 = vector.shape_cast %321 : vector<1x12x8xf32> to vector<12x8xf32>
    %cst_153 = arith.constant 3.750000e-01 : f32
    %323 = vector.broadcast %cst_153 : f32 to vector<12x8xf32>
    %324 = arith.mulf %323, %322 : vector<12x8xf32>
    %cst_154 = arith.constant 3.750000e-01 : f32
    %325 = vector.broadcast %cst_154 : f32 to vector<12x8xf32>
    %326 = arith.mulf %325, %322 : vector<12x8xf32>
    %327 = arith.addf %319, %324 : vector<12x8xf32>
    %328 = arith.addf %320, %326 : vector<12x8xf32>
    %329 = vector.extract_strided_slice %68 {offsets = [5, 0, 0], sizes = [1, 12, 8], strides = [1, 1, 1]} : vector<12x12x8xf32> to vector<1x12x8xf32>
    %330 = vector.shape_cast %329 : vector<1x12x8xf32> to vector<12x8xf32>
    %cst_155 = arith.constant 2.500000e-01 : f32
    %331 = vector.broadcast %cst_155 : f32 to vector<12x8xf32>
    %332 = arith.mulf %331, %330 : vector<12x8xf32>
    %cst_156 = arith.constant -2.500000e-01 : f32
    %333 = vector.broadcast %cst_156 : f32 to vector<12x8xf32>
    %334 = arith.mulf %333, %330 : vector<12x8xf32>
    %335 = arith.addf %327, %332 : vector<12x8xf32>
    %336 = arith.addf %328, %334 : vector<12x8xf32>
    %337 = vector.extract_strided_slice %68 {offsets = [6, 0, 0], sizes = [1, 12, 8], strides = [1, 1, 1]} : vector<12x12x8xf32> to vector<1x12x8xf32>
    %338 = vector.shape_cast %337 : vector<1x12x8xf32> to vector<12x8xf32>
    %cst_157 = arith.constant 6.250000e-02 : f32
    %339 = vector.broadcast %cst_157 : f32 to vector<12x8xf32>
    %340 = arith.mulf %339, %338 : vector<12x8xf32>
    %cst_158 = arith.constant 6.250000e-02 : f32
    %341 = vector.broadcast %cst_158 : f32 to vector<12x8xf32>
    %342 = arith.mulf %341, %338 : vector<12x8xf32>
    %343 = arith.addf %335, %340 : vector<12x8xf32>
    %344 = arith.addf %336, %342 : vector<12x8xf32>
    %345 = vector.extract_strided_slice %68 {offsets = [4, 0, 0], sizes = [1, 12, 8], strides = [1, 1, 1]} : vector<12x12x8xf32> to vector<1x12x8xf32>
    %346 = vector.shape_cast %345 : vector<1x12x8xf32> to vector<12x8xf32>
    %cst_159 = arith.constant 6.250000e-02 : f32
    %347 = vector.broadcast %cst_159 : f32 to vector<12x8xf32>
    %348 = arith.mulf %347, %346 : vector<12x8xf32>
    %cst_160 = arith.constant 6.250000e-02 : f32
    %349 = vector.broadcast %cst_160 : f32 to vector<12x8xf32>
    %350 = arith.mulf %349, %346 : vector<12x8xf32>
    %351 = vector.extract_strided_slice %68 {offsets = [5, 0, 0], sizes = [1, 12, 8], strides = [1, 1, 1]} : vector<12x12x8xf32> to vector<1x12x8xf32>
    %352 = vector.shape_cast %351 : vector<1x12x8xf32> to vector<12x8xf32>
    %cst_161 = arith.constant 2.500000e-01 : f32
    %353 = vector.broadcast %cst_161 : f32 to vector<12x8xf32>
    %354 = arith.mulf %353, %352 : vector<12x8xf32>
    %cst_162 = arith.constant -2.500000e-01 : f32
    %355 = vector.broadcast %cst_162 : f32 to vector<12x8xf32>
    %356 = arith.mulf %355, %352 : vector<12x8xf32>
    %357 = arith.addf %348, %354 : vector<12x8xf32>
    %358 = arith.addf %350, %356 : vector<12x8xf32>
    %359 = vector.extract_strided_slice %68 {offsets = [6, 0, 0], sizes = [1, 12, 8], strides = [1, 1, 1]} : vector<12x12x8xf32> to vector<1x12x8xf32>
    %360 = vector.shape_cast %359 : vector<1x12x8xf32> to vector<12x8xf32>
    %cst_163 = arith.constant 3.750000e-01 : f32
    %361 = vector.broadcast %cst_163 : f32 to vector<12x8xf32>
    %362 = arith.mulf %361, %360 : vector<12x8xf32>
    %cst_164 = arith.constant 3.750000e-01 : f32
    %363 = vector.broadcast %cst_164 : f32 to vector<12x8xf32>
    %364 = arith.mulf %363, %360 : vector<12x8xf32>
    %365 = arith.addf %357, %362 : vector<12x8xf32>
    %366 = arith.addf %358, %364 : vector<12x8xf32>
    %367 = vector.extract_strided_slice %68 {offsets = [7, 0, 0], sizes = [1, 12, 8], strides = [1, 1, 1]} : vector<12x12x8xf32> to vector<1x12x8xf32>
    %368 = vector.shape_cast %367 : vector<1x12x8xf32> to vector<12x8xf32>
    %cst_165 = arith.constant 2.500000e-01 : f32
    %369 = vector.broadcast %cst_165 : f32 to vector<12x8xf32>
    %370 = arith.mulf %369, %368 : vector<12x8xf32>
    %cst_166 = arith.constant -2.500000e-01 : f32
    %371 = vector.broadcast %cst_166 : f32 to vector<12x8xf32>
    %372 = arith.mulf %371, %368 : vector<12x8xf32>
    %373 = arith.addf %365, %370 : vector<12x8xf32>
    %374 = arith.addf %366, %372 : vector<12x8xf32>
    %375 = vector.extract_strided_slice %68 {offsets = [8, 0, 0], sizes = [1, 12, 8], strides = [1, 1, 1]} : vector<12x12x8xf32> to vector<1x12x8xf32>
    %376 = vector.shape_cast %375 : vector<1x12x8xf32> to vector<12x8xf32>
    %cst_167 = arith.constant 6.250000e-02 : f32
    %377 = vector.broadcast %cst_167 : f32 to vector<12x8xf32>
    %378 = arith.mulf %377, %376 : vector<12x8xf32>
    %cst_168 = arith.constant 6.250000e-02 : f32
    %379 = vector.broadcast %cst_168 : f32 to vector<12x8xf32>
    %380 = arith.mulf %379, %376 : vector<12x8xf32>
    %381 = arith.addf %373, %378 : vector<12x8xf32>
    %382 = arith.addf %374, %380 : vector<12x8xf32>
    %383 = vector.extract_strided_slice %68 {offsets = [6, 0, 0], sizes = [1, 12, 8], strides = [1, 1, 1]} : vector<12x12x8xf32> to vector<1x12x8xf32>
    %384 = vector.shape_cast %383 : vector<1x12x8xf32> to vector<12x8xf32>
    %cst_169 = arith.constant 6.250000e-02 : f32
    %385 = vector.broadcast %cst_169 : f32 to vector<12x8xf32>
    %386 = arith.mulf %385, %384 : vector<12x8xf32>
    %cst_170 = arith.constant 6.250000e-02 : f32
    %387 = vector.broadcast %cst_170 : f32 to vector<12x8xf32>
    %388 = arith.mulf %387, %384 : vector<12x8xf32>
    %389 = vector.extract_strided_slice %68 {offsets = [7, 0, 0], sizes = [1, 12, 8], strides = [1, 1, 1]} : vector<12x12x8xf32> to vector<1x12x8xf32>
    %390 = vector.shape_cast %389 : vector<1x12x8xf32> to vector<12x8xf32>
    %cst_171 = arith.constant 2.500000e-01 : f32
    %391 = vector.broadcast %cst_171 : f32 to vector<12x8xf32>
    %392 = arith.mulf %391, %390 : vector<12x8xf32>
    %cst_172 = arith.constant -2.500000e-01 : f32
    %393 = vector.broadcast %cst_172 : f32 to vector<12x8xf32>
    %394 = arith.mulf %393, %390 : vector<12x8xf32>
    %395 = arith.addf %386, %392 : vector<12x8xf32>
    %396 = arith.addf %388, %394 : vector<12x8xf32>
    %397 = vector.extract_strided_slice %68 {offsets = [8, 0, 0], sizes = [1, 12, 8], strides = [1, 1, 1]} : vector<12x12x8xf32> to vector<1x12x8xf32>
    %398 = vector.shape_cast %397 : vector<1x12x8xf32> to vector<12x8xf32>
    %cst_173 = arith.constant 3.750000e-01 : f32
    %399 = vector.broadcast %cst_173 : f32 to vector<12x8xf32>
    %400 = arith.mulf %399, %398 : vector<12x8xf32>
    %cst_174 = arith.constant 3.750000e-01 : f32
    %401 = vector.broadcast %cst_174 : f32 to vector<12x8xf32>
    %402 = arith.mulf %401, %398 : vector<12x8xf32>
    %403 = arith.addf %395, %400 : vector<12x8xf32>
    %404 = arith.addf %396, %402 : vector<12x8xf32>
    %405 = vector.extract_strided_slice %68 {offsets = [9, 0, 0], sizes = [1, 12, 8], strides = [1, 1, 1]} : vector<12x12x8xf32> to vector<1x12x8xf32>
    %406 = vector.shape_cast %405 : vector<1x12x8xf32> to vector<12x8xf32>
    %cst_175 = arith.constant 2.500000e-01 : f32
    %407 = vector.broadcast %cst_175 : f32 to vector<12x8xf32>
    %408 = arith.mulf %407, %406 : vector<12x8xf32>
    %cst_176 = arith.constant -2.500000e-01 : f32
    %409 = vector.broadcast %cst_176 : f32 to vector<12x8xf32>
    %410 = arith.mulf %409, %406 : vector<12x8xf32>
    %411 = arith.addf %403, %408 : vector<12x8xf32>
    %412 = arith.addf %404, %410 : vector<12x8xf32>
    %413 = vector.extract_strided_slice %68 {offsets = [10, 0, 0], sizes = [1, 12, 8], strides = [1, 1, 1]} : vector<12x12x8xf32> to vector<1x12x8xf32>
    %414 = vector.shape_cast %413 : vector<1x12x8xf32> to vector<12x8xf32>
    %cst_177 = arith.constant 6.250000e-02 : f32
    %415 = vector.broadcast %cst_177 : f32 to vector<12x8xf32>
    %416 = arith.mulf %415, %414 : vector<12x8xf32>
    %cst_178 = arith.constant 6.250000e-02 : f32
    %417 = vector.broadcast %cst_178 : f32 to vector<12x8xf32>
    %418 = arith.mulf %417, %414 : vector<12x8xf32>
    %419 = arith.addf %411, %416 : vector<12x8xf32>
    %420 = arith.addf %412, %418 : vector<12x8xf32>
    %421 = vector.shape_cast %305 : vector<12x8xf32> to vector<1x12x8xf32>
    %422 = vector.shape_cast %343 : vector<12x8xf32> to vector<1x12x8xf32>
    %423 = vector.shape_cast %381 : vector<12x8xf32> to vector<1x12x8xf32>
    %424 = vector.shape_cast %419 : vector<12x8xf32> to vector<1x12x8xf32>
    %425 = tpu.concatenate %421, %422, %423, %424 in 0 : vector<1x12x8xf32>, vector<1x12x8xf32>, vector<1x12x8xf32>, vector<1x12x8xf32> -> vector<4x12x8xf32>
    %426 = vector.shape_cast %306 : vector<12x8xf32> to vector<1x12x8xf32>
    %427 = vector.shape_cast %344 : vector<12x8xf32> to vector<1x12x8xf32>
    %428 = vector.shape_cast %382 : vector<12x8xf32> to vector<1x12x8xf32>
    %429 = vector.shape_cast %420 : vector<12x8xf32> to vector<1x12x8xf32>
    %430 = tpu.concatenate %426, %427, %428, %429 in 0 : vector<1x12x8xf32>, vector<1x12x8xf32>, vector<1x12x8xf32>, vector<1x12x8xf32> -> vector<4x12x8xf32>
    %431 = vector.extract_strided_slice %425 {offsets = [0, 0, 0], sizes = [4, 1, 8], strides = [1, 1, 1]} : vector<4x12x8xf32> to vector<4x1x8xf32>
    %cst_179 = arith.constant 6.250000e-02 : f32
    %432 = vector.broadcast %cst_179 : f32 to vector<4x1x8xf32>
    %433 = arith.mulf %432, %431 : vector<4x1x8xf32>
    %434 = vector.extract_strided_slice %425 {offsets = [0, 1, 0], sizes = [4, 1, 8], strides = [1, 1, 1]} : vector<4x12x8xf32> to vector<4x1x8xf32>
    %cst_180 = arith.constant 2.500000e-01 : f32
    %435 = vector.broadcast %cst_180 : f32 to vector<4x1x8xf32>
    %436 = arith.mulf %435, %434 : vector<4x1x8xf32>
    %437 = arith.addf %433, %436 : vector<4x1x8xf32>
    %438 = vector.extract_strided_slice %425 {offsets = [0, 2, 0], sizes = [4, 1, 8], strides = [1, 1, 1]} : vector<4x12x8xf32> to vector<4x1x8xf32>
    %cst_181 = arith.constant 3.750000e-01 : f32
    %439 = vector.broadcast %cst_181 : f32 to vector<4x1x8xf32>
    %440 = arith.mulf %439, %438 : vector<4x1x8xf32>
    %441 = arith.addf %437, %440 : vector<4x1x8xf32>
    %442 = vector.extract_strided_slice %425 {offsets = [0, 3, 0], sizes = [4, 1, 8], strides = [1, 1, 1]} : vector<4x12x8xf32> to vector<4x1x8xf32>
    %cst_182 = arith.constant 2.500000e-01 : f32
    %443 = vector.broadcast %cst_182 : f32 to vector<4x1x8xf32>
    %444 = arith.mulf %443, %442 : vector<4x1x8xf32>
    %445 = arith.addf %441, %444 : vector<4x1x8xf32>
    %446 = vector.extract_strided_slice %425 {offsets = [0, 4, 0], sizes = [4, 1, 8], strides = [1, 1, 1]} : vector<4x12x8xf32> to vector<4x1x8xf32>
    %cst_183 = arith.constant 6.250000e-02 : f32
    %447 = vector.broadcast %cst_183 : f32 to vector<4x1x8xf32>
    %448 = arith.mulf %447, %446 : vector<4x1x8xf32>
    %449 = arith.addf %445, %448 : vector<4x1x8xf32>
    %c0_184 = arith.constant 0 : index
    %c0_185 = arith.constant 0 : index
    %c0_186 = arith.constant 0 : index
    %450 = vector.load %arg2[%c0_184, %c0_185, %c0_186] : memref<4x4x8xf32, #tpu.memory_space<vmem>>, vector<4x1x8xf32>
    tpu.vector_store %arg2[%c0_184, %c0_185, %c0_186], %449 {strides = array<i32>} : memref<4x4x8xf32, #tpu.memory_space<vmem>>, vector<4x1x8xf32>,
    %451 = vector.extract_strided_slice %425 {offsets = [0, 2, 0], sizes = [4, 1, 8], strides = [1, 1, 1]} : vector<4x12x8xf32> to vector<4x1x8xf32>
    %cst_187 = arith.constant 6.250000e-02 : f32
    %452 = vector.broadcast %cst_187 : f32 to vector<4x1x8xf32>
    %453 = arith.mulf %452, %451 : vector<4x1x8xf32>
    %454 = vector.extract_strided_slice %425 {offsets = [0, 3, 0], sizes = [4, 1, 8], strides = [1, 1, 1]} : vector<4x12x8xf32> to vector<4x1x8xf32>
    %cst_188 = arith.constant 2.500000e-01 : f32
    %455 = vector.broadcast %cst_188 : f32 to vector<4x1x8xf32>
    %456 = arith.mulf %455, %454 : vector<4x1x8xf32>
    %457 = arith.addf %453, %456 : vector<4x1x8xf32>
    %458 = vector.extract_strided_slice %425 {offsets = [0, 4, 0], sizes = [4, 1, 8], strides = [1, 1, 1]} : vector<4x12x8xf32> to vector<4x1x8xf32>
    %cst_189 = arith.constant 3.750000e-01 : f32
    %459 = vector.broadcast %cst_189 : f32 to vector<4x1x8xf32>
    %460 = arith.mulf %459, %458 : vector<4x1x8xf32>
    %461 = arith.addf %457, %460 : vector<4x1x8xf32>
    %462 = vector.extract_strided_slice %425 {offsets = [0, 5, 0], sizes = [4, 1, 8], strides = [1, 1, 1]} : vector<4x12x8xf32> to vector<4x1x8xf32>
    %cst_190 = arith.constant 2.500000e-01 : f32
    %463 = vector.broadcast %cst_190 : f32 to vector<4x1x8xf32>
    %464 = arith.mulf %463, %462 : vector<4x1x8xf32>
    %465 = arith.addf %461, %464 : vector<4x1x8xf32>
    %466 = vector.extract_strided_slice %425 {offsets = [0, 6, 0], sizes = [4, 1, 8], strides = [1, 1, 1]} : vector<4x12x8xf32> to vector<4x1x8xf32>
    %cst_191 = arith.constant 6.250000e-02 : f32
    %467 = vector.broadcast %cst_191 : f32 to vector<4x1x8xf32>
    %468 = arith.mulf %467, %466 : vector<4x1x8xf32>
    %469 = arith.addf %465, %468 : vector<4x1x8xf32>
    %c0_192 = arith.constant 0 : index
    %c1_193 = arith.constant 1 : index
    %c0_194 = arith.constant 0 : index
    %470 = vector.load %arg2[%c0_192, %c1_193, %c0_194] : memref<4x4x8xf32, #tpu.memory_space<vmem>>, vector<4x1x8xf32>
    tpu.vector_store %arg2[%c0_192, %c1_193, %c0_194], %469 {strides = array<i32>} : memref<4x4x8xf32, #tpu.memory_space<vmem>>, vector<4x1x8xf32>,
    %471 = vector.extract_strided_slice %425 {offsets = [0, 4, 0], sizes = [4, 1, 8], strides = [1, 1, 1]} : vector<4x12x8xf32> to vector<4x1x8xf32>
    %cst_195 = arith.constant 6.250000e-02 : f32
    %472 = vector.broadcast %cst_195 : f32 to vector<4x1x8xf32>
    %473 = arith.mulf %472, %471 : vector<4x1x8xf32>
    %474 = vector.extract_strided_slice %425 {offsets = [0, 5, 0], sizes = [4, 1, 8], strides = [1, 1, 1]} : vector<4x12x8xf32> to vector<4x1x8xf32>
    %cst_196 = arith.constant 2.500000e-01 : f32
    %475 = vector.broadcast %cst_196 : f32 to vector<4x1x8xf32>
    %476 = arith.mulf %475, %474 : vector<4x1x8xf32>
    %477 = arith.addf %473, %476 : vector<4x1x8xf32>
    %478 = vector.extract_strided_slice %425 {offsets = [0, 6, 0], sizes = [4, 1, 8], strides = [1, 1, 1]} : vector<4x12x8xf32> to vector<4x1x8xf32>
    %cst_197 = arith.constant 3.750000e-01 : f32
    %479 = vector.broadcast %cst_197 : f32 to vector<4x1x8xf32>
    %480 = arith.mulf %479, %478 : vector<4x1x8xf32>
    %481 = arith.addf %477, %480 : vector<4x1x8xf32>
    %482 = vector.extract_strided_slice %425 {offsets = [0, 7, 0], sizes = [4, 1, 8], strides = [1, 1, 1]} : vector<4x12x8xf32> to vector<4x1x8xf32>
    %cst_198 = arith.constant 2.500000e-01 : f32
    %483 = vector.broadcast %cst_198 : f32 to vector<4x1x8xf32>
    %484 = arith.mulf %483, %482 : vector<4x1x8xf32>
    %485 = arith.addf %481, %484 : vector<4x1x8xf32>
    %486 = vector.extract_strided_slice %425 {offsets = [0, 8, 0], sizes = [4, 1, 8], strides = [1, 1, 1]} : vector<4x12x8xf32> to vector<4x1x8xf32>
    %cst_199 = arith.constant 6.250000e-02 : f32
    %487 = vector.broadcast %cst_199 : f32 to vector<4x1x8xf32>
    %488 = arith.mulf %487, %486 : vector<4x1x8xf32>
    %489 = arith.addf %485, %488 : vector<4x1x8xf32>
    %c0_200 = arith.constant 0 : index
    %c2_201 = arith.constant 2 : index
    %c0_202 = arith.constant 0 : index
    %490 = vector.load %arg2[%c0_200, %c2_201, %c0_202] : memref<4x4x8xf32, #tpu.memory_space<vmem>>, vector<4x1x8xf32>
    tpu.vector_store %arg2[%c0_200, %c2_201, %c0_202], %489 {strides = array<i32>} : memref<4x4x8xf32, #tpu.memory_space<vmem>>, vector<4x1x8xf32>,
    %491 = vector.extract_strided_slice %425 {offsets = [0, 6, 0], sizes = [4, 1, 8], strides = [1, 1, 1]} : vector<4x12x8xf32> to vector<4x1x8xf32>
    %cst_203 = arith.constant 6.250000e-02 : f32
    %492 = vector.broadcast %cst_203 : f32 to vector<4x1x8xf32>
    %493 = arith.mulf %492, %491 : vector<4x1x8xf32>
    %494 = vector.extract_strided_slice %425 {offsets = [0, 7, 0], sizes = [4, 1, 8], strides = [1, 1, 1]} : vector<4x12x8xf32> to vector<4x1x8xf32>
    %cst_204 = arith.constant 2.500000e-01 : f32
    %495 = vector.broadcast %cst_204 : f32 to vector<4x1x8xf32>
    %496 = arith.mulf %495, %494 : vector<4x1x8xf32>
    %497 = arith.addf %493, %496 : vector<4x1x8xf32>
    %498 = vector.extract_strided_slice %425 {offsets = [0, 8, 0], sizes = [4, 1, 8], strides = [1, 1, 1]} : vector<4x12x8xf32> to vector<4x1x8xf32>
    %cst_205 = arith.constant 3.750000e-01 : f32
    %499 = vector.broadcast %cst_205 : f32 to vector<4x1x8xf32>
    %500 = arith.mulf %499, %498 : vector<4x1x8xf32>
    %501 = arith.addf %497, %500 : vector<4x1x8xf32>
    %502 = vector.extract_strided_slice %425 {offsets = [0, 9, 0], sizes = [4, 1, 8], strides = [1, 1, 1]} : vector<4x12x8xf32> to vector<4x1x8xf32>
    %cst_206 = arith.constant 2.500000e-01 : f32
    %503 = vector.broadcast %cst_206 : f32 to vector<4x1x8xf32>
    %504 = arith.mulf %503, %502 : vector<4x1x8xf32>
    %505 = arith.addf %501, %504 : vector<4x1x8xf32>
    %506 = vector.extract_strided_slice %425 {offsets = [0, 10, 0], sizes = [4, 1, 8], strides = [1, 1, 1]} : vector<4x12x8xf32> to vector<4x1x8xf32>
    %cst_207 = arith.constant 6.250000e-02 : f32
    %507 = vector.broadcast %cst_207 : f32 to vector<4x1x8xf32>
    %508 = arith.mulf %507, %506 : vector<4x1x8xf32>
    %509 = arith.addf %505, %508 : vector<4x1x8xf32>
    %c0_208 = arith.constant 0 : index
    %c3_209 = arith.constant 3 : index
    %c0_210 = arith.constant 0 : index
    %510 = vector.load %arg2[%c0_208, %c3_209, %c0_210] : memref<4x4x8xf32, #tpu.memory_space<vmem>>, vector<4x1x8xf32>
    tpu.vector_store %arg2[%c0_208, %c3_209, %c0_210], %509 {strides = array<i32>} : memref<4x4x8xf32, #tpu.memory_space<vmem>>, vector<4x1x8xf32>,
    %511 = vector.extract_strided_slice %425 {offsets = [0, 0, 0], sizes = [4, 1, 8], strides = [1, 1, 1]} : vector<4x12x8xf32> to vector<4x1x8xf32>
    %cst_211 = arith.constant 6.250000e-02 : f32
    %512 = vector.broadcast %cst_211 : f32 to vector<4x1x8xf32>
    %513 = arith.mulf %512, %511 : vector<4x1x8xf32>
    %514 = vector.extract_strided_slice %425 {offsets = [0, 1, 0], sizes = [4, 1, 8], strides = [1, 1, 1]} : vector<4x12x8xf32> to vector<4x1x8xf32>
    %cst_212 = arith.constant -2.500000e-01 : f32
    %515 = vector.broadcast %cst_212 : f32 to vector<4x1x8xf32>
    %516 = arith.mulf %515, %514 : vector<4x1x8xf32>
    %517 = arith.addf %513, %516 : vector<4x1x8xf32>
    %518 = vector.extract_strided_slice %425 {offsets = [0, 2, 0], sizes = [4, 1, 8], strides = [1, 1, 1]} : vector<4x12x8xf32> to vector<4x1x8xf32>
    %cst_213 = arith.constant 3.750000e-01 : f32
    %519 = vector.broadcast %cst_213 : f32 to vector<4x1x8xf32>
    %520 = arith.mulf %519, %518 : vector<4x1x8xf32>
    %521 = arith.addf %517, %520 : vector<4x1x8xf32>
    %522 = vector.extract_strided_slice %425 {offsets = [0, 3, 0], sizes = [4, 1, 8], strides = [1, 1, 1]} : vector<4x12x8xf32> to vector<4x1x8xf32>
    %cst_214 = arith.constant -2.500000e-01 : f32
    %523 = vector.broadcast %cst_214 : f32 to vector<4x1x8xf32>
    %524 = arith.mulf %523, %522 : vector<4x1x8xf32>
    %525 = arith.addf %521, %524 : vector<4x1x8xf32>
    %526 = vector.extract_strided_slice %425 {offsets = [0, 4, 0], sizes = [4, 1, 8], strides = [1, 1, 1]} : vector<4x12x8xf32> to vector<4x1x8xf32>
    %cst_215 = arith.constant 6.250000e-02 : f32
    %527 = vector.broadcast %cst_215 : f32 to vector<4x1x8xf32>
    %528 = arith.mulf %527, %526 : vector<4x1x8xf32>
    %529 = arith.addf %525, %528 : vector<4x1x8xf32>
    %c0_216 = arith.constant 0 : index
    %c0_217 = arith.constant 0 : index
    %c0_218 = arith.constant 0 : index
    %c0_219 = arith.constant 0 : index
    %530 = vector.load %arg3[%c0_216, %c0_217, %c0_218, %c0_219] : memref<3x4x4x8xf32, #tpu.memory_space<vmem>>, vector<1x4x1x8xf32>
    %531 = vector.shape_cast %530 : vector<1x4x1x8xf32> to vector<4x1x8xf32>
    %532 = vector.shape_cast %529 : vector<4x1x8xf32> to vector<1x4x1x8xf32>
    tpu.vector_store %arg3[%c0_216, %c0_217, %c0_218, %c0_219], %532 {strides = array<i32>} : memref<3x4x4x8xf32, #tpu.memory_space<vmem>>, vector<1x4x1x8xf32>,
    %533 = vector.extract_strided_slice %425 {offsets = [0, 2, 0], sizes = [4, 1, 8], strides = [1, 1, 1]} : vector<4x12x8xf32> to vector<4x1x8xf32>
    %cst_220 = arith.constant 6.250000e-02 : f32
    %534 = vector.broadcast %cst_220 : f32 to vector<4x1x8xf32>
    %535 = arith.mulf %534, %533 : vector<4x1x8xf32>
    %536 = vector.extract_strided_slice %425 {offsets = [0, 3, 0], sizes = [4, 1, 8], strides = [1, 1, 1]} : vector<4x12x8xf32> to vector<4x1x8xf32>
    %cst_221 = arith.constant -2.500000e-01 : f32
    %537 = vector.broadcast %cst_221 : f32 to vector<4x1x8xf32>
    %538 = arith.mulf %537, %536 : vector<4x1x8xf32>
    %539 = arith.addf %535, %538 : vector<4x1x8xf32>
    %540 = vector.extract_strided_slice %425 {offsets = [0, 4, 0], sizes = [4, 1, 8], strides = [1, 1, 1]} : vector<4x12x8xf32> to vector<4x1x8xf32>
    %cst_222 = arith.constant 3.750000e-01 : f32
    %541 = vector.broadcast %cst_222 : f32 to vector<4x1x8xf32>
    %542 = arith.mulf %541, %540 : vector<4x1x8xf32>
    %543 = arith.addf %539, %542 : vector<4x1x8xf32>
    %544 = vector.extract_strided_slice %425 {offsets = [0, 5, 0], sizes = [4, 1, 8], strides = [1, 1, 1]} : vector<4x12x8xf32> to vector<4x1x8xf32>
    %cst_223 = arith.constant -2.500000e-01 : f32
    %545 = vector.broadcast %cst_223 : f32 to vector<4x1x8xf32>
    %546 = arith.mulf %545, %544 : vector<4x1x8xf32>
    %547 = arith.addf %543, %546 : vector<4x1x8xf32>
    %548 = vector.extract_strided_slice %425 {offsets = [0, 6, 0], sizes = [4, 1, 8], strides = [1, 1, 1]} : vector<4x12x8xf32> to vector<4x1x8xf32>
    %cst_224 = arith.constant 6.250000e-02 : f32
    %549 = vector.broadcast %cst_224 : f32 to vector<4x1x8xf32>
    %550 = arith.mulf %549, %548 : vector<4x1x8xf32>
    %551 = arith.addf %547, %550 : vector<4x1x8xf32>
    %c0_225 = arith.constant 0 : index
    %c0_226 = arith.constant 0 : index
    %c1_227 = arith.constant 1 : index
    %c0_228 = arith.constant 0 : index
    %552 = vector.load %arg3[%c0_225, %c0_226, %c1_227, %c0_228] : memref<3x4x4x8xf32, #tpu.memory_space<vmem>>, vector<1x4x1x8xf32>
    %553 = vector.shape_cast %552 : vector<1x4x1x8xf32> to vector<4x1x8xf32>
    %554 = vector.shape_cast %551 : vector<4x1x8xf32> to vector<1x4x1x8xf32>
    tpu.vector_store %arg3[%c0_225, %c0_226, %c1_227, %c0_228], %554 {strides = array<i32>} : memref<3x4x4x8xf32, #tpu.memory_space<vmem>>, vector<1x4x1x8xf32>,
    %555 = vector.extract_strided_slice %425 {offsets = [0, 4, 0], sizes = [4, 1, 8], strides = [1, 1, 1]} : vector<4x12x8xf32> to vector<4x1x8xf32>
    %cst_229 = arith.constant 6.250000e-02 : f32
    %556 = vector.broadcast %cst_229 : f32 to vector<4x1x8xf32>
    %557 = arith.mulf %556, %555 : vector<4x1x8xf32>
    %558 = vector.extract_strided_slice %425 {offsets = [0, 5, 0], sizes = [4, 1, 8], strides = [1, 1, 1]} : vector<4x12x8xf32> to vector<4x1x8xf32>
    %cst_230 = arith.constant -2.500000e-01 : f32
    %559 = vector.broadcast %cst_230 : f32 to vector<4x1x8xf32>
    %560 = arith.mulf %559, %558 : vector<4x1x8xf32>
    %561 = arith.addf %557, %560 : vector<4x1x8xf32>
    %562 = vector.extract_strided_slice %425 {offsets = [0, 6, 0], sizes = [4, 1, 8], strides = [1, 1, 1]} : vector<4x12x8xf32> to vector<4x1x8xf32>
    %cst_231 = arith.constant 3.750000e-01 : f32
    %563 = vector.broadcast %cst_231 : f32 to vector<4x1x8xf32>
    %564 = arith.mulf %563, %562 : vector<4x1x8xf32>
    %565 = arith.addf %561, %564 : vector<4x1x8xf32>
    %566 = vector.extract_strided_slice %425 {offsets = [0, 7, 0], sizes = [4, 1, 8], strides = [1, 1, 1]} : vector<4x12x8xf32> to vector<4x1x8xf32>
    %cst_232 = arith.constant -2.500000e-01 : f32
    %567 = vector.broadcast %cst_232 : f32 to vector<4x1x8xf32>
    %568 = arith.mulf %567, %566 : vector<4x1x8xf32>
    %569 = arith.addf %565, %568 : vector<4x1x8xf32>
    %570 = vector.extract_strided_slice %425 {offsets = [0, 8, 0], sizes = [4, 1, 8], strides = [1, 1, 1]} : vector<4x12x8xf32> to vector<4x1x8xf32>
    %cst_233 = arith.constant 6.250000e-02 : f32
    %571 = vector.broadcast %cst_233 : f32 to vector<4x1x8xf32>
    %572 = arith.mulf %571, %570 : vector<4x1x8xf32>
    %573 = arith.addf %569, %572 : vector<4x1x8xf32>
    %c0_234 = arith.constant 0 : index
    %c0_235 = arith.constant 0 : index
    %c2_236 = arith.constant 2 : index
    %c0_237 = arith.constant 0 : index
    %574 = vector.load %arg3[%c0_234, %c0_235, %c2_236, %c0_237] : memref<3x4x4x8xf32, #tpu.memory_space<vmem>>, vector<1x4x1x8xf32>
    %575 = vector.shape_cast %574 : vector<1x4x1x8xf32> to vector<4x1x8xf32>
    %576 = vector.shape_cast %573 : vector<4x1x8xf32> to vector<1x4x1x8xf32>
    tpu.vector_store %arg3[%c0_234, %c0_235, %c2_236, %c0_237], %576 {strides = array<i32>} : memref<3x4x4x8xf32, #tpu.memory_space<vmem>>, vector<1x4x1x8xf32>,
    %577 = vector.extract_strided_slice %425 {offsets = [0, 6, 0], sizes = [4, 1, 8], strides = [1, 1, 1]} : vector<4x12x8xf32> to vector<4x1x8xf32>
    %cst_238 = arith.constant 6.250000e-02 : f32
    %578 = vector.broadcast %cst_238 : f32 to vector<4x1x8xf32>
    %579 = arith.mulf %578, %577 : vector<4x1x8xf32>
    %580 = vector.extract_strided_slice %425 {offsets = [0, 7, 0], sizes = [4, 1, 8], strides = [1, 1, 1]} : vector<4x12x8xf32> to vector<4x1x8xf32>
    %cst_239 = arith.constant -2.500000e-01 : f32
    %581 = vector.broadcast %cst_239 : f32 to vector<4x1x8xf32>
    %582 = arith.mulf %581, %580 : vector<4x1x8xf32>
    %583 = arith.addf %579, %582 : vector<4x1x8xf32>
    %584 = vector.extract_strided_slice %425 {offsets = [0, 8, 0], sizes = [4, 1, 8], strides = [1, 1, 1]} : vector<4x12x8xf32> to vector<4x1x8xf32>
    %cst_240 = arith.constant 3.750000e-01 : f32
    %585 = vector.broadcast %cst_240 : f32 to vector<4x1x8xf32>
    %586 = arith.mulf %585, %584 : vector<4x1x8xf32>
    %587 = arith.addf %583, %586 : vector<4x1x8xf32>
    %588 = vector.extract_strided_slice %425 {offsets = [0, 9, 0], sizes = [4, 1, 8], strides = [1, 1, 1]} : vector<4x12x8xf32> to vector<4x1x8xf32>
    %cst_241 = arith.constant -2.500000e-01 : f32
    %589 = vector.broadcast %cst_241 : f32 to vector<4x1x8xf32>
    %590 = arith.mulf %589, %588 : vector<4x1x8xf32>
    %591 = arith.addf %587, %590 : vector<4x1x8xf32>
    %592 = vector.extract_strided_slice %425 {offsets = [0, 10, 0], sizes = [4, 1, 8], strides = [1, 1, 1]} : vector<4x12x8xf32> to vector<4x1x8xf32>
    %cst_242 = arith.constant 6.250000e-02 : f32
    %593 = vector.broadcast %cst_242 : f32 to vector<4x1x8xf32>
    %594 = arith.mulf %593, %592 : vector<4x1x8xf32>
    %595 = arith.addf %591, %594 : vector<4x1x8xf32>
    %c0_243 = arith.constant 0 : index
    %c0_244 = arith.constant 0 : index
    %c3_245 = arith.constant 3 : index
    %c0_246 = arith.constant 0 : index
    %596 = vector.load %arg3[%c0_243, %c0_244, %c3_245, %c0_246] : memref<3x4x4x8xf32, #tpu.memory_space<vmem>>, vector<1x4x1x8xf32>
    %597 = vector.shape_cast %596 : vector<1x4x1x8xf32> to vector<4x1x8xf32>
    %598 = vector.shape_cast %595 : vector<4x1x8xf32> to vector<1x4x1x8xf32>
    tpu.vector_store %arg3[%c0_243, %c0_244, %c3_245, %c0_246], %598 {strides = array<i32>} : memref<3x4x4x8xf32, #tpu.memory_space<vmem>>, vector<1x4x1x8xf32>,
    %599 = vector.extract_strided_slice %430 {offsets = [0, 0, 0], sizes = [4, 1, 8], strides = [1, 1, 1]} : vector<4x12x8xf32> to vector<4x1x8xf32>
    %cst_247 = arith.constant 6.250000e-02 : f32
    %600 = vector.broadcast %cst_247 : f32 to vector<4x1x8xf32>
    %601 = arith.mulf %600, %599 : vector<4x1x8xf32>
    %602 = vector.extract_strided_slice %430 {offsets = [0, 1, 0], sizes = [4, 1, 8], strides = [1, 1, 1]} : vector<4x12x8xf32> to vector<4x1x8xf32>
    %cst_248 = arith.constant 2.500000e-01 : f32
    %603 = vector.broadcast %cst_248 : f32 to vector<4x1x8xf32>
    %604 = arith.mulf %603, %602 : vector<4x1x8xf32>
    %605 = arith.addf %601, %604 : vector<4x1x8xf32>
    %606 = vector.extract_strided_slice %430 {offsets = [0, 2, 0], sizes = [4, 1, 8], strides = [1, 1, 1]} : vector<4x12x8xf32> to vector<4x1x8xf32>
    %cst_249 = arith.constant 3.750000e-01 : f32
    %607 = vector.broadcast %cst_249 : f32 to vector<4x1x8xf32>
    %608 = arith.mulf %607, %606 : vector<4x1x8xf32>
    %609 = arith.addf %605, %608 : vector<4x1x8xf32>
    %610 = vector.extract_strided_slice %430 {offsets = [0, 3, 0], sizes = [4, 1, 8], strides = [1, 1, 1]} : vector<4x12x8xf32> to vector<4x1x8xf32>
    %cst_250 = arith.constant 2.500000e-01 : f32
    %611 = vector.broadcast %cst_250 : f32 to vector<4x1x8xf32>
    %612 = arith.mulf %611, %610 : vector<4x1x8xf32>
    %613 = arith.addf %609, %612 : vector<4x1x8xf32>
    %614 = vector.extract_strided_slice %430 {offsets = [0, 4, 0], sizes = [4, 1, 8], strides = [1, 1, 1]} : vector<4x12x8xf32> to vector<4x1x8xf32>
    %cst_251 = arith.constant 6.250000e-02 : f32
    %615 = vector.broadcast %cst_251 : f32 to vector<4x1x8xf32>
    %616 = arith.mulf %615, %614 : vector<4x1x8xf32>
    %617 = arith.addf %613, %616 : vector<4x1x8xf32>
    %c1_252 = arith.constant 1 : index
    %c0_253 = arith.constant 0 : index
    %c0_254 = arith.constant 0 : index
    %c0_255 = arith.constant 0 : index
    %618 = vector.load %arg3[%c1_252, %c0_253, %c0_254, %c0_255] : memref<3x4x4x8xf32, #tpu.memory_space<vmem>>, vector<1x4x1x8xf32>
    %619 = vector.shape_cast %618 : vector<1x4x1x8xf32> to vector<4x1x8xf32>
    %620 = vector.shape_cast %617 : vector<4x1x8xf32> to vector<1x4x1x8xf32>
    tpu.vector_store %arg3[%c1_252, %c0_253, %c0_254, %c0_255], %620 {strides = array<i32>} : memref<3x4x4x8xf32, #tpu.memory_space<vmem>>, vector<1x4x1x8xf32>,
    %621 = vector.extract_strided_slice %430 {offsets = [0, 2, 0], sizes = [4, 1, 8], strides = [1, 1, 1]} : vector<4x12x8xf32> to vector<4x1x8xf32>
    %cst_256 = arith.constant 6.250000e-02 : f32
    %622 = vector.broadcast %cst_256 : f32 to vector<4x1x8xf32>
    %623 = arith.mulf %622, %621 : vector<4x1x8xf32>
    %624 = vector.extract_strided_slice %430 {offsets = [0, 3, 0], sizes = [4, 1, 8], strides = [1, 1, 1]} : vector<4x12x8xf32> to vector<4x1x8xf32>
    %cst_257 = arith.constant 2.500000e-01 : f32
    %625 = vector.broadcast %cst_257 : f32 to vector<4x1x8xf32>
    %626 = arith.mulf %625, %624 : vector<4x1x8xf32>
    %627 = arith.addf %623, %626 : vector<4x1x8xf32>
    %628 = vector.extract_strided_slice %430 {offsets = [0, 4, 0], sizes = [4, 1, 8], strides = [1, 1, 1]} : vector<4x12x8xf32> to vector<4x1x8xf32>
    %cst_258 = arith.constant 3.750000e-01 : f32
    %629 = vector.broadcast %cst_258 : f32 to vector<4x1x8xf32>
    %630 = arith.mulf %629, %628 : vector<4x1x8xf32>
    %631 = arith.addf %627, %630 : vector<4x1x8xf32>
    %632 = vector.extract_strided_slice %430 {offsets = [0, 5, 0], sizes = [4, 1, 8], strides = [1, 1, 1]} : vector<4x12x8xf32> to vector<4x1x8xf32>
    %cst_259 = arith.constant 2.500000e-01 : f32
    %633 = vector.broadcast %cst_259 : f32 to vector<4x1x8xf32>
    %634 = arith.mulf %633, %632 : vector<4x1x8xf32>
    %635 = arith.addf %631, %634 : vector<4x1x8xf32>
    %636 = vector.extract_strided_slice %430 {offsets = [0, 6, 0], sizes = [4, 1, 8], strides = [1, 1, 1]} : vector<4x12x8xf32> to vector<4x1x8xf32>
    %cst_260 = arith.constant 6.250000e-02 : f32
    %637 = vector.broadcast %cst_260 : f32 to vector<4x1x8xf32>
    %638 = arith.mulf %637, %636 : vector<4x1x8xf32>
    %639 = arith.addf %635, %638 : vector<4x1x8xf32>
    %c1_261 = arith.constant 1 : index
    %c0_262 = arith.constant 0 : index
    %c1_263 = arith.constant 1 : index
    %c0_264 = arith.constant 0 : index
    %640 = vector.load %arg3[%c1_261, %c0_262, %c1_263, %c0_264] : memref<3x4x4x8xf32, #tpu.memory_space<vmem>>, vector<1x4x1x8xf32>
    %641 = vector.shape_cast %640 : vector<1x4x1x8xf32> to vector<4x1x8xf32>
    %642 = vector.shape_cast %639 : vector<4x1x8xf32> to vector<1x4x1x8xf32>
    tpu.vector_store %arg3[%c1_261, %c0_262, %c1_263, %c0_264], %642 {strides = array<i32>} : memref<3x4x4x8xf32, #tpu.memory_space<vmem>>, vector<1x4x1x8xf32>,
    %643 = vector.extract_strided_slice %430 {offsets = [0, 4, 0], sizes = [4, 1, 8], strides = [1, 1, 1]} : vector<4x12x8xf32> to vector<4x1x8xf32>
    %cst_265 = arith.constant 6.250000e-02 : f32
    %644 = vector.broadcast %cst_265 : f32 to vector<4x1x8xf32>
    %645 = arith.mulf %644, %643 : vector<4x1x8xf32>
    %646 = vector.extract_strided_slice %430 {offsets = [0, 5, 0], sizes = [4, 1, 8], strides = [1, 1, 1]} : vector<4x12x8xf32> to vector<4x1x8xf32>
    %cst_266 = arith.constant 2.500000e-01 : f32
    %647 = vector.broadcast %cst_266 : f32 to vector<4x1x8xf32>
    %648 = arith.mulf %647, %646 : vector<4x1x8xf32>
    %649 = arith.addf %645, %648 : vector<4x1x8xf32>
    %650 = vector.extract_strided_slice %430 {offsets = [0, 6, 0], sizes = [4, 1, 8], strides = [1, 1, 1]} : vector<4x12x8xf32> to vector<4x1x8xf32>
    %cst_267 = arith.constant 3.750000e-01 : f32
    %651 = vector.broadcast %cst_267 : f32 to vector<4x1x8xf32>
    %652 = arith.mulf %651, %650 : vector<4x1x8xf32>
    %653 = arith.addf %649, %652 : vector<4x1x8xf32>
    %654 = vector.extract_strided_slice %430 {offsets = [0, 7, 0], sizes = [4, 1, 8], strides = [1, 1, 1]} : vector<4x12x8xf32> to vector<4x1x8xf32>
    %cst_268 = arith.constant 2.500000e-01 : f32
    %655 = vector.broadcast %cst_268 : f32 to vector<4x1x8xf32>
    %656 = arith.mulf %655, %654 : vector<4x1x8xf32>
    %657 = arith.addf %653, %656 : vector<4x1x8xf32>
    %658 = vector.extract_strided_slice %430 {offsets = [0, 8, 0], sizes = [4, 1, 8], strides = [1, 1, 1]} : vector<4x12x8xf32> to vector<4x1x8xf32>
    %cst_269 = arith.constant 6.250000e-02 : f32
    %659 = vector.broadcast %cst_269 : f32 to vector<4x1x8xf32>
    %660 = arith.mulf %659, %658 : vector<4x1x8xf32>
    %661 = arith.addf %657, %660 : vector<4x1x8xf32>
    %c1_270 = arith.constant 1 : index
    %c0_271 = arith.constant 0 : index
    %c2_272 = arith.constant 2 : index
    %c0_273 = arith.constant 0 : index
    %662 = vector.load %arg3[%c1_270, %c0_271, %c2_272, %c0_273] : memref<3x4x4x8xf32, #tpu.memory_space<vmem>>, vector<1x4x1x8xf32>
    %663 = vector.shape_cast %662 : vector<1x4x1x8xf32> to vector<4x1x8xf32>
    %664 = vector.shape_cast %661 : vector<4x1x8xf32> to vector<1x4x1x8xf32>
    tpu.vector_store %arg3[%c1_270, %c0_271, %c2_272, %c0_273], %664 {strides = array<i32>} : memref<3x4x4x8xf32, #tpu.memory_space<vmem>>, vector<1x4x1x8xf32>,
    %665 = vector.extract_strided_slice %430 {offsets = [0, 6, 0], sizes = [4, 1, 8], strides = [1, 1, 1]} : vector<4x12x8xf32> to vector<4x1x8xf32>
    %cst_274 = arith.constant 6.250000e-02 : f32
    %666 = vector.broadcast %cst_274 : f32 to vector<4x1x8xf32>
    %667 = arith.mulf %666, %665 : vector<4x1x8xf32>
    %668 = vector.extract_strided_slice %430 {offsets = [0, 7, 0], sizes = [4, 1, 8], strides = [1, 1, 1]} : vector<4x12x8xf32> to vector<4x1x8xf32>
    %cst_275 = arith.constant 2.500000e-01 : f32
    %669 = vector.broadcast %cst_275 : f32 to vector<4x1x8xf32>
    %670 = arith.mulf %669, %668 : vector<4x1x8xf32>
    %671 = arith.addf %667, %670 : vector<4x1x8xf32>
    %672 = vector.extract_strided_slice %430 {offsets = [0, 8, 0], sizes = [4, 1, 8], strides = [1, 1, 1]} : vector<4x12x8xf32> to vector<4x1x8xf32>
    %cst_276 = arith.constant 3.750000e-01 : f32
    %673 = vector.broadcast %cst_276 : f32 to vector<4x1x8xf32>
    %674 = arith.mulf %673, %672 : vector<4x1x8xf32>
    %675 = arith.addf %671, %674 : vector<4x1x8xf32>
    %676 = vector.extract_strided_slice %430 {offsets = [0, 9, 0], sizes = [4, 1, 8], strides = [1, 1, 1]} : vector<4x12x8xf32> to vector<4x1x8xf32>
    %cst_277 = arith.constant 2.500000e-01 : f32
    %677 = vector.broadcast %cst_277 : f32 to vector<4x1x8xf32>
    %678 = arith.mulf %677, %676 : vector<4x1x8xf32>
    %679 = arith.addf %675, %678 : vector<4x1x8xf32>
    %680 = vector.extract_strided_slice %430 {offsets = [0, 10, 0], sizes = [4, 1, 8], strides = [1, 1, 1]} : vector<4x12x8xf32> to vector<4x1x8xf32>
    %cst_278 = arith.constant 6.250000e-02 : f32
    %681 = vector.broadcast %cst_278 : f32 to vector<4x1x8xf32>
    %682 = arith.mulf %681, %680 : vector<4x1x8xf32>
    %683 = arith.addf %679, %682 : vector<4x1x8xf32>
    %c1_279 = arith.constant 1 : index
    %c0_280 = arith.constant 0 : index
    %c3_281 = arith.constant 3 : index
    %c0_282 = arith.constant 0 : index
    %684 = vector.load %arg3[%c1_279, %c0_280, %c3_281, %c0_282] : memref<3x4x4x8xf32, #tpu.memory_space<vmem>>, vector<1x4x1x8xf32>
    %685 = vector.shape_cast %684 : vector<1x4x1x8xf32> to vector<4x1x8xf32>
    %686 = vector.shape_cast %683 : vector<4x1x8xf32> to vector<1x4x1x8xf32>
    tpu.vector_store %arg3[%c1_279, %c0_280, %c3_281, %c0_282], %686 {strides = array<i32>} : memref<3x4x4x8xf32, #tpu.memory_space<vmem>>, vector<1x4x1x8xf32>,
    %687 = vector.extract_strided_slice %430 {offsets = [0, 0, 0], sizes = [4, 1, 8], strides = [1, 1, 1]} : vector<4x12x8xf32> to vector<4x1x8xf32>
    %cst_283 = arith.constant 6.250000e-02 : f32
    %688 = vector.broadcast %cst_283 : f32 to vector<4x1x8xf32>
    %689 = arith.mulf %688, %687 : vector<4x1x8xf32>
    %690 = vector.extract_strided_slice %430 {offsets = [0, 1, 0], sizes = [4, 1, 8], strides = [1, 1, 1]} : vector<4x12x8xf32> to vector<4x1x8xf32>
    %cst_284 = arith.constant -2.500000e-01 : f32
    %691 = vector.broadcast %cst_284 : f32 to vector<4x1x8xf32>
    %692 = arith.mulf %691, %690 : vector<4x1x8xf32>
    %693 = arith.addf %689, %692 : vector<4x1x8xf32>
    %694 = vector.extract_strided_slice %430 {offsets = [0, 2, 0], sizes = [4, 1, 8], strides = [1, 1, 1]} : vector<4x12x8xf32> to vector<4x1x8xf32>
    %cst_285 = arith.constant 3.750000e-01 : f32
    %695 = vector.broadcast %cst_285 : f32 to vector<4x1x8xf32>
    %696 = arith.mulf %695, %694 : vector<4x1x8xf32>
    %697 = arith.addf %693, %696 : vector<4x1x8xf32>
    %698 = vector.extract_strided_slice %430 {offsets = [0, 3, 0], sizes = [4, 1, 8], strides = [1, 1, 1]} : vector<4x12x8xf32> to vector<4x1x8xf32>
    %cst_286 = arith.constant -2.500000e-01 : f32
    %699 = vector.broadcast %cst_286 : f32 to vector<4x1x8xf32>
    %700 = arith.mulf %699, %698 : vector<4x1x8xf32>
    %701 = arith.addf %697, %700 : vector<4x1x8xf32>
    %702 = vector.extract_strided_slice %430 {offsets = [0, 4, 0], sizes = [4, 1, 8], strides = [1, 1, 1]} : vector<4x12x8xf32> to vector<4x1x8xf32>
    %cst_287 = arith.constant 6.250000e-02 : f32
    %703 = vector.broadcast %cst_287 : f32 to vector<4x1x8xf32>
    %704 = arith.mulf %703, %702 : vector<4x1x8xf32>
    %705 = arith.addf %701, %704 : vector<4x1x8xf32>
    %c2_288 = arith.constant 2 : index
    %c0_289 = arith.constant 0 : index
    %c0_290 = arith.constant 0 : index
    %c0_291 = arith.constant 0 : index
    %706 = vector.load %arg3[%c2_288, %c0_289, %c0_290, %c0_291] : memref<3x4x4x8xf32, #tpu.memory_space<vmem>>, vector<1x4x1x8xf32>
    %707 = vector.shape_cast %706 : vector<1x4x1x8xf32> to vector<4x1x8xf32>
    %708 = vector.shape_cast %705 : vector<4x1x8xf32> to vector<1x4x1x8xf32>
    tpu.vector_store %arg3[%c2_288, %c0_289, %c0_290, %c0_291], %708 {strides = array<i32>} : memref<3x4x4x8xf32, #tpu.memory_space<vmem>>, vector<1x4x1x8xf32>,
    %709 = vector.extract_strided_slice %430 {offsets = [0, 2, 0], sizes = [4, 1, 8], strides = [1, 1, 1]} : vector<4x12x8xf32> to vector<4x1x8xf32>
    %cst_292 = arith.constant 6.250000e-02 : f32
    %710 = vector.broadcast %cst_292 : f32 to vector<4x1x8xf32>
    %711 = arith.mulf %710, %709 : vector<4x1x8xf32>
    %712 = vector.extract_strided_slice %430 {offsets = [0, 3, 0], sizes = [4, 1, 8], strides = [1, 1, 1]} : vector<4x12x8xf32> to vector<4x1x8xf32>
    %cst_293 = arith.constant -2.500000e-01 : f32
    %713 = vector.broadcast %cst_293 : f32 to vector<4x1x8xf32>
    %714 = arith.mulf %713, %712 : vector<4x1x8xf32>
    %715 = arith.addf %711, %714 : vector<4x1x8xf32>
    %716 = vector.extract_strided_slice %430 {offsets = [0, 4, 0], sizes = [4, 1, 8], strides = [1, 1, 1]} : vector<4x12x8xf32> to vector<4x1x8xf32>
    %cst_294 = arith.constant 3.750000e-01 : f32
    %717 = vector.broadcast %cst_294 : f32 to vector<4x1x8xf32>
    %718 = arith.mulf %717, %716 : vector<4x1x8xf32>
    %719 = arith.addf %715, %718 : vector<4x1x8xf32>
    %720 = vector.extract_strided_slice %430 {offsets = [0, 5, 0], sizes = [4, 1, 8], strides = [1, 1, 1]} : vector<4x12x8xf32> to vector<4x1x8xf32>
    %cst_295 = arith.constant -2.500000e-01 : f32
    %721 = vector.broadcast %cst_295 : f32 to vector<4x1x8xf32>
    %722 = arith.mulf %721, %720 : vector<4x1x8xf32>
    %723 = arith.addf %719, %722 : vector<4x1x8xf32>
    %724 = vector.extract_strided_slice %430 {offsets = [0, 6, 0], sizes = [4, 1, 8], strides = [1, 1, 1]} : vector<4x12x8xf32> to vector<4x1x8xf32>
    %cst_296 = arith.constant 6.250000e-02 : f32
    %725 = vector.broadcast %cst_296 : f32 to vector<4x1x8xf32>
    %726 = arith.mulf %725, %724 : vector<4x1x8xf32>
    %727 = arith.addf %723, %726 : vector<4x1x8xf32>
    %c2_297 = arith.constant 2 : index
    %c0_298 = arith.constant 0 : index
    %c1_299 = arith.constant 1 : index
    %c0_300 = arith.constant 0 : index
    %728 = vector.load %arg3[%c2_297, %c0_298, %c1_299, %c0_300] : memref<3x4x4x8xf32, #tpu.memory_space<vmem>>, vector<1x4x1x8xf32>
    %729 = vector.shape_cast %728 : vector<1x4x1x8xf32> to vector<4x1x8xf32>
    %730 = vector.shape_cast %727 : vector<4x1x8xf32> to vector<1x4x1x8xf32>
    tpu.vector_store %arg3[%c2_297, %c0_298, %c1_299, %c0_300], %730 {strides = array<i32>} : memref<3x4x4x8xf32, #tpu.memory_space<vmem>>, vector<1x4x1x8xf32>,
    %731 = vector.extract_strided_slice %430 {offsets = [0, 4, 0], sizes = [4, 1, 8], strides = [1, 1, 1]} : vector<4x12x8xf32> to vector<4x1x8xf32>
    %cst_301 = arith.constant 6.250000e-02 : f32
    %732 = vector.broadcast %cst_301 : f32 to vector<4x1x8xf32>
    %733 = arith.mulf %732, %731 : vector<4x1x8xf32>
    %734 = vector.extract_strided_slice %430 {offsets = [0, 5, 0], sizes = [4, 1, 8], strides = [1, 1, 1]} : vector<4x12x8xf32> to vector<4x1x8xf32>
    %cst_302 = arith.constant -2.500000e-01 : f32
    %735 = vector.broadcast %cst_302 : f32 to vector<4x1x8xf32>
    %736 = arith.mulf %735, %734 : vector<4x1x8xf32>
    %737 = arith.addf %733, %736 : vector<4x1x8xf32>
    %738 = vector.extract_strided_slice %430 {offsets = [0, 6, 0], sizes = [4, 1, 8], strides = [1, 1, 1]} : vector<4x12x8xf32> to vector<4x1x8xf32>
    %cst_303 = arith.constant 3.750000e-01 : f32
    %739 = vector.broadcast %cst_303 : f32 to vector<4x1x8xf32>
    %740 = arith.mulf %739, %738 : vector<4x1x8xf32>
    %741 = arith.addf %737, %740 : vector<4x1x8xf32>
    %742 = vector.extract_strided_slice %430 {offsets = [0, 7, 0], sizes = [4, 1, 8], strides = [1, 1, 1]} : vector<4x12x8xf32> to vector<4x1x8xf32>
    %cst_304 = arith.constant -2.500000e-01 : f32
    %743 = vector.broadcast %cst_304 : f32 to vector<4x1x8xf32>
    %744 = arith.mulf %743, %742 : vector<4x1x8xf32>
    %745 = arith.addf %741, %744 : vector<4x1x8xf32>
    %746 = vector.extract_strided_slice %430 {offsets = [0, 8, 0], sizes = [4, 1, 8], strides = [1, 1, 1]} : vector<4x12x8xf32> to vector<4x1x8xf32>
    %cst_305 = arith.constant 6.250000e-02 : f32
    %747 = vector.broadcast %cst_305 : f32 to vector<4x1x8xf32>
    %748 = arith.mulf %747, %746 : vector<4x1x8xf32>
    %749 = arith.addf %745, %748 : vector<4x1x8xf32>
    %c2_306 = arith.constant 2 : index
    %c0_307 = arith.constant 0 : index
    %c2_308 = arith.constant 2 : index
    %c0_309 = arith.constant 0 : index
    %750 = vector.load %arg3[%c2_306, %c0_307, %c2_308, %c0_309] : memref<3x4x4x8xf32, #tpu.memory_space<vmem>>, vector<1x4x1x8xf32>
    %751 = vector.shape_cast %750 : vector<1x4x1x8xf32> to vector<4x1x8xf32>
    %752 = vector.shape_cast %749 : vector<4x1x8xf32> to vector<1x4x1x8xf32>
    tpu.vector_store %arg3[%c2_306, %c0_307, %c2_308, %c0_309], %752 {strides = array<i32>} : memref<3x4x4x8xf32, #tpu.memory_space<vmem>>, vector<1x4x1x8xf32>,
    %753 = vector.extract_strided_slice %430 {offsets = [0, 6, 0], sizes = [4, 1, 8], strides = [1, 1, 1]} : vector<4x12x8xf32> to vector<4x1x8xf32>
    %cst_310 = arith.constant 6.250000e-02 : f32
    %754 = vector.broadcast %cst_310 : f32 to vector<4x1x8xf32>
    %755 = arith.mulf %754, %753 : vector<4x1x8xf32>
    %756 = vector.extract_strided_slice %430 {offsets = [0, 7, 0], sizes = [4, 1, 8], strides = [1, 1, 1]} : vector<4x12x8xf32> to vector<4x1x8xf32>
    %cst_311 = arith.constant -2.500000e-01 : f32
    %757 = vector.broadcast %cst_311 : f32 to vector<4x1x8xf32>
    %758 = arith.mulf %757, %756 : vector<4x1x8xf32>
    %759 = arith.addf %755, %758 : vector<4x1x8xf32>
    %760 = vector.extract_strided_slice %430 {offsets = [0, 8, 0], sizes = [4, 1, 8], strides = [1, 1, 1]} : vector<4x12x8xf32> to vector<4x1x8xf32>
    %cst_312 = arith.constant 3.750000e-01 : f32
    %761 = vector.broadcast %cst_312 : f32 to vector<4x1x8xf32>
    %762 = arith.mulf %761, %760 : vector<4x1x8xf32>
    %763 = arith.addf %759, %762 : vector<4x1x8xf32>
    %764 = vector.extract_strided_slice %430 {offsets = [0, 9, 0], sizes = [4, 1, 8], strides = [1, 1, 1]} : vector<4x12x8xf32> to vector<4x1x8xf32>
    %cst_313 = arith.constant -2.500000e-01 : f32
    %765 = vector.broadcast %cst_313 : f32 to vector<4x1x8xf32>
    %766 = arith.mulf %765, %764 : vector<4x1x8xf32>
    %767 = arith.addf %763, %766 : vector<4x1x8xf32>
    %768 = vector.extract_strided_slice %430 {offsets = [0, 10, 0], sizes = [4, 1, 8], strides = [1, 1, 1]} : vector<4x12x8xf32> to vector<4x1x8xf32>
    %cst_314 = arith.constant 6.250000e-02 : f32
    %769 = vector.broadcast %cst_314 : f32 to vector<4x1x8xf32>
    %770 = arith.mulf %769, %768 : vector<4x1x8xf32>
    %771 = arith.addf %767, %770 : vector<4x1x8xf32>
    %c2_315 = arith.constant 2 : index
    %c0_316 = arith.constant 0 : index
    %c3_317 = arith.constant 3 : index
    %c0_318 = arith.constant 0 : index
    %772 = vector.load %arg3[%c2_315, %c0_316, %c3_317, %c0_318] : memref<3x4x4x8xf32, #tpu.memory_space<vmem>>, vector<1x4x1x8xf32>
    %773 = vector.shape_cast %772 : vector<1x4x1x8xf32> to vector<4x1x8xf32>
    %774 = vector.shape_cast %771 : vector<4x1x8xf32> to vector<1x4x1x8xf32>
    tpu.vector_store %arg3[%c2_315, %c0_316, %c3_317, %c0_318], %774 {strides = array<i32>} : memref<3x4x4x8xf32, #tpu.memory_space<vmem>>, vector<1x4x1x8xf32>,
    return
  }
  func.func @transform_0(%arg0: i32) -> (i32, i32, i32, i32) {
    %c0_i32 = arith.constant 0 : i32
    %c0_i32_0 = arith.constant 0 : i32
    %c0_i32_1 = arith.constant 0 : i32
    %c0_i32_2 = arith.constant 0 : i32
    return %c0_i32, %c0_i32_0, %c0_i32_1, %arg0 : i32, i32, i32, i32
  }
  func.func @transform_1(%arg0: i32) -> (i32, i32, i32) {
    %c0_i32 = arith.constant 0 : i32
    %c0_i32_0 = arith.constant 0 : i32
    %c0_i32_1 = arith.constant 0 : i32
    return %c0_i32, %c0_i32_0, %arg0 : i32, i32, i32
  }
  func.func @transform_2(%arg0: i32) -> (i32, i32, i32, i32) {
    %c0_i32 = arith.constant 0 : i32
    %c0_i32_0 = arith.constant 0 : i32
    %c0_i32_1 = arith.constant 0 : i32
    %c0_i32_2 = arith.constant 0 : i32
    return %c0_i32, %c0_i32_0, %c0_i32_1, %arg0 : i32, i32, i32, i32
  }
  func.func @transform_3(%arg0: i32) -> (i32, i32, i32, i32) {
    %c0_i32 = arith.constant 0 : i32
    %c0_i32_0 = arith.constant 0 : i32
    %c0_i32_1 = arith.constant 0 : i32
    %c0_i32_2 = arith.constant 0 : i32
    return %c0_i32, %c0_i32_0, %c0_i32_1, %arg0 : i32, i32, i32, i32
  }
}

</mosaic_0001>

<bundles_post_ra>
// kernel: sspcab_forward.1
= control target key start
LH: loop header
LB: loop body
LE: loop exit
PB: predicated region body
PF: predicated region fallthrough
CT: control target
= control target key end

     0   :  { %vm552_vm0 = vcmask 64512   ;;  %vm554_vm1 = vcmask 60416   ;;  %v3306_v0 = vmov 0.0   ;;  %vm888_vm2 = vcmask 58368   ;;  %s6266_s0 = inlined_call_operand.vmem [shape: f32[4,10,10,8], index: 0, kind: input, shape index: {}]   ;;  %s6267_s1 = inlined_call_operand.vmem [shape: f32[4,4,8], index: 1, kind: output, shape index: {0}]   ;;  %s6268_s2 = inlined_call_operand.vmem [shape: f32[3,4,4,8], index: 2, kind: output, shape index: {1}]   ;;  %s6269_s3 = inlined_call_operand.vmem [shape: f32[4,8,8,8], index: 3, kind: output, shape index: {2}]  }
   0x1   :  { %553 = vst.msk [vmem:[#allocation2] sm:$0xff] %vm552_vm0, %v3306_v0  ;;  %556 = vst.msk [vmem:[#allocation2 + $0x10] sm:$0xff] %vm552_vm0, %v3306_v0  ;;  %v11_v1 = vld [vmem:[%s6266_s0] sm:$0xff]  ;;  %v12_v2 = vld [vmem:[%s6266_s0 + $0x8] sm:$0x3]  ;;  %vm366_vm3 = vcmask 1046528  }
   0x2   :  { %558 = vst.msk [vmem:[#allocation2 + $0x20] sm:$0xff] %vm552_vm0, %v3306_v0  ;;  %560 = vst.msk [vmem:[#allocation2 + $0x30] sm:$0xff] %vm552_vm0, %v3306_v0  ;;  %v3432_v3 = vld [vmem:[%s6266_s0 + $0x10] sm:$0xff]  ;;  %v3437_v4 = vld [vmem:[%s6266_s0 + $0x18] sm:$0x3]  ;;  %v90_v8 = vmul.f32 0.0625, %v11_v1 }
   0x3   :  { %562 = vst.msk [vmem:[#allocation2 + $0x40] sm:$0xff] %vm552_vm0, %v3306_v0  ;;  %564 = vst.msk [vmem:[#allocation2 + $0x50] sm:$0xff] %vm552_vm0, %v3306_v0  ;;  %v3442_v5 = vld [vmem:[%s6266_s0 + $0x20] sm:$0xff]  ;;  %v16_v6 = vld [vmem:[%s6266_s0 + $0x28] sm:$0x3]  ;;  %v91_v9 = vmul.f32 0.0625, %v12_v2 }
   0x4   :  { %566 = vst.msk [vmem:[#allocation2 + $0x60] sm:$0xff] %vm552_vm0, %v3306_v0  ;;  %568 = vst.msk [vmem:[#allocation2 + $0x70] sm:$0xff] %vm552_vm0, %v3306_v0  ;;  %v3122_v7 = vld [vmem:[%s6266_s0 + $0xa0] sm:$0xff]  ;;  %v3123_v10 = vld [vmem:[%s6266_s0 + $0xa8] sm:$0x3]  ;;  %v3516_v13 = vmul.f32 0.0625, %v3442_v5 }
   0x5   :  { %570 = vst.msk [vmem:[#allocation2 + $0x80] sm:$0xff] %vm552_vm0, %v3306_v0  ;;  %572 = vst.msk [vmem:[#allocation2 + $0x90] sm:$0xff] %vm552_vm0, %v3306_v0  ;;  %v3508_v11 = vld [vmem:[%s6266_s0 + $0xb0] sm:$0xff]  ;;  %v3513_v12 = vld [vmem:[%s6266_s0 + $0xc0] sm:$0xff]  ;;  %v106_v18 = vmul.f32 0.375, %v3432_v3  ;;  %v107_v19 = vmul.f32 0.375, %v3437_v4 }
   0x6   :  { %574 = vst.msk [vmem:[#allocation2 + $0xa0] sm:$0xff] %vm552_vm0, %v3306_v0  ;;  %1034 = vst.msk [vmem:[#allocation3 + $0xb0] sm:$0xff] %vm552_vm0, %v3306_v0  ;;  %v3521_v14 = vld [vmem:[%s6266_s0 + $0xb8] sm:$0x3]  ;;  %v3142_v15 = vld [vmem:[%s6266_s0 + $0x140] sm:$0xff]  ;;  %v3544_v22 = vmul.f32 0.0625, %v16_v6 }
   0x7   :  { %1036 = vst.msk [vmem:[#allocation3 + $0xc0] sm:$0xff] %vm552_vm0, %v3306_v0  ;;  %1038 = vst.msk [vmem:[#allocation3 + $0xd0] sm:$0xff] %vm552_vm0, %v3306_v0  ;;  %v3143_v16 = vld [vmem:[%s6266_s0 + $0x148] sm:$0x3]  ;;  %v3144_v17 = vld [vmem:[%s6266_s0 + $0x150] sm:$0xff]  ;;  %v158_v23 = vmul.f32 0.25, %v3142_v15  ;;  %v122_v27 = vadd.f32 %v106_v18, %v90_v8  ;;  %v123_v28 = vadd.f32 %v107_v19, %v91_v9 }
   0x8   :  { %1040 = vst.msk [vmem:[#allocation3 + $0xe0] sm:$0xff] %vm552_vm0, %v3306_v0  ;;  %1042 = vst.msk [vmem:[#allocation3 + $0xf0] sm:$0xff] %vm552_vm0, %v3306_v0  ;;  %v3537_v20 = vld [vmem:[%s6266_s0 + $0xc8] sm:$0x3]  ;;  %v3542_v21 = vld [vmem:[%s6266_s0 + $0x158] sm:$0x3] }
   0x9   :  { %1044 = vst.msk [vmem:[#allocation3 + $0x100] sm:$0xff] %vm552_vm0, %v3306_v0  ;;  %1046 = vst.msk [vmem:[#allocation3 + $0x110] sm:$0xff] %vm552_vm0, %v3306_v0  ;;  %v3160_v24 = vld [vmem:[%s6266_s0 + $0x1e0] sm:$0xff]  ;;  %v3161_v25 = vld [vmem:[%s6266_s0 + $0x1e8] sm:$0x3]  ;;  %v159_v29 = vmul.f32 0.25, %v3143_v16  ;;  %v142_v36 = vadd.f32 %v122_v27, %v3516_v13  ;;  %v143_v37 = vadd.f32 %v123_v28, %v3544_v22 }
   0xa   :  { %1048 = vst.msk [vmem:[#allocation3 + $0x120] sm:$0xff] %vm552_vm0, %v3306_v0  ;;  %1318 = vst.msk [vmem:[#allocation3 + $0x140] sm:$0xff] %vm552_vm0, %v3306_v0  ;;  %v3162_v26 = vld [vmem:[%s6266_s0 + $0x1f0] sm:$0xff]  ;;  %v160_v30 = vmul.f32 0.25, %v3144_v17  ;;  %v3163_v31 = vld [vmem:[%s6266_s0 + $0x1f8] sm:$0x3] }
   0xb   :  { %1320 = vst.msk [vmem:[#allocation3 + $0x150] sm:$0xff] %vm552_vm0, %v3306_v0  ;;  %1322 = vst.msk [vmem:[#allocation3 + $0x160] sm:$0xff] %vm552_vm0, %v3306_v0  ;;  %v3559_v32 = vmul.f32 0.25, %v3542_v21  ;;  %v208_v33 = vmul.f32 0.0625, %v3122_v7  ;;  %v209_v34 = vmul.f32 0.0625, %v3123_v10  ;;  %v3562_v35 = vmul.f32 0.0625, %v3513_v12 }
   0xc   :  { %1324 = vst.msk [vmem:[#allocation3 + $0x170] sm:$0xff] %vm552_vm0, %v3306_v0  ;;  %1326 = vst.msk [vmem:[#allocation3 + $0x180] sm:$0xff] %vm552_vm0, %v3306_v0  ;;  %v3567_v38 = vmul.f32 0.0625, %v3537_v20  ;;  %v224_v39 = vmul.f32 0.375, %v3508_v11  ;;  %vm431_vm4 = vcmask 1045504   ;;  %v3573_v40 = vld [vmem:[%s6266_s0 + $0x30] sm:$0xff]  ;;  %v174_v46 = vadd.f32 %v158_v23, %v142_v36 }
   0xd   :  { %1328 = vst.msk [vmem:[#allocation3 + $0x190] sm:$0xff] %vm552_vm0, %v3306_v0  ;;  %1330 = vst.msk [vmem:[#allocation3 + $0x1a0] sm:$0xff] %vm552_vm0, %v3306_v0  ;;  %v225_v41 = vmul.f32 0.375, %v3521_v14  ;;  %v276_v42 = vmul.f32 0.25, %v3160_v24  ;;  %v277_v43 = vmul.f32 0.25, %v3161_v25  ;;  %v3576_v44 = vmul.f32 0.25, %v3162_v26 }
   0xe   :  { %1332 = vst.msk [vmem:[#allocation3 + $0x1b0] sm:$0xff] %vm552_vm0, %v3306_v0  ;;  %1334 = vst.msk [vmem:[#allocation3 + $0x1c0] sm:$0xff] %vm552_vm0, %v3306_v0  ;;  %v3581_v45 = vld [vmem:[%s6266_s0 + $0x38] sm:$0x3]  ;;  %v175_v47 = vadd.f32 %v159_v29, %v143_v37  ;;  %v240_v48 = vadd.f32 %v224_v39, %v208_v33  ;;  %v3583_v49 = vmul.f32 0.25, %v3163_v31  ;;  %v3146_v50 = vld [vmem:[%s6266_s0 + $0x160] sm:$0xff]  ;;  %v192_v55 = vadd.f32 %v174_v46, %v160_v30 }
   0xf   :  { %1460 = vst.msk [vmem:[#allocation3 + $0x1e0] sm:$0xff] %vm552_vm0, %v3306_v0  ;;  %1462 = vst.msk [vmem:[#allocation3 + $0x1f0] sm:$0xff] %vm552_vm0, %v3306_v0  ;;  %v241_v51 = vadd.f32 %v225_v41, %v209_v34  ;;  %v92_v52 = vmul.f32 0.0625, %v3432_v3  ;;  %v93_v53 = vmul.f32 0.0625, %v3437_v4  ;;  %v3591_v54 = vmul.f32 0.0625, %v3573_v40  ;;  %v3612_v18 = vld [vmem:[%s6266_s0 + $0xd0] sm:$0xff] }
  0x10   :  { %1464 = vst.msk [vmem:[#allocation3 + $0x200] sm:$0xff] %vm552_vm0, %v3306_v0  ;;  %1466 = vst.msk [vmem:[#allocation3 + $0x210] sm:$0xff] %vm552_vm0, %v3306_v0  ;;  %v193_v56 = vadd.f32 %v175_v47, %v3559_v32  ;;  %v260_v57 = vadd.f32 %v240_v48, %v3562_v35  ;;  %v3596_v58 = vmul.f32 0.0625, %v3581_v45  ;;  %v108_v60 = vmul.f32 0.375, %v3442_v5  ;;  %v3605_v7 = vld [vmem:[%s6266_s0 + $0x168] sm:$0x3] }
  0x11   :  { %1468 = vst.msk [vmem:[#allocation3 + $0x220] sm:$0xff] %vm552_vm0, %v3306_v0  ;;  %1470 = vst.msk [vmem:[#allocation3 + $0x230] sm:$0xff] %vm552_vm0, %v3306_v0  ;;  %v261_v59 = vadd.f32 %v241_v51, %v3567_v38  ;;  %v109_v61 = vmul.f32 0.375, %v16_v6  ;;  %v3600_v62 = vmul.f32 0.25, %v3146_v50  ;;  %v334_v1 = vmul.f32 0.375, %v192_v55  ;;  %v3164_v34 = vld [vmem:[%s6266_s0 + $0x200] sm:$0xff] }
  0x12   :  { %1472 = vst.msk [vmem:[#allocation3 + $0x240] sm:$0xff] %vm552_vm0, %v3306_v0  ;;  %1474 = vst.msk [vmem:[#allocation3 + $0x250] sm:$0xff] %vm552_vm0, %v3306_v0  ;;  %v292_v63 = vadd.f32 %v276_v42, %v260_v57  ;;  %v335_v2 = vmul.f32 0.375, %v193_v56  ;;  %v407_v4 = vmul.f32 0.0625, %v193_v56  ;;  %v124_v8 = vadd.f32 %v108_v60, %v92_v52  ;;  %v3620_v26 = vld [vmem:[%s6266_s0 + $0xd8] sm:$0x3] }
  0x13   :  { %1476 = vst.msk [vmem:[#allocation3 + $0x260] sm:$0xff] %vm552_vm0, %v3306_v0  ;;  %v293_v3 = vadd.f32 %v277_v43, %v261_v59  ;;  %v125_v9 = vadd.f32 %v109_v61, %v93_v53  ;;  %v367_v15 = vrot.slane %v334_v1, 1  ;;  %v3623_v27 = vmul.f32 0.25, %v3605_v7  ;;  %v3633_v39 = vld [vmem:[%s6266_s0 + $0x208] sm:$0x3]  ;;  %v3148_v1 = vld [vmem:[%s6266_s0 + $0x170] sm:$0xff] }
  0x14   :  { %555 = vst.msk [vmem:[#allocation2 + $0x8] sm:$0xf] %vm554_vm1, %v3306_v0  ;;  %557 = vst.msk [vmem:[#allocation2 + $0x18] sm:$0xf] %vm554_vm1, %v3306_v0  ;;  %v310_v10 = vadd.f32 %v292_v63, %v3576_v44  ;;  %v368_v5 = vrot.slane %v335_v2, 1  ;;  %v433_v17 = vrot.slane %v407_v4, 2  ;;  %v144_v19 = vadd.f32 %v124_v8, %v3591_v54 }
  0x15   :  { %559 = vst.msk [vmem:[#allocation2 + $0x28] sm:$0xf] %vm554_vm1, %v3306_v0  ;;  %561 = vst.msk [vmem:[#allocation2 + $0x38] sm:$0xf] %vm554_vm1, %v3306_v0  ;;  %v311_v16 = vadd.f32 %v293_v3, %v3583_v49  ;;  %v145_v23 = vadd.f32 %v125_v9, %v3596_v58  ;;  %v210_v28 = vmul.f32 0.0625, %v3508_v11  ;;  %v211_v42 = vmul.f32 0.0625, %v3521_v14 }
  0x16   :  { %563 = vst.msk [vmem:[#allocation2 + $0x48] sm:$0xf] %vm554_vm1, %v3306_v0  ;;  %565 = vst.msk [vmem:[#allocation2 + $0x58] sm:$0xf] %vm554_vm1, %v3306_v0  ;;  %v369_v24 = vsel %vm366_vm3, %v367_v15, %v368_v5  ;;  %v472_v25 = vmul.f32 0.25, %v310_v10  ;;  %v176_v36 = vadd.f32 %v160_v30, %v144_v19  ;;  %v3638_v11 = vmul.f32 0.0625, %v3612_v18 }
  0x17   :  { %567 = vst.msk [vmem:[#allocation2 + $0x68] sm:$0xf] %vm554_vm1, %v3306_v0  ;;  %569 = vst.msk [vmem:[#allocation2 + $0x78] sm:$0xf] %vm554_vm1, %v3306_v0  ;;  %v488_v33 = vmul.f32 0.25, %v311_v16  ;;  %v177_v41 = vadd.f32 %v3559_v32, %v145_v23  ;;  %v3642_v48 = vmul.f32 0.0625, %v3620_v26 }
  0x18   :  { %571 = vst.msk [vmem:[#allocation2 + $0x88] sm:$0xf] %vm554_vm1, %v3306_v0  ;;  %573 = vst.msk [vmem:[#allocation2 + $0x98] sm:$0xf] %vm554_vm1, %v3306_v0  ;;  %v512_v37 = vrot.slane %v472_v25, 1  ;;  %v194_v47 = vadd.f32 %v176_v36, %v3600_v62  ;;  %v226_v50 = vmul.f32 0.375, %v3513_v12 }
  0x19   :  { %575 = vst.msk [vmem:[#allocation2 + $0xa8] sm:$0xf] %vm554_vm1, %v3306_v0  ;;  %v513_v46 = vrot.slane %v488_v33, 1  ;;  %v195_v30 = vadd.f32 %v177_v41, %v3623_v27  ;;  %v227_v51 = vmul.f32 0.375, %v3537_v20  ;;  %v3647_v52 = vmul.f32 0.25, %v3164_v34  ;;  %v3652_v14 = vld [vmem:[%s6266_s0 + $0x40] sm:$0xff] }
  0x1a   :  { %1319 = vst.msk [vmem:[#allocation3 + $0x148] sm:$0x3] %vm888_vm2, %v3306_v0  ;;  %1035 = vst.msk [vmem:[#allocation3 + $0xb8] sm:$0x3] %vm888_vm2, %v3306_v0  ;;  %v327_v56 = vmul.f32 0.0625, %v194_v47  ;;  %v242_v57 = vadd.f32 %v226_v50, %v210_v28  ;;  %v336_v60 = vmul.f32 0.375, %v194_v47 }
  0x1b   :  { %1037 = vst.msk [vmem:[#allocation3 + $0xc8] sm:$0x3] %vm888_vm2, %v3306_v0  ;;  %1039 = vst.msk [vmem:[#allocation3 + $0xd8] sm:$0x3] %vm888_vm2, %v3306_v0  ;;  %v514_v53 = vsel %vm366_vm3, %v512_v37, %v513_v46  ;;  %v243_v59 = vadd.f32 %v227_v51, %v211_v42  ;;  %v337_v12 = vmul.f32 0.375, %v195_v30  ;;  %v408_v63 = vmul.f32 0.0625, %v195_v30 }
  0x1c   :  { %1041 = vst.msk [vmem:[#allocation3 + $0xe8] sm:$0x3] %vm888_vm2, %v3306_v0  ;;  %1043 = vst.msk [vmem:[#allocation3 + $0xf8] sm:$0x3] %vm888_vm2, %v3306_v0  ;;  %v3661_v20 = vld [vmem:[%s6266_s0 + $0x48] sm:$0x3]  ;;  %v262_v3 = vadd.f32 %v242_v57, %v3638_v11 }
  0x1d   :  { %1045 = vst.msk [vmem:[#allocation3 + $0x108] sm:$0x3] %vm888_vm2, %v3306_v0  ;;  %1047 = vst.msk [vmem:[#allocation3 + $0x118] sm:$0x3] %vm888_vm2, %v3306_v0  ;;  %v3667_v2 = vmul.f32 0.0625, %v3652_v14  ;;  %v263_v4 = vadd.f32 %v243_v59, %v3642_v48  ;;  %v370_v8 = vrot.slane %v336_v60, 1 }
  0x1e   :  { %1049 = vst.msk [vmem:[#allocation3 + $0x128] sm:$0x3] %vm888_vm2, %v3306_v0  ;;  %1321 = vst.msk [vmem:[#allocation3 + $0x158] sm:$0x3] %vm888_vm2, %v3306_v0  ;;  %v371_v9 = vrot.slane %v337_v12, 1  ;;  %v3674_v10 = vld [vmem:[%s6266_s0 + $0xe0] sm:$0xff]  ;;  %v294_v19 = vadd.f32 %v3576_v44, %v262_v3 }
  0x1f   :  { %1323 = vst.msk [vmem:[#allocation3 + $0x168] sm:$0x3] %vm888_vm2, %v3306_v0  ;;  %1325 = vst.msk [vmem:[#allocation3 + $0x178] sm:$0x3] %vm888_vm2, %v3306_v0  ;;  %v436_v15 = vrot.slane %v408_v63, 2  ;;  %v110_v16 = vmul.f32 0.375, %v3573_v40  ;;  %v295_v23 = vadd.f32 %v3583_v49, %v263_v4 }
  0x20   :  { %1327 = vst.msk [vmem:[#allocation3 + $0x188] sm:$0x3] %vm888_vm2, %v3306_v0  ;;  %1329 = vst.msk [vmem:[#allocation3 + $0x198] sm:$0x3] %vm888_vm2, %v3306_v0  ;;  %v3680_v5 = vld [vmem:[%s6266_s0 + $0x178] sm:$0x3]  ;;  %v312_v44 = vadd.f32 %v294_v19, %v3647_v52 }
  0x21   :  { %1331 = vst.msk [vmem:[#allocation3 + $0x1a8] sm:$0x3] %vm888_vm2, %v3306_v0  ;;  %1333 = vst.msk [vmem:[#allocation3 + $0x1b8] sm:$0x3] %vm888_vm2, %v3306_v0  ;;  %v3695_v28 = vmul.f32 0.25, %v3148_v1  ;;  %v126_v40 = vadd.f32 %v110_v16, %v3516_v13  ;;  %v3166_v33 = vld [vmem:[%s6266_s0 + $0x210] sm:$0xff] }
  0x22   :  { %1335 = vst.msk [vmem:[#allocation3 + $0x1c8] sm:$0x3] %vm888_vm2, %v3306_v0  ;;  %1461 = vst.msk [vmem:[#allocation3 + $0x1e8] sm:$0x3] %vm888_vm2, %v3306_v0  ;;  %v3708_v34 = vld [vmem:[%s6266_s0 + $0x218] sm:$0x3] }
  0x23   :  { %1463 = vst.msk [vmem:[#allocation3 + $0x1f8] sm:$0x3] %vm888_vm2, %v3306_v0  ;;  %1465 = vst.msk [vmem:[#allocation3 + $0x208] sm:$0x3] %vm888_vm2, %v3306_v0  ;;  %v3711_v36 = vmul.f32 0.25, %v3680_v5  ;;  %v3714_v13 = vmul.f32 0.0625, %v3674_v10  ;;  %v146_v37 = vadd.f32 %v126_v40, %v3667_v2 }
  0x24   :  { %1467 = vst.msk [vmem:[#allocation3 + $0x218] sm:$0x3] %vm888_vm2, %v3306_v0  ;;  %1469 = vst.msk [vmem:[#allocation3 + $0x228] sm:$0x3] %vm888_vm2, %v3306_v0  ;;  %v228_v47 = vmul.f32 0.375, %v3612_v18  ;;  %v229_v30 = vmul.f32 0.375, %v3620_v26 }
  0x25   :  { %1471 = vst.msk [vmem:[#allocation3 + $0x238] sm:$0x3] %vm888_vm2, %v3306_v0  ;;  %1473 = vst.msk [vmem:[#allocation3 + $0x248] sm:$0x3] %vm888_vm2, %v3306_v0  ;;  %v3726_v50 = vld [vmem:[%s6266_s0 + $0x50] sm:$0xff]  ;;  %v178_v51 = vadd.f32 %v3600_v62, %v146_v37  ;;  %v112_v3 = vmul.f32 0.375, %v3652_v14 }
  0x26   :  { %1475 = vst.msk [vmem:[#allocation3 + $0x258] sm:$0x3] %vm888_vm2, %v3306_v0  ;;  %1477 = vst.msk [vmem:[#allocation3 + $0x268] sm:$0x3] %vm888_vm2, %v3306_v0  ;;  %v326_v0 = vmul.f32 0.0625, %v192_v55  ;;  %v3656_v55 = vmul.f32 0.25, %v3633_v39  ;;  %v244_v60 = vadd.f32 %v228_v47, %v3562_v35 }
  0x27   :  { %v3738_v18 = vld [vmem:[%s6266_s0 + $0x58] sm:$0x3]  ;;  %v196_v12 = vadd.f32 %v178_v51, %v3695_v28  ;;  %v3763_v19 = vld [vmem:[%s6266_s0 + $0x188] sm:$0x3]  ;;  %v113_v14 = vmul.f32 0.375, %v3661_v20  ;;  %vm927_vm5 = vcmask 57344  }
  0x28   :  { %v432_v6 = vrot.slane %v326_v0, 2  ;;  %v399_v29 = vadd.f32 %v369_v24, %v326_v0  ;;  %v435_v0 = vrot.slane %v327_v56, 2  ;;  %v372_v24 = vsel %vm366_vm3, %v370_v8, %v371_v9  ;;  %v3798_v51 = vld [vmem:[%s6266_s0 + $0x228] sm:$0x3] }
  0x29   :  { %v313_v49 = vadd.f32 %v295_v23, %v3656_v55  ;;  %v3750_v1 = vmul.f32 0.0625, %v3738_v18  ;;  %v328_v8 = vmul.f32 0.0625, %v196_v12  ;;  %v338_v9 = vmul.f32 0.375, %v196_v12 }
  0x2a   :  { %v434_v31 = vsel %vm431_vm4, %v432_v6, %v433_v17  ;;  %v3683_v6 = vmul.f32 0.0625, %v3661_v20  ;;  %v111_v17 = vmul.f32 0.375, %v3581_v45  ;;  %v230_v12 = vmul.f32 0.375, %v3674_v10 }
  0x2b   :  { %v464_v43 = vadd.f32 %v434_v31, %v399_v29  ;;  %v400_v29 = vadd.f32 %v372_v24, %v327_v56  ;;  %v437_v31 = vsel %vm431_vm4, %v435_v0, %v436_v15  ;;  %v489_v46 = vmul.f32 0.25, %v313_v49 }
  0x2c   :  { %v127_v45 = vadd.f32 %v111_v17, %v3544_v22  ;;  %v3733_v56 = vmul.f32 0.25, %v3708_v34  ;;  %v264_v0 = vadd.f32 %v244_v60, %v3714_v13  ;;  %v3758_v17 = vld [vmem:[%s6266_s0 + $0x180] sm:$0xff]  ;;  %v373_v24 = vrot.slane %v338_v9, 1 }
  0x2d   :  { %v480_v32 = vadd.f32 %v472_v25, %v464_v43  ;;  %v3693_v25 = vld [vmem:[%s6266_s0 + $0xe8] sm:$0x3]  ;;  %v465_v22 = vadd.f32 %v437_v31, %v400_v29  ;;  %v473_v43 = vmul.f32 0.25, %v312_v44  ;;  %v516_v59 = vrot.slane %v489_v46, 1  ;;  %v3773_v44 = vld [vmem:[%s6266_s0 + $0xf0] sm:$0xff] }
  0x2e   :  { %v147_v41 = vadd.f32 %v127_v45, %v3683_v6  ;;  %v3719_v42 = vmul.f32 0.0625, %v3693_v25  ;;  %v296_v15 = vadd.f32 %v3647_v52, %v264_v0  ;;  %v438_v52 = vrot.slane %v328_v8, 2 }
  0x2f   :  { %v544_v61 = vadd.f32 %v514_v53, %v480_v32  ;;  %v3730_v53 = vmul.f32 0.25, %v3166_v33  ;;  %v481_v26 = vadd.f32 %v473_v43, %v465_v22  ;;  %v515_v57 = vrot.slane %v473_v43, 1 }
  0x30   :  { %v179_v32 = vadd.f32 %v3623_v27, %v147_v41  ;;  %v245_v27 = vadd.f32 %v229_v30, %v3567_v38  ;;  %v128_v29 = vadd.f32 %v112_v3, %v3591_v54  ;;  %v129_v49 = vadd.f32 %v113_v14, %v3596_v58  ;;  %v3168_v30 = vld [vmem:[%s6266_s0 + $0x220] sm:$0xff]  ;;  %v3829_v14 = vld [vmem:[%s6266_s0 + $0x68] sm:$0x3] }
  0x31   :  { %579 = vst.msk [vmem:[#allocation2 + $0x22] sm:$0xff] %vm552_vm0, %v544_v61  ;;  %v3745_v61 = vmul.f32 0.0625, %v3726_v50  ;;  %v517_v63 = vsel %vm366_vm3, %v515_v57, %v516_v59  ;;  %v314_v31 = vadd.f32 %v296_v15, %v3730_v53  ;;  %v3784_v33 = vmul.f32 0.25, %v3758_v17 }
  0x32   :  { %v197_v62 = vadd.f32 %v179_v32, %v3711_v36  ;;  %v545_v4 = vadd.f32 %v517_v63, %v481_v26  ;;  %v265_v35 = vadd.f32 %v245_v27, %v3719_v42  ;;  %v3787_v22 = vmul.f32 0.25, %v3763_v19 }
  0x33   :  { %v148_v54 = vadd.f32 %v128_v29, %v3745_v61  ;;  %v474_v58 = vmul.f32 0.25, %v314_v31  ;;  %v149_v43 = vadd.f32 %v129_v49, %v3750_v1  ;;  %v3802_v26 = vmul.f32 0.0625, %v3773_v44  ;;  %v3835_v29 = vld [vmem:[%s6266_s0 + $0x190] sm:$0xff] }
  0x34   :  { %v339_v38 = vmul.f32 0.375, %v197_v62  ;;  %v409_v16 = vmul.f32 0.0625, %v197_v62  ;;  %580 = vst.msk [vmem:[#allocation2 + $0x32] sm:$0xff] %vm552_vm0, %v545_v4  ;;  %v297_v23 = vadd.f32 %v3656_v55, %v265_v35  ;;  %v3780_v55 = vld [vmem:[%s6266_s0 + $0xf8] sm:$0x3]  ;;  %v231_v0 = vmul.f32 0.375, %v3693_v25 }
  0x35   :  { %v180_v32 = vadd.f32 %v3695_v28, %v148_v54  ;;  %v518_v57 = vrot.slane %v474_v58, 1  ;;  %v181_v59 = vadd.f32 %v3711_v36, %v149_v43  ;;  %v3806_v60 = vmul.f32 0.0625, %v3780_v55  ;;  %v3821_v36 = vld [vmem:[%s6266_s0 + $0x60] sm:$0xff] }
  0x36   :  { %v374_v40 = vrot.slane %v339_v38, 1  ;;  %v439_v45 = vrot.slane %v409_v16, 2  ;;  %v315_v20 = vadd.f32 %v297_v23, %v3733_v56  ;;  %v246_v28 = vadd.f32 %v230_v12, %v3638_v11 }
  0x37   :  { %v198_v63 = vadd.f32 %v180_v32, %v3784_v33  ;;  %v199_v3 = vadd.f32 %v181_v59, %v3787_v22  ;;  %v3813_v4 = vmul.f32 0.25, %v3168_v30  ;;  %v3816_v35 = vmul.f32 0.25, %v3798_v51  ;;  %v3170_v59 = vld [vmem:[%s6266_s0 + $0x230] sm:$0xff] }
  0x38   :  { %v375_v37 = vsel %vm366_vm3, %v373_v24, %v374_v40  ;;  %v440_v41 = vsel %vm431_vm4, %v438_v52, %v439_v45  ;;  %v490_v47 = vmul.f32 0.25, %v315_v20  ;;  %v247_v9 = vadd.f32 %v231_v0, %v3642_v48  ;;  %v3844_v20 = vld [vmem:[%s6266_s0 + $0x108] sm:$0x3] }
  0x39   :  { %v401_v46 = vadd.f32 %v375_v37, %v328_v8  ;;  %v329_v25 = vmul.f32 0.0625, %v198_v63  ;;  %v266_v15 = vadd.f32 %v246_v28, %v3802_v26  ;;  %v340_v38 = vmul.f32 0.375, %v198_v63  ;;  %v3851_v37 = vld [vmem:[%s6266_s0 + $0x100] sm:$0xff]  ;;  %v3887_v28 = vld [vmem:[%s6266_s0 + $0x238] sm:$0x3] }
  0x3a   :  { %v519_v27 = vrot.slane %v490_v47, 1  ;;  %v341_v11 = vmul.f32 0.375, %v199_v3  ;;  %v410_v16 = vmul.f32 0.0625, %v199_v3  ;;  %v267_v24 = vadd.f32 %v247_v9, %v3806_v60 }
  0x3b   :  { %v466_v62 = vadd.f32 %v440_v41, %v401_v46  ;;  %v441_v52 = vrot.slane %v329_v25, 2  ;;  %v3838_v48 = vmul.f32 0.0625, %v3821_v36  ;;  %v298_v31 = vadd.f32 %v3730_v53, %v266_v15  ;;  %v3856_v53 = vld [vmem:[%s6266_s0 + $0x198] sm:$0x3] }
  0x3c   :  { %v520_v8 = vsel %vm366_vm3, %v518_v57, %v519_v27  ;;  %v376_v40 = vrot.slane %v340_v38, 1  ;;  %v377_v45 = vrot.slane %v341_v11, 1  ;;  %v442_v49 = vrot.slane %v410_v16, 2  ;;  %v3903_v38 = vld [vmem:[%s6266_s0 + $0x78] sm:$0x3] }
  0x3d   :  { %v482_v10 = vadd.f32 %v474_v58, %v466_v62  ;;  %v299_v54 = vadd.f32 %v3733_v56, %v267_v24  ;;  %v3859_v41 = vmul.f32 0.0625, %v3829_v14  ;;  %v114_v58 = vmul.f32 0.375, %v3726_v50 }
  0x3e   :  { %v115_v43 = vmul.f32 0.375, %v3738_v18  ;;  %v316_v46 = vadd.f32 %v298_v31, %v3813_v4  ;;  %v378_v56 = vsel %vm366_vm3, %v376_v40, %v377_v45  ;;  %v443_v47 = vsel %vm431_vm4, %v441_v52, %v442_v49 }
  0x3f   :  { %v546_v23 = vadd.f32 %v520_v8, %v482_v10  ;;  %v3867_v30 = vmul.f32 0.25, %v3835_v29  ;;  %v317_v32 = vadd.f32 %v299_v54, %v3816_v35  ;;  %v402_v57 = vadd.f32 %v378_v56, %v329_v25  ;;  %v3894_v10 = vld [vmem:[%s6266_s0 + $0x70] sm:$0xff] }
  0x40   :  { %v130_v50 = vadd.f32 %v114_v58, %v3667_v2  ;;  %v131_v18 = vadd.f32 %v115_v43, %v3683_v6  ;;  %v475_v12 = vmul.f32 0.25, %v316_v46  ;;  %v3876_v62 = vmul.f32 0.25, %v3856_v53 }
  0x41   :  { %581 = vst.msk [vmem:[#allocation2 + $0x42] sm:$0xff] %vm552_vm0, %v546_v23  ;;  %v3879_v27 = vmul.f32 0.0625, %v3851_v37  ;;  %v3882_v63 = vmul.f32 0.0625, %v3844_v20  ;;  %v467_v0 = vadd.f32 %v443_v47, %v402_v57  ;;  %v491_v3 = vmul.f32 0.25, %v317_v32  ;;  %v3930_v57 = vld [vmem:[%s6266_s0 + $0x1a0] sm:$0xff] }
  0x42   :  { %v150_v2 = vadd.f32 %v130_v50, %v3838_v48  ;;  %v151_v6 = vadd.f32 %v131_v18, %v3859_v41  ;;  %v521_v8 = vrot.slane %v475_v12, 1  ;;  %v232_v9 = vmul.f32 0.375, %v3773_v44 }
  0x43   :  { %v233_v25 = vmul.f32 0.375, %v3780_v55  ;;  %v3898_v15 = vmul.f32 0.25, %v3170_v59  ;;  %v483_v11 = vadd.f32 %v475_v12, %v467_v0  ;;  %v522_v16 = vrot.slane %v491_v3, 1  ;;  %v3935_v59 = vld [vmem:[%s6266_s0 + $0x1a8] sm:$0x3] }
  0x44   :  { %v182_v23 = vadd.f32 %v3784_v33, %v150_v2  ;;  %v183_v24 = vadd.f32 %v3787_v22, %v151_v6  ;;  %v248_v52 = vadd.f32 %v232_v9, %v3714_v13  ;;  %v3910_v44 = vmul.f32 0.25, %v3887_v28  ;;  %v3944_v2 = vld [vmem:[%s6266_s0 + $0x110] sm:$0xff]  ;;  %v3949_v6 = vld [vmem:[%s6266_s0 + $0x118] sm:$0x3] }
  0x45   :  { %v249_v31 = vadd.f32 %v233_v25, %v3719_v42  ;;  %v3913_v55 = vmul.f32 0.0625, %v3894_v10  ;;  %v523_v40 = vsel %vm366_vm3, %v521_v8, %v522_v16  ;;  %v3919_v33 = vmul.f32 0.0625, %v3903_v38 }
  0x46   :  { %v200_v45 = vadd.f32 %v182_v23, %v3867_v30  ;;  %v201_v49 = vadd.f32 %v183_v24, %v3876_v62  ;;  %v547_v22 = vadd.f32 %v523_v40, %v483_v11  ;;  %v268_v13 = vadd.f32 %v248_v52, %v3879_v27  ;;  %v3172_v52 = vld [vmem:[%s6266_s0 + $0x240] sm:$0xff] }
  0x47   :  { %v269_v42 = vadd.f32 %v249_v31, %v3882_v63  ;;  %v116_v54 = vmul.f32 0.375, %v3821_v36  ;;  %v117_v36 = vmul.f32 0.375, %v3829_v14  ;;  %v3956_v25 = vmul.f32 0.25, %v3930_v57  ;;  %v3968_v31 = vld [vmem:[%s6266_s0 + $0x248] sm:$0x3] }
  0x48   :  { %v330_v58 = vmul.f32 0.0625, %v200_v45  ;;  %v342_v43 = vmul.f32 0.375, %v200_v45  ;;  %v343_v46 = vmul.f32 0.375, %v201_v49  ;;  %v411_v56 = vmul.f32 0.0625, %v201_v49  ;;  %582 = vst.msk [vmem:[#allocation2 + $0x52] sm:$0xff] %vm552_vm0, %v547_v22 }
  0x49   :  { %v300_v47 = vadd.f32 %v3813_v4, %v268_v13  ;;  %v301_v32 = vadd.f32 %v3816_v35, %v269_v42  ;;  %v132_v50 = vadd.f32 %v116_v54, %v3745_v61  ;;  %v133_v61 = vadd.f32 %v117_v36, %v3750_v1 }
  0x4a   :  { %v379_v18 = vrot.slane %v342_v43, 1  ;;  %v380_v12 = vrot.slane %v343_v46, 1  ;;  %v444_v0 = vrot.slane %v330_v58, 2  ;;  %v445_v4 = vrot.slane %v411_v56, 2 }
  0x4b   :  { %v318_v35 = vadd.f32 %v300_v47, %v3898_v15  ;;  %v319_v3 = vadd.f32 %v301_v32, %v3910_v44  ;;  %v152_v14 = vadd.f32 %v132_v50, %v3913_v55  ;;  %v3959_v11 = vmul.f32 0.25, %v3935_v59 }
  0x4c   :  { %v381_v8 = vsel %vm366_vm3, %v379_v18, %v380_v12  ;;  %v446_v9 = vsel %vm431_vm4, %v444_v0, %v445_v4  ;;  %v153_v1 = vadd.f32 %v133_v61, %v3919_v33  ;;  %v3972_v45 = vmul.f32 0.0625, %v3944_v2 }
  0x4d   :  { %v403_v16 = vadd.f32 %v381_v8, %v330_v58  ;;  %v476_v23 = vmul.f32 0.25, %v318_v35  ;;  %v492_v24 = vmul.f32 0.25, %v319_v3  ;;  %v184_v40 = vadd.f32 %v3867_v30, %v152_v14  ;;  %v3997_v8 = vld [vmem:[%s6266_s0 + $0x1b0] sm:$0xff] }
  0x4e   :  { %v3975_v49 = vmul.f32 0.0625, %v3949_v6  ;;  %v234_v22 = vmul.f32 0.375, %v3851_v37  ;;  %v185_v58 = vadd.f32 %v3876_v62, %v153_v1  ;;  %v235_v46 = vmul.f32 0.375, %v3844_v20  ;;  %v4013_v1 = vld [vmem:[%s6266_s0 + $0x1b8] sm:$0x3] }
  0x4f   :  { %v468_v13 = vadd.f32 %v446_v9, %v403_v16  ;;  %v524_v42 = vrot.slane %v476_v23, 1  ;;  %v525_v54 = vrot.slane %v492_v24, 1  ;;  %v202_v43 = vadd.f32 %v184_v40, %v3956_v25  ;;  %v27_v16 = vld [vmem:[%s6266_s0 + $0x80] sm:$0xff] }
  0x50   :  { %v250_v56 = vadd.f32 %v234_v22, %v3802_v26  ;;  %v3982_v30 = vmul.f32 0.25, %v3172_v52  ;;  %v203_v36 = vadd.f32 %v185_v58, %v3959_v11  ;;  %v3987_v37 = vmul.f32 0.25, %v3968_v31 }
  0x51   :  { %v484_v47 = vadd.f32 %v476_v23, %v468_v13  ;;  %v526_v32 = vsel %vm366_vm3, %v524_v42, %v525_v54  ;;  %v251_v50 = vadd.f32 %v235_v46, %v3806_v60  ;;  %v331_v18 = vmul.f32 0.0625, %v202_v43 }
  0x52   :  { %v270_v62 = vadd.f32 %v250_v56, %v3972_v45  ;;  %v344_v12 = vmul.f32 0.375, %v202_v43  ;;  %v345_v20 = vmul.f32 0.375, %v203_v36  ;;  %v412_v4 = vmul.f32 0.0625, %v203_v36 }
  0x53   :  { %v548_v0 = vadd.f32 %v526_v32, %v484_v47  ;;  %v118_v26 = vmul.f32 0.375, %v3894_v10  ;;  %v271_v35 = vadd.f32 %v251_v50, %v3975_v49  ;;  %v447_v14 = vrot.slane %v331_v18, 2  ;;  %v28_v10 = vld [vmem:[%s6266_s0 + $0x88] sm:$0x3] }
  0x54   :  { %v302_v3 = vadd.f32 %v3898_v15, %v270_v62  ;;  %v382_v61 = vrot.slane %v344_v12, 1  ;;  %v383_v60 = vrot.slane %v345_v20, 1  ;;  %v448_v9 = vrot.slane %v412_v4, 2  ;;  %v4036_v12 = vld [vmem:[%s6266_s0 + $0x258] sm:$0x3] }
  0x55   :  { %583 = vst.msk [vmem:[#allocation2 + $0x62] sm:$0xff] %vm552_vm0, %v548_v0  ;;  %v119_v15 = vmul.f32 0.375, %v3903_v38  ;;  %v134_v23 = vadd.f32 %v118_v26, %v3838_v48  ;;  %v303_v24 = vadd.f32 %v3910_v44, %v271_v35  ;;  %v138_v40 = vmul.f32 0.0625, %v27_v16 }
  0x56   :  { %v320_v52 = vadd.f32 %v302_v3, %v3982_v30  ;;  %v139_v22 = vmul.f32 0.0625, %v28_v10  ;;  %v384_v13 = vsel %vm366_vm3, %v382_v61, %v383_v60  ;;  %v449_v42 = vsel %vm431_vm4, %v447_v14, %v448_v9 }
  0x57   :  { %v135_v54 = vadd.f32 %v119_v15, %v3859_v41  ;;  %v4019_v38 = vmul.f32 0.25, %v3997_v8  ;;  %v321_v48 = vadd.f32 %v303_v24, %v3987_v37  ;;  %v404_v44 = vadd.f32 %v384_v13, %v331_v18  ;;  %v3138_v41 = vld [vmem:[%s6266_s0 + $0x120] sm:$0xff]  ;;  %v3174_v18 = vld [vmem:[%s6266_s0 + $0x250] sm:$0xff] }
  0x58   :  { %v477_v58 = vmul.f32 0.25, %v320_v52  ;;  %v154_v43 = vadd.f32 %v138_v40, %v134_v23  ;;  %v4023_v56 = vmul.f32 0.25, %v4013_v1  ;;  %v236_v47 = vmul.f32 0.375, %v3944_v2  ;;  %v29_v13 = vld [vmem:[%s6266_s0 + $0x90] sm:$0xff] }
  0x59   :  { %v155_v46 = vadd.f32 %v139_v22, %v135_v54  ;;  %v237_v32 = vmul.f32 0.375, %v3949_v6  ;;  %v469_v36 = vadd.f32 %v449_v42, %v404_v44  ;;  %v493_v50 = vmul.f32 0.25, %v321_v48  ;;  %v3139_v6 = vld [vmem:[%s6266_s0 + $0x128] sm:$0x3]  ;;  %v30_v42 = vld [vmem:[%s6266_s0 + $0x98] sm:$0x3] }
  0x5a   :  { %v527_v62 = vrot.slane %v477_v58, 1  ;;  %v186_v2 = vadd.f32 %v3956_v25, %v154_v43  ;;  %v252_v20 = vadd.f32 %v236_v47, %v3879_v27  ;;  %v256_v26 = vmul.f32 0.0625, %v3138_v41  ;;  %v4066_v47 = vld [vmem:[%s6266_s0 + $0x1c0] sm:$0xff] }
  0x5b   :  { %v187_v0 = vadd.f32 %v3959_v11, %v155_v46  ;;  %v253_v4 = vadd.f32 %v237_v32, %v3882_v63  ;;  %v485_v35 = vadd.f32 %v477_v58, %v469_v36  ;;  %v528_v3 = vrot.slane %v493_v50, 1 }
  0x5c   :  { %v204_v61 = vadd.f32 %v186_v2, %v4019_v38  ;;  %v257_v14 = vmul.f32 0.0625, %v3139_v6  ;;  %v272_v9 = vadd.f32 %v256_v26, %v252_v20  ;;  %v4047_v25 = vmul.f32 0.25, %v3174_v18  ;;  %v3140_v26 = vld [vmem:[%s6266_s0 + $0x130] sm:$0xff] }
  0x5d   :  { %v205_v60 = vadd.f32 %v187_v0, %v4023_v56  ;;  %v4050_v15 = vmul.f32 0.25, %v4036_v12  ;;  %v529_v11 = vsel %vm366_vm3, %v527_v62, %v528_v3  ;;  %v120_v58 = vmul.f32 0.375, %v27_v16 }
  0x5e   :  { %v273_v23 = vadd.f32 %v257_v14, %v253_v4  ;;  %v332_v27 = vmul.f32 0.0625, %v204_v61  ;;  %v346_v24 = vmul.f32 0.375, %v204_v61  ;;  %v549_v63 = vadd.f32 %v529_v11, %v485_v35  ;;  %v3141_v35 = vld [vmem:[%s6266_s0 + $0x138] sm:$0x3] }
  0x5f   :  { %v304_v52 = vadd.f32 %v3982_v30, %v272_v9  ;;  %v347_v40 = vmul.f32 0.375, %v205_v60  ;;  %v413_v22 = vmul.f32 0.0625, %v205_v60  ;;  %v121_v32 = vmul.f32 0.375, %v28_v10 }
  0x60   :  { %v305_v54 = vadd.f32 %v3987_v37, %v273_v23  ;;  %v385_v48 = vrot.slane %v346_v24, 1  ;;  %v450_v44 = vrot.slane %v332_v27, 2  ;;  %584 = vst.msk [vmem:[#allocation2 + $0x72] sm:$0xff] %vm552_vm0, %v549_v63  ;;  %v4072_v37 = vld [vmem:[%s6266_s0 + $0x1c8] sm:$0x3]  ;;  %v136_v16 = vadd.f32 %v120_v58, %v3913_v55  ;;  %v3176_v23 = vld [vmem:[%s6266_s0 + $0x260] sm:$0xff] }
  0x61   :  { %v322_v43 = vadd.f32 %v304_v52, %v4047_v25  ;;  %v386_v30 = vrot.slane %v347_v40, 1  ;;  %v451_v46 = vrot.slane %v413_v22, 2  ;;  %v140_v50 = vmul.f32 0.0625, %v29_v13 }
  0x62   :  { %v323_v36 = vadd.f32 %v305_v54, %v4050_v15  ;;  %v141_v62 = vmul.f32 0.0625, %v30_v42  ;;  %v137_v20 = vadd.f32 %v121_v32, %v3919_v33  ;;  %v190_v3 = vmul.f32 0.25, %v4066_v47 }
  0x63   :  { %v387_v18 = vsel %vm366_vm3, %v385_v48, %v386_v30  ;;  %v452_v2 = vsel %vm431_vm4, %v450_v44, %v451_v46  ;;  %v478_v0 = vmul.f32 0.25, %v322_v43  ;;  %v156_v55 = vadd.f32 %v140_v50, %v136_v16  ;;  %v4099_v44 = vld [vmem:[#allocation2 + $0x28] sm:$0xf] }
  0x64   :  { %v405_v4 = vadd.f32 %v387_v18, %v332_v27  ;;  %v494_v10 = vmul.f32 0.25, %v323_v36  ;;  %v157_v14 = vadd.f32 %v141_v62, %v137_v20  ;;  %v191_v60 = vmul.f32 0.25, %v4072_v37  ;;  %v4092_v27 = vld [vmem:[%s6266_s0 + $0x268] sm:$0x3]  ;;  %v4108_v18 = vld [vmem:[#allocation2 + $0x58] sm:$0xf] }
  0x65   :  { %v530_v61 = vrot.slane %v478_v0, 1  ;;  %v238_v9 = vmul.f32 0.375, %v3138_v41  ;;  %v188_v24 = vadd.f32 %v4019_v38, %v156_v55  ;;  %v239_v63 = vmul.f32 0.375, %v3139_v6  ;;  %v4102_v6 = vld [vmem:[#allocation2 + $0x38] sm:$0xf] }
  0x66   :  { %v470_v11 = vadd.f32 %v452_v2, %v405_v4  ;;  %v531_v33 = vrot.slane %v494_v10, 1  ;;  %v189_v52 = vadd.f32 %v4023_v56, %v157_v14  ;;  %v258_v22 = vmul.f32 0.0625, %v3140_v26  ;;  %v4104_v36 = vld [vmem:[#allocation2 + $0x48] sm:$0xf] }
  0x67   :  { %v254_v40 = vadd.f32 %v238_v9, %v3972_v45  ;;  %v259_v41 = vmul.f32 0.0625, %v3141_v35  ;;  %v206_v54 = vadd.f32 %v190_v3, %v188_v24  ;;  %v255_v48 = vadd.f32 %v239_v63, %v3975_v49  ;;  %v4113_v10 = vld [vmem:[#allocation2 + $0x68] sm:$0xf] }
  0x68   :  { %v486_v13 = vadd.f32 %v478_v0, %v470_v11  ;;  %v532_v42 = vsel %vm366_vm3, %v530_v61, %v531_v33  ;;  %v207_v58 = vadd.f32 %v191_v60, %v189_v52  ;;  %v308_v30 = vmul.f32 0.25, %v3176_v23 }
  0x69   :  { %v274_v43 = vadd.f32 %v258_v22, %v254_v40  ;;  %v309_v38 = vmul.f32 0.25, %v4092_v27  ;;  %v275_v46 = vadd.f32 %v259_v41, %v255_v48  ;;  %v333_v45 = vmul.f32 0.0625, %v206_v54 }
  0x6a   :  { %v550_v56 = vadd.f32 %v532_v42, %v486_v13  ;;  %v348_v32 = vmul.f32 0.375, %v206_v54  ;;  %v349_v50 = vmul.f32 0.375, %v207_v58  ;;  %v414_v62 = vmul.f32 0.0625, %v207_v58 }
  0x6b   :  { %v306_v16 = vadd.f32 %v4047_v25, %v274_v43  ;;  %v678_v49 = vmul.f32 0.5, %v4099_v44  ;;  %v307_v2 = vadd.f32 %v4050_v15, %v275_v46  ;;  %v453_v20 = vrot.slane %v333_v45, 2 }
  0x6c   :  { %585 = vst.msk [vmem:[#allocation2 + $0x82] sm:$0xff] %vm552_vm0, %v550_v56  ;;  %v388_v0 = vrot.slane %v348_v32, 1  ;;  %v680_v4 = vmul.f32 0.5, %v4102_v6  ;;  %v389_v35 = vrot.slane %v349_v50, 1  ;;  %v454_v55 = vrot.slane %v414_v62, 2 }
  0x6d   :  { %v324_v26 = vadd.f32 %v308_v30, %v306_v16  ;;  %v325_v25 = vadd.f32 %v309_v38, %v307_v2  ;;  %v682_v61 = vmul.f32 0.5, %v4104_v36  ;;  %v684_v14 = vmul.f32 0.5, %v4108_v18  ;;  %v4143_v16 = vld [vmem:[#allocation2 + $0x78] sm:$0xf] }
  0x6e   :  { %v696_v3 = vadd.f32 %v680_v4, %v678_v49  ;;  %v390_v60 = vsel %vm366_vm3, %v388_v0, %v389_v35  ;;  %v455_v9 = vsel %vm431_vm4, %v453_v20, %v454_v55  ;;  %v686_v11 = vmul.f32 0.5, %v4113_v10  ;;  %v4150_v0 = vld [vmem:[#allocation2 + $0xa8] sm:$0xf] }
  0x6f   :  { %v479_v15 = vmul.f32 0.25, %v324_v26  ;;  %v406_v33 = vadd.f32 %v390_v60, %v333_v45  ;;  %v495_v23 = vmul.f32 0.25, %v325_v25  ;;  %v698_v40 = vadd.f32 %v682_v61, %v680_v4 }
  0x70   :  { %v4120_v24 = vmul.f32 0.125, %v696_v3  ;;  %v4122_v63 = vmul.f32 0.75, %v696_v3  ;;  %v700_v22 = vadd.f32 %v684_v14, %v682_v61  ;;  %v4124_v41 = vadd.f32 %v686_v11, %v684_v14 }
  0x71   :  { %v533_v52 = vrot.slane %v479_v15, 1  ;;  %v471_v13 = vadd.f32 %v455_v9, %v406_v33  ;;  %v534_v42 = vrot.slane %v495_v23, 1  ;;  %v4128_v58 = vmul.f32 0.125, %v698_v40 }
  0x72   :  { %v6283_v54 = vrot.slane %v4122_v63, 1  ;;  %v6281_v48 = vrot.slane %v4120_v24, 2  ;;  %v4130_v43 = vmul.f32 0.75, %v698_v40  ;;  %v4132_v30 = vmul.f32 0.125, %v700_v22 }
  0x73   :  { %v4134_v38 = vmul.f32 0.75, %v700_v22  ;;  %v487_v56 = vadd.f32 %v479_v15, %v471_v13  ;;  %v535_v46 = vsel %vm366_vm3, %v533_v52, %v534_v42  ;;  %v4141_v32 = vmul.f32 0.125, %v4124_v41  ;;  %v4145_v50 = vld [vmem:[#allocation2 + $0x88] sm:$0xf] }
  0x74   :  { %v1230_v45 = vadd.f32 %v6283_v54, %v4120_v24  ;;  %v6279_v62 = vrot.slane %v4130_v43, 1  ;;  %v6278_v49 = vrot.slane %v4128_v58, 2  ;;  %v6276_v26 = vrot.slane %v4132_v30, 2 }
  0x75   :  { %v6274_v2 = vrot.slane %v4134_v38, 1  ;;  %v551_v20 = vadd.f32 %v535_v46, %v487_v56  ;;  %v4156_v35 = vmul.f32 0.75, %v4124_v41  ;;  %v688_v61 = vmul.f32 0.5, %v4143_v16 }
  0x76   :  { %v1302_v4 = vadd.f32 %v6281_v48, %v1230_v45  ;;  %v1232_v55 = vadd.f32 %v6279_v62, %v4128_v58  ;;  %v690_v14 = vmul.f32 0.5, %v4145_v50  ;;  %v6270_v15 = vrot.slane %v4141_v32, 2  ;;  %v3243_v48 = vld [vmem:[%s6266_s0 + $0x1f8] sm:$0x3] }
  0x77   :  { %v1234_v25 = vadd.f32 %v6274_v2, %v4132_v30  ;;  %586 = vst.msk [vmem:[#allocation2 + $0x92] sm:$0xff] %vm552_vm0, %v551_v20  ;;  %v6271_v9 = vrot.slane %v4156_v35, 1  ;;  %v694_v33 = vmul.f32 0.5, %v4150_v0  ;;  %v704_v13 = vadd.f32 %v688_v61, %v686_v11 }
  0x78   :  { %v1339_v60 = vsub.f32 %v3542_v21, %v1302_v4  ;;  %v1304_v23 = vadd.f32 %v6278_v49, %v1232_v55  ;;  %v706_v42 = vadd.f32 %v690_v14, %v688_v61  ;;  %v4179_v56 = vmul.f32 0.5, %v696_v3 }
  0x79   :  { %v1306_v52 = vadd.f32 %v6276_v26, %v1234_v25  ;;  %v1236_v21 = vadd.f32 %v6271_v9, %v4141_v32  ;;  %v4181_v46 = vmul.f32 0.5, %v698_v40  ;;  %v4183_v45 = vmul.f32 0.5, %v700_v22 }
  0x7a   :  { %1356 = vst.msk [vmem:[#allocation3 + $0x158] sm:$0x1] %vm927_vm5, %v1339_v60  ;;  %v1341_v20 = vsub.f32 %v3605_v7, %v1304_v23  ;;  %v4187_v55 = vmul.f32 0.125, %v704_v13  ;;  %v4189_v11 = vmul.f32 0.75, %v704_v13  ;;  %v4193_v61 = vmul.f32 0.125, %v706_v42 }
  0x7b   :  { %v1343_v4 = vsub.f32 %v3680_v5, %v1306_v52  ;;  %v1308_v25 = vadd.f32 %v6270_v15, %v1236_v21  ;;  %v4195_v60 = vmul.f32 0.75, %v706_v42  ;;  %v6272_v3 = vrot.slane %v4179_v56, 1 }
  0x7c   :  { %1358 = vst.msk [vmem:[#allocation3 + $0x168] sm:$0x1] %vm927_vm5, %v1341_v20  ;;  %v6273_v7 = vrot.slane %v4189_v11, 1  ;;  %v6282_v5 = vrot.slane %v4187_v55, 2  ;;  %v6275_v40 = vrot.slane %v4181_v46, 1  ;;  %v6277_v22 = vrot.slane %v4183_v45, 1 }
  0x7d   :  { %1360 = vst.msk [vmem:[#allocation3 + $0x178] sm:$0x1] %vm927_vm5, %v1343_v4  ;;  %v1345_v23 = vsub.f32 %v3763_v19, %v1308_v25  ;;  %v6280_v52 = vrot.slane %v4195_v60, 1  ;;  %v6288_v21 = vrot.slane %v4193_v61, 2  ;;  %v4210_v20 = vadd.f32 %v6272_v3, %v4179_v56 }
  0x7e   :  { %v1238_v4 = vadd.f32 %v6273_v7, %v4187_v55  ;;  %v4215_v15 = vld [vmem:[#allocation2 + $0x98] sm:$0xf]  ;;  %v4220_v9 = vadd.f32 %v6275_v40, %v4181_v46  ;;  %v4225_v19 = vadd.f32 %v6277_v22, %v4183_v45  ;;  %v4228_v25 = vmul.f32 0.5, %v4124_v41 }
  0x7f   :  { %1362 = vst.msk [vmem:[#allocation3 + $0x188] sm:$0x1] %vm927_vm5, %v1345_v23  ;;  %v1240_v3 = vadd.f32 %v6280_v52, %v4193_v61  ;;  %v692_v7 = vmul.f32 0.5, %v4215_v15  ;;  %v6286_v2 = vrot.slane %v4210_v20, 1  ;;  %v4236_v40 = vmul.f32 0.5, %v704_v13 }
  0x80   :  { %6394 = vst [vmem:[#allocation4_spill] sm:$0xff] %v4225_v19  ;;  %v1310_v26 = vadd.f32 %v6282_v5, %v1238_v4  ;;  %v6285_v22 = vrot.slane %v4220_v9, 1  ;;  %v6284_v41 = vrot.slane %v4225_v19, 1  ;;  %v6287_v49 = vrot.slane %v4228_v25, 1  ;;  %v4335_v19 = vld [vmem:[#allocation2 + $0x50] sm:$0xff] }
  0x81   :  { %v1312_v23 = vadd.f32 %v6288_v21, %v1240_v3  ;;  %v708_v62 = vadd.f32 %v692_v7, %v690_v14  ;;  %v710_v52 = vadd.f32 %v694_v33, %v692_v7  ;;  %v1537_v13 = vsub.f32 %v3243_v48, %v6286_v2  ;;  %v4279_v7 = vld [vmem:[#allocation2 + $0x20] sm:$0xff]  ;;  %6407 = vst [vmem:[#allocation15_spill] sm:$0xff] %v4335_v19 }
  0x82   :  { %v1347_v4 = vsub.f32 %v3856_v53, %v1310_v26  ;;  %v1539_v5 = vsub.f32 %v3633_v39, %v6285_v22  ;;  %v1541_v54 = vsub.f32 %v3708_v34, %v6284_v41  ;;  %v4260_v14 = vadd.f32 %v6287_v49, %v4228_v25  ;;  %6397 = vst [vmem:[#allocation7_spill] sm:$0xff] %v4279_v7 }
  0x83   :  { %v1349_v33 = vsub.f32 %v3935_v59, %v1312_v23  ;;  %v4263_v3 = vmul.f32 0.125, %v708_v62  ;;  %v4265_v48 = vmul.f32 0.75, %v708_v62  ;;  %v4267_v53 = vmul.f32 0.125, %v710_v52  ;;  %1554 = vst.msk [vmem:[#allocation3 + $0x1f8] sm:$0x1] %vm927_vm5, %v1537_v13 }
  0x84   :  { %6395 = vst [vmem:[#allocation5_spill] sm:$0xff] %v4260_v14  ;;  %1364 = vst.msk [vmem:[#allocation3 + $0x198] sm:$0x1] %vm927_vm5, %v1347_v4  ;;  %v4271_v39 = vmul.f32 0.75, %v710_v52  ;;  %v6289_v34 = vrot.slane %v4260_v14, 1  ;;  %v6290_v59 = vrot.slane %v4236_v40, 1 }
  0x85   :  { %1556 = vst.msk [vmem:[#allocation3 + $0x208] sm:$0x1] %vm927_vm5, %v1539_v5  ;;  %1558 = vst.msk [vmem:[#allocation3 + $0x218] sm:$0x1] %vm927_vm5, %v1541_v54  ;;  %v4277_v26 = vmul.f32 0.5, %v706_v42  ;;  %v6291_v23 = vrot.slane %v4265_v48, 1 }
  0x86   :  { %1366 = vst.msk [vmem:[#allocation3 + $0x1a8] sm:$0x1] %vm927_vm5, %v1349_v33  ;;  %v6302_v13 = vrot.slane %v4263_v3, 2  ;;  %v4285_v41 = vmul.f32 0.5, %v708_v62  ;;  %v4287_v5 = vld [vmem:[#allocation2 + $0x30] sm:$0xff]  ;;  %v6292_v54 = vrot.slane %v4271_v39, 1  ;;  %v1543_v42 = vsub.f32 %v3798_v51, %v6289_v34 }
  0x87   :  { %6396 = vst [vmem:[#allocation6_spill] sm:$0xff] %v4277_v26  ;;  %6399 = vst [vmem:[#allocation9_spill] sm:$0xff] %v4287_v5  ;;  %v4296_v33 = vadd.f32 %v6290_v59, %v4236_v40  ;;  %v6295_v22 = vrot.slane %v4277_v26, 1  ;;  %v1242_v62 = vadd.f32 %v6291_v23, %v4263_v3  ;;  %v4303_v49 = vmul.f32 0.5, %v710_v52  ;;  %v4317_v4 = vld [vmem:[#allocation2 + $0x40] sm:$0xff] }
  0x88   :  { %6398 = vst [vmem:[#allocation8_spill] sm:$0xff] %v4285_v41  ;;  %v6301_v2 = vrot.slane %v4285_v41, 1  ;;  %v677_v21 = vmul.f32 0.5, %v4279_v7  ;;  %v1244_v51 = vadd.f32 %v6292_v54, %v4267_v53  ;;  %1560 = vst.msk [vmem:[#allocation3 + $0x228] sm:$0x1] %vm927_vm5, %v1543_v42  ;;  %v679_v23 = vmul.f32 0.5, %v4287_v5 }
  0x89   :  { %6400 = vst [vmem:[#allocation10_spill] sm:$0xff] %v4296_v33  ;;  %6401 = vst [vmem:[#allocation11_spill] sm:$0xff] %v4303_v49  ;;  %v4314_v59 = vadd.f32 %v6295_v22, %v4277_v26  ;;  %v1314_v52 = vadd.f32 %v6302_v13, %v1242_v62  ;;  %v6303_v42 = vrot.slane %v4303_v49, 1  ;;  %v6405_v34 = vrot.slane %v4267_v53, 2 }
  0x8a   :  { %6403 = vst [vmem:[#allocation13_spill] sm:$0xff] %v4317_v4  ;;  %v4324_v54 = vadd.f32 %v6301_v2, %v4285_v41  ;;  %v6406_v22 = vrot.slane %v4296_v33, 1  ;;  %v4333_v26 = vadd.f32 %v679_v23, %v677_v21  ;;  %vm925_vm6 = vcmask 64513  }
  0x8b   :  { %6402 = vst [vmem:[#allocation12_spill] sm:$0xff] %v4314_v59  ;;  %v1316_v7 = vadd.f32 %v6405_v34, %v1244_v51  ;;  %v6306_v5 = vrot.slane %v4314_v59, 1  ;;  %v1351_v62 = vsub.f32 %v4013_v1, %v1314_v52  ;;  %v4342_v13 = vadd.f32 %v6303_v42, %v4303_v49  ;;  %v4345_v51 = vld [vmem:[#allocation2 + $0x60] sm:$0xff]  ;;  %v3244_v49 = vld [vmem:[%s6266_s0 + $0x150] sm:$0xff] }
  0x8c   :  { %6404 = vst [vmem:[#allocation14_spill] sm:$0xff] %v4324_v54  ;;  %v1545_v14 = vsub.f32 %v3887_v28, %v6406_v22  ;;  %v6307_v2 = vrot.slane %v4324_v54, 1  ;;  %v681_v34 = vmul.f32 0.5, %v4317_v4  ;;  %6409 = vst [vmem:[#allocation17_spill] sm:$0xff] %v4345_v51  ;;  %v4347_v28 = vld [vmem:[#allocation2 + $0x70] sm:$0xff]  ;;  %v1141_v21 = vmul.f32 0.125, %v4333_v26 }
  0x8d   :  { %6408 = vst [vmem:[#allocation16_spill] sm:$0xff] %v4342_v13  ;;  %6410 = vst [vmem:[#allocation18_spill] sm:$0xff] %v4347_v28  ;;  %v1353_v22 = vsub.f32 %v4072_v37, %v1316_v7  ;;  %v1547_v1 = vsub.f32 %v3968_v31, %v6306_v5  ;;  %v1157_v52 = vmul.f32 0.75, %v4333_v26  ;;  %v6314_v4 = vrot.slane %v4342_v13, 1 }
  0x8e   :  { %1562 = vst.msk [vmem:[#allocation3 + $0x238] sm:$0x1] %vm927_vm5, %v1545_v14  ;;  %1368 = vst.msk [vmem:[#allocation3 + $0x1b8] sm:$0x1] %vm927_vm5, %v1351_v62  ;;  %v1549_v42 = vsub.f32 %v4036_v12, %v6307_v2  ;;  %v4361_v37 = vadd.f32 %v681_v34, %v679_v23  ;;  %v683_v14 = vmul.f32 0.5, %v4335_v19  ;;  %v1261_v7 = vrot.slane %v1141_v21, 2 }
  0x8f   :  { %1370 = vst.msk [vmem:[#allocation3 + $0x1c8] sm:$0x1] %vm927_vm5, %v1353_v22  ;;  %1564 = vst.msk [vmem:[#allocation3 + $0x248] sm:$0x1] %vm927_vm5, %v1547_v1  ;;  %v1189_v31 = vrot.slane %v1157_v52, 1  ;;  %v685_v5 = vmul.f32 0.5, %v4345_v51  ;;  %v1551_v12 = vsub.f32 %v4092_v27, %v6314_v4 }
  0x90   :  { %v687_v62 = vmul.f32 0.5, %v4347_v28  ;;  %1566 = vst.msk [vmem:[#allocation3 + $0x258] sm:$0x1] %vm927_vm5, %v1549_v42  ;;  %v1143_v23 = vmul.f32 0.125, %v4361_v37  ;;  %v1159_v2 = vmul.f32 0.75, %v4361_v37  ;;  %v4374_v19 = vadd.f32 %v683_v14, %v681_v34 }
  0x91   :  { %v6411_v22 = vrot.slane %v4122_v63, 1  ;;  %v6412_v52 = vrot.slane %v4120_v24, 2  ;;  %v4382_v51 = vadd.f32 %v685_v5, %v683_v14  ;;  %1568 = vst.msk [vmem:[#allocation3 + $0x268] sm:$0x1] %vm927_vm5, %v1551_v12  ;;  %v6413_v14 = vrot.slane %v4130_v43, 1 }
  0x92   :  { %v4384_v42 = vadd.f32 %v687_v62, %v685_v5  ;;  %v1192_v4 = vrot.slane %v1159_v2, 1  ;;  %v1264_v13 = vrot.slane %v1143_v23, 2  ;;  %v1145_v34 = vmul.f32 0.125, %v4374_v19 }
  0x93   :  { %v1191_v1 = vsel %vm366_vm3, %v1189_v31, %v6411_v22  ;;  %v1263_v28 = vsel %vm431_vm4, %v1261_v7, %v6412_v52  ;;  %v1161_v54 = vmul.f32 0.75, %v4374_v19  ;;  %v1147_v63 = vmul.f32 0.125, %v4382_v51 }
  0x94   :  { %v1229_v27 = vadd.f32 %v1191_v1, %v1141_v21  ;;  %v1163_v31 = vmul.f32 0.75, %v4382_v51  ;;  %v1149_v24 = vmul.f32 0.125, %v4384_v42  ;;  %v1194_v5 = vsel %vm366_vm3, %v1192_v4, %v6413_v14 }
  0x95   :  { %v6414_v12 = vrot.slane %v4128_v58, 2  ;;  %v1267_v21 = vrot.slane %v1145_v34, 2  ;;  %v1231_v22 = vadd.f32 %v1194_v5, %v1143_v23  ;;  %v1195_v1 = vrot.slane %v1161_v54, 1  ;;  %v4405_v58 = vld [vmem:[#allocation2 + $0x80] sm:$0xff] }
  0x96   :  { %v1301_v7 = vadd.f32 %v1263_v28, %v1229_v27  ;;  %v1198_v52 = vrot.slane %v1163_v31, 1  ;;  %v1270_v59 = vrot.slane %v1147_v63, 2  ;;  %v6415_v28 = vrot.slane %v4132_v30, 2  ;;  %v4409_v23 = vld [vmem:[#allocation2 + $0xa0] sm:$0xff] }
  0x97   :  { %v1266_v2 = vsel %vm431_vm4, %v1264_v13, %v6414_v12  ;;  %v1165_v4 = vmul.f32 0.75, %v4384_v42  ;;  %v1273_v27 = vrot.slane %v1149_v24, 2  ;;  %v4407_v13 = vld [vmem:[#allocation2 + $0x90] sm:$0xff]  ;;  %v6416_v31 = vrot.slane %v4134_v38, 1  ;;  %v3245_v38 = vld [vmem:[%s6266_s0 + $0x160] sm:$0xff] }
  0x98   :  { %v1338_v41 = vsub.f32 %v3244_v49, %v1301_v7  ;;  %v1269_v43 = vsel %vm431_vm4, %v1267_v21, %v6415_v28  ;;  %v1303_v54 = vadd.f32 %v1266_v2, %v1231_v22  ;;  %v6417_v49 = vrot.slane %v4156_v35, 1 }
  0x99   :  { %v1197_v14 = vsel %vm366_vm3, %v1195_v1, %v6416_v31  ;;  %v6418_v7 = vrot.slane %v4141_v32, 2  ;;  %v1201_v28 = vrot.slane %v1165_v4, 1  ;;  %v6419_v33 = vrot.slane %v4187_v55, 2  ;;  %v590_v1 = vld [vmem:[#allocation2 + $0x18] sm:$0xf]  ;;  %v3246_v31 = vld [vmem:[%s6266_s0 + $0x170] sm:$0xff] }
  0x9a   :  { %v1200_v30 = vsel %vm366_vm3, %v1198_v52, %v6417_v49  ;;  %1355 = vst.msk [vmem:[#allocation3 + $0x150] sm:$0xfe] %vm925_vm6, %v1338_v41  ;;  %v1233_v12 = vadd.f32 %v1197_v14, %v1145_v34  ;;  %v1340_v35 = vsub.f32 %v3245_v38, %v1303_v54  ;;  %v689_v22 = vmul.f32 0.5, %v4405_v58 }
  0x9b   :  { %v1272_v5 = vsel %vm431_vm4, %v1270_v59, %v6418_v7  ;;  %v1235_v21 = vadd.f32 %v1200_v30, %v1147_v63  ;;  %v1275_v2 = vsel %vm431_vm4, %v1273_v27, %v6419_v33  ;;  %v691_v32 = vmul.f32 0.5, %v4407_v13 }
  0x9c   :  { %v693_v59 = vmul.f32 0.5, %v4409_v23  ;;  %v1305_v41 = vadd.f32 %v1269_v43, %v1233_v12  ;;  %v6420_v63 = vrot.slane %v4189_v11, 1  ;;  %v610_v52 = vmul.f32 0.125, %v590_v1  ;;  %1357 = vst.msk [vmem:[#allocation3 + $0x160] sm:$0xfe] %vm925_vm6, %v1340_v35 }
  0x9d   :  { %v1307_v34 = vadd.f32 %v1272_v5, %v1235_v21  ;;  %v4434_v4 = vadd.f32 %v689_v22, %v687_v62  ;;  %v4436_v27 = vadd.f32 %v691_v32, %v689_v22  ;;  %v614_v11 = vmul.f32 0.125, %v4102_v6  ;;  %v588_v22 = vld [vmem:[#allocation2 + $0x8] sm:$0xf] }
  0x9e   :  { %v1203_v55 = vsel %vm366_vm3, %v1201_v28, %v6420_v63  ;;  %v4438_v54 = vadd.f32 %v693_v59, %v691_v32  ;;  %v1342_v43 = vsub.f32 %v3246_v31, %v1305_v41  ;;  %v626_v49 = vmul.f32 0.75, %v4099_v44 }
  0x9f   :  { %v1237_v33 = vadd.f32 %v1203_v55, %v1149_v24  ;;  %v1344_v14 = vsub.f32 %v3758_v17, %v1307_v34  ;;  %v1151_v24 = vmul.f32 0.125, %v4434_v4  ;;  %v1167_v62 = vmul.f32 0.75, %v4434_v4 }
  0xa0   :  { %v1153_v7 = vmul.f32 0.125, %v4436_v27  ;;  %1359 = vst.msk [vmem:[#allocation3 + $0x170] sm:$0xfe] %vm925_vm6, %v1342_v43  ;;  %v1169_v5 = vmul.f32 0.75, %v4436_v27  ;;  %v1155_v12 = vmul.f32 0.125, %v4438_v54  ;;  %v1171_v17 = vmul.f32 0.75, %v4438_v54 }
  0xa1   :  { %v1309_v30 = vadd.f32 %v1275_v2, %v1237_v33  ;;  %1361 = vst.msk [vmem:[#allocation3 + $0x180] sm:$0xfe] %vm925_vm6, %v1344_v14  ;;  %v642_v21 = vadd.f32 %v626_v49, %v610_v52  ;;  %v1204_v2 = vrot.slane %v1167_v62, 1  ;;  %v1276_v38 = vrot.slane %v1151_v24, 2 }
  0xa2   :  { %v1279_v35 = vrot.slane %v1153_v7, 2  ;;  %v1207_v32 = vrot.slane %v1169_v5, 1  ;;  %v1210_v59 = vrot.slane %v1171_v17, 1  ;;  %v1282_v41 = vrot.slane %v1155_v12, 2 }
  0xa3   :  { %v1346_v28 = vsub.f32 %v3835_v29, %v1309_v30  ;;  %v662_v34 = vadd.f32 %v642_v21, %v614_v11  ;;  %v6421_v63 = vrot.slane %v4195_v60, 1  ;;  %v6422_v33 = vrot.slane %v4193_v61, 2 }
  0xa4   :  { %v6423_v29 = vrot.slane %v4263_v3, 2  ;;  %v6424_v14 = vrot.slane %v4265_v48, 1  ;;  %v6425_v30 = vrot.slane %v4271_v39, 1  ;;  %v4471_v60 = vmul.f32 0.0625, %v588_v22 }
  0xa5   :  { %1363 = vst.msk [vmem:[#allocation3 + $0x190] sm:$0xfe] %vm925_vm6, %v1346_v28  ;;  %v1206_v55 = vsel %vm366_vm3, %v1204_v2, %v6421_v63  ;;  %v1278_v52 = vsel %vm431_vm4, %v1276_v38, %v6422_v33  ;;  %v6426_v21 = vrot.slane %v4267_v53, 2  ;;  %v2524_v28 = vmul.f32 0.25, %v590_v1 }
  0xa6   :  { %v1281_v31 = vsel %vm431_vm4, %v1279_v35, %v6423_v29  ;;  %v1239_v43 = vadd.f32 %v1206_v55, %v1151_v24  ;;  %v1209_v49 = vsel %vm366_vm3, %v1207_v32, %v6424_v14  ;;  %v1212_v62 = vsel %vm366_vm3, %v1210_v59, %v6425_v30 }
  0xa7   :  { %v1241_v5 = vadd.f32 %v1209_v49, %v1153_v7  ;;  %v1243_v17 = vadd.f32 %v1212_v62, %v1155_v12  ;;  %v1284_v3 = vsel %vm431_vm4, %v1282_v41, %v6426_v21  ;;  %v4476_v2 = vmul.f32 -0.25, %v590_v1 }
  0xa8   :  { %v1311_v61 = vadd.f32 %v1278_v52, %v1239_v43  ;;  %v612_v38 = vmul.f32 0.125, %v4099_v44  ;;  %v4481_v35 = vadd.f32 %v2524_v28, %v4471_v60  ;;  %v616_v7 = vmul.f32 0.125, %v4104_v36 }
  0xa9   :  { %v1313_v24 = vadd.f32 %v1281_v31, %v1241_v5  ;;  %v1315_v48 = vadd.f32 %v1284_v3, %v1243_v17  ;;  %v628_v22 = vmul.f32 0.75, %v4102_v6  ;;  %v618_v1 = vmul.f32 0.125, %v4108_v18 }
  0xaa   :  { %v1348_v39 = vsub.f32 %v3930_v57, %v1311_v61  ;;  %v630_v32 = vmul.f32 0.75, %v4104_v36  ;;  %v620_v44 = vmul.f32 0.125, %v4113_v10  ;;  %v632_v57 = vmul.f32 0.75, %v4108_v18 }
  0xab   :  { %v1350_v12 = vsub.f32 %v3997_v8, %v1313_v24  ;;  %v1352_v53 = vsub.f32 %v4066_v47, %v1315_v48  ;;  %v644_v59 = vadd.f32 %v628_v22, %v612_v38  ;;  %v622_v8 = vmul.f32 0.125, %v4143_v16 }
  0xac   :  { %1365 = vst.msk [vmem:[#allocation3 + $0x1a0] sm:$0xfe] %vm925_vm6, %v1348_v39  ;;  %v634_v47 = vmul.f32 0.75, %v4113_v10  ;;  %v646_v6 = vadd.f32 %v630_v32, %v614_v11  ;;  %v648_v41 = vadd.f32 %v632_v57, %v616_v7  ;;  %v624_v63 = vmul.f32 0.125, %v4145_v50 }
  0xad   :  { %1367 = vst.msk [vmem:[#allocation3 + $0x1b0] sm:$0xfe] %vm925_vm6, %v1350_v12  ;;  %1369 = vst.msk [vmem:[#allocation3 + $0x1c0] sm:$0xfe] %vm925_vm6, %v1352_v53  ;;  %v636_v55 = vmul.f32 0.75, %v4143_v16  ;;  %v664_v36 = vadd.f32 %v644_v59, %v616_v7  ;;  %v638_v52 = vmul.f32 0.75, %v4145_v50 }
  0xae   :  { %v650_v33 = vadd.f32 %v634_v47, %v618_v1  ;;  %v666_v18 = vadd.f32 %v646_v6, %v618_v1  ;;  %v668_v29 = vadd.f32 %v648_v41, %v620_v44  ;;  %v658_v43 = vmul.f32 0.125, %v4215_v15  ;;  %v3254_v59 = vld [vmem:[%s6266_s0 + $0xb8] sm:$0x3]  ;;  %v3255_v47 = vld [vmem:[%s6266_s0 + $0xc8] sm:$0x3] }
  0xaf   :  { %v652_v31 = vadd.f32 %v636_v55, %v620_v44  ;;  %v654_v49 = vadd.f32 %v638_v52, %v622_v8  ;;  %v640_v10 = vmul.f32 0.75, %v4215_v15  ;;  %v660_v5 = vmul.f32 0.125, %v4150_v0  ;;  %v3256_v41 = vld [vmem:[%s6266_s0 + $0xd8] sm:$0x3] }
  0xb0   :  { %v670_v14 = vadd.f32 %v650_v33, %v622_v8  ;;  %v4502_v17 = vmul.f32 0.5, %v662_v34  ;;  %v4504_v16 = vmul.f32 0.5, %v664_v36  ;;  %v4506_v61 = vmul.f32 0.5, %v666_v18  ;;  %v3257_v36 = vld [vmem:[%s6266_s0 + $0xe8] sm:$0x3] }
  0xb1   :  { %v672_v30 = vadd.f32 %v652_v31, %v624_v63  ;;  %v674_v62 = vadd.f32 %v658_v43, %v654_v49  ;;  %v656_v11 = vadd.f32 %v640_v10, %v624_v63  ;;  %v4508_v21 = vmul.f32 0.5, %v668_v29  ;;  %v3258_v49 = vld [vmem:[%s6266_s0 + $0xf8] sm:$0x3] }
  0xb2   :  { %v4510_v3 = vmul.f32 0.5, %v670_v14  ;;  %v976_v28 = vrot.slane %v4502_v17, 1  ;;  %v979_v24 = vrot.slane %v4504_v16, 1  ;;  %v982_v15 = vrot.slane %v4506_v61, 1 }
  0xb3   :  { %v676_v50 = vadd.f32 %v660_v5, %v656_v11  ;;  %v985_v48 = vrot.slane %v4508_v21, 1  ;;  %v4540_v1 = vmul.f32 0.5, %v672_v30  ;;  %v4548_v57 = vmul.f32 0.5, %v674_v62 }
  0xb4   :  { %v4519_v0 = vadd.f32 %v976_v28, %v4502_v17  ;;  %v4524_v34 = vadd.f32 %v979_v24, %v4504_v16  ;;  %v4529_v38 = vadd.f32 %v982_v15, %v4506_v61  ;;  %v988_v7 = vrot.slane %v4510_v3, 1 }
  0xb5   :  { %v4534_v39 = vadd.f32 %v985_v48, %v4508_v21  ;;  %v991_v55 = vrot.slane %v4540_v1, 1  ;;  %v994_v18 = vrot.slane %v4548_v57, 1  ;;  %v4581_v31 = vmul.f32 0.5, %v676_v50 }
  0xb6   :  { %v1069_v12 = vrot.slane %v4519_v0, 1  ;;  %v1072_v53 = vrot.slane %v4524_v34, 1  ;;  %v1075_v22 = vrot.slane %v4529_v38, 1  ;;  %v4546_v44 = vadd.f32 %v988_v7, %v4510_v3 }
  0xb7   :  { %v6323_v32 = vrot.slane %v4534_v39, 1  ;;  %v4579_v29 = vadd.f32 %v991_v55, %v4540_v1  ;;  %v1371_v43 = vmul.f32 0.5, %v4333_v26  ;;  %v1373_v14 = vmul.f32 0.5, %v4361_v37 }
  0xb8   :  { %v1109_v8 = vsub.f32 %v3254_v59, %v1069_v12  ;;  %v1111_v6 = vsub.f32 %v3255_v47, %v1072_v53  ;;  %v1113_v63 = vsub.f32 %v3256_v41, %v1075_v22  ;;  %v6322_v52 = vrot.slane %v4546_v44, 1 }
  0xb9   :  { %v1115_v33 = vsub.f32 %v3257_v36, %v6323_v32  ;;  %v4594_v62 = vadd.f32 %v994_v18, %v4548_v57  ;;  %v1375_v10 = vmul.f32 0.5, %v4374_v19  ;;  %v6321_v26 = vrot.slane %v4579_v29, 1  ;;  %v3282_v57 = vld [vmem:[%s6266_s0 + $0xe0] sm:$0xff] }
  0xba   :  { %1126 = vst.msk [vmem:[#allocation3 + $0xb8] sm:$0x1] %vm927_vm5, %v1109_v8  ;;  %1128 = vst.msk [vmem:[#allocation3 + $0xc8] sm:$0x1] %vm927_vm5, %v1111_v6  ;;  %v1117_v30 = vsub.f32 %v3258_v49, %v6322_v52  ;;  %v997_v37 = vrot.slane %v4581_v31, 1  ;;  %v1403_v11 = vrot.slane %v1371_v43, 1 }
  0xbb   :  { %1130 = vst.msk [vmem:[#allocation3 + $0xd8] sm:$0x1] %vm927_vm5, %v1113_v63  ;;  %1132 = vst.msk [vmem:[#allocation3 + $0xe8] sm:$0x1] %vm927_vm5, %v1115_v33  ;;  %v1406_v5 = vrot.slane %v1373_v14, 1  ;;  %v1087_v50 = vrot.slane %v4594_v62, 1 }
  0xbc   :  { %1134 = vst.msk [vmem:[#allocation3 + $0xf8] sm:$0x1] %vm927_vm5, %v1117_v30  ;;  %v1409_v59 = vrot.slane %v1375_v10, 1  ;;  %v1377_v8 = vmul.f32 0.5, %v4382_v51  ;;  %v1379_v47 = vmul.f32 0.5, %v4384_v42  ;;  %v4611_v41 = vadd.f32 %v997_v37, %v4581_v31 }
  0xbd   :  { %v3259_v6 = vld [vmem:[%s6266_s0 + $0x108] sm:$0x3]  ;;  %v6427_v63 = vrot.slane %v4179_v56, 1  ;;  %v6428_v51 = vrot.slane %v4181_v46, 1  ;;  %v3260_v33 = vld [vmem:[%s6266_s0 + $0x118] sm:$0x3] }
  0xbe   :  { %v1119_v19 = vsub.f32 %v3259_v6, %v6321_v26  ;;  %v1121_v49 = vsub.f32 %v3260_v33, %v1087_v50  ;;  %v6429_v26 = vrot.slane %v4183_v45, 1  ;;  %v1090_v56 = vrot.slane %v4611_v41, 1  ;;  %v3261_v45 = vld [vmem:[%s6266_s0 + $0x128] sm:$0x3] }
  0xbf   :  { %v1405_v36 = vsel %vm366_vm3, %v1403_v11, %v6427_v63  ;;  %v1408_v42 = vsel %vm366_vm3, %v1406_v5, %v6428_v51  ;;  %v1412_v11 = vrot.slane %v1377_v8, 1  ;;  %v1415_v5 = vrot.slane %v1379_v47, 1  ;;  %v3291_v41 = vld [vmem:[#allocation2 + $0xa8] sm:$0xf] }
  0xc0   :  { %v1443_v30 = vadd.f32 %v1405_v36, %v1371_v43  ;;  %v1445_v6 = vadd.f32 %v1408_v42, %v1373_v14  ;;  %v1411_v52 = vsel %vm366_vm3, %v1409_v59, %v6429_v26  ;;  %1136 = vst.msk [vmem:[#allocation3 + $0x108] sm:$0x1] %vm927_vm5, %v1119_v19  ;;  %1138 = vst.msk [vmem:[#allocation3 + $0x118] sm:$0x1] %vm927_vm5, %v1121_v49  ;;  %v1381_v32 = vmul.f32 0.5, %v4434_v4 }
  0xc1   :  { %v1447_v46 = vadd.f32 %v1411_v52, %v1375_v10  ;;  %v1383_v43 = vmul.f32 0.5, %v4436_v27  ;;  %v1123_v14 = vsub.f32 %v3261_v45, %v1090_v56  ;;  %v6430_v52 = vrot.slane %v4228_v25, 1  ;;  %v3262_v25 = vld [vmem:[%s6266_s0 + $0x1f0] sm:$0xff] }
  0xc2   :  { %v1496_v63 = vrot.slane %v1443_v30, 1  ;;  %v1499_v51 = vrot.slane %v1445_v6, 1  ;;  %v6431_v59 = vrot.slane %v4236_v40, 1  ;;  %v6432_v4 = vrot.slane %v4210_v20, 1  ;;  %v3263_v40 = vld [vmem:[%s6266_s0 + $0x200] sm:$0xff]  ;;  %v4662_v45 = vld [vmem:[#allocation2 + $0x10] sm:$0xff] }
  0xc3   :  { %v1502_v26 = vrot.slane %v1447_v46, 1  ;;  %v1414_v10 = vsel %vm366_vm3, %v1412_v11, %v6430_v52  ;;  %v6433_v36 = vrot.slane %v4220_v9, 1  ;;  %1140 = vst.msk [vmem:[#allocation3 + $0x128] sm:$0x1] %vm927_vm5, %v1123_v14  ;;  %v6434_v6 = vld [vmem:[#allocation4_spill] sm:$0xff]  ;;  %v1418_v11 = vrot.slane %v1381_v32, 1 }
  0xc4   :  { %v1417_v19 = vsel %vm366_vm3, %v1415_v5, %v6431_v59  ;;  %v1498_v27 = vsel %vm366_vm3, %v1496_v63, %v6432_v4  ;;  %v1449_v33 = vadd.f32 %v1414_v10, %v1377_v8  ;;  %v6435_v46 = vrot.slane %v6434_v6, 1  ;;  %v3264_v8 = vld [vmem:[%s6266_s0 + $0x210] sm:$0xff]  ;;  %v6438_v4 = vld [vmem:[#allocation5_spill] sm:$0xff] }
  0xc5   :  { %v1501_v42 = vsel %vm366_vm3, %v1499_v51, %v6433_v36  ;;  %v1451_v49 = vadd.f32 %v1417_v19, %v1379_v47  ;;  %v1536_v30 = vsub.f32 %v3262_v25, %v1498_v27  ;;  %v1421_v51 = vrot.slane %v1383_v43, 1 }
  0xc6   :  { %v1538_v20 = vsub.f32 %v3263_v40, %v1501_v42  ;;  %v1504_v9 = vsel %vm366_vm3, %v1502_v26, %v6435_v46  ;;  %v1505_v5 = vrot.slane %v1449_v33, 1  ;;  %v4666_v14 = vadd.f32 %v4476_v2, %v4471_v60  ;;  %v6436_v26 = vld [vmem:[#allocation6_spill] sm:$0xff] }
  0xc7   :  { %v1540_v47 = vsub.f32 %v3264_v8, %v1504_v9  ;;  %v1508_v63 = vrot.slane %v1451_v49, 1  ;;  %1553 = vst.msk [vmem:[#allocation3 + $0x1f0] sm:$0xfe] %vm925_vm6, %v1536_v30  ;;  %v6437_v52 = vrot.slane %v6436_v26, 1  ;;  %v1385_v59 = vmul.f32 0.5, %v4438_v54  ;;  %v6440_v60 = vld [vmem:[#allocation10_spill] sm:$0xff] }
  0xc8   :  { %1555 = vst.msk [vmem:[#allocation3 + $0x200] sm:$0xfe] %vm925_vm6, %v1538_v20  ;;  %v609_v19 = vmul.f32 0.125, %v4662_v45  ;;  %v6439_v27 = vrot.slane %v6438_v4, 1  ;;  %v6441_v2 = vrot.slane %v6440_v60, 1  ;;  %v6442_v49 = vld [vmem:[#allocation8_spill] sm:$0xff] }
  0xc9   :  { %v1420_v10 = vsel %vm366_vm3, %v1418_v11, %v6437_v52  ;;  %1557 = vst.msk [vmem:[#allocation3 + $0x210] sm:$0xfe] %vm925_vm6, %v1540_v47  ;;  %v6443_v25 = vrot.slane %v6442_v49, 1  ;;  %v3265_v54 = vld [vmem:[%s6266_s0 + $0x220] sm:$0xff]  ;;  %v3266_v20 = vld [vmem:[%s6266_s0 + $0x230] sm:$0xff]  ;;  %v1424_v9 = vrot.slane %v1385_v59, 1 }
  0xca   :  { %v1507_v36 = vsel %vm366_vm3, %v1505_v5, %v6439_v27  ;;  %v1510_v42 = vsel %vm366_vm3, %v1508_v63, %v6441_v2  ;;  %v1453_v33 = vadd.f32 %v1420_v10, %v1381_v32  ;;  %v6444_v8 = vld [vmem:[#allocation9_spill] sm:$0xff]  ;;  %v6445_v32 = vld [vmem:[#allocation7_spill] sm:$0xff]  ;;  %v4694_v63 = vmul.f32 0.25, %v4662_v45 }
  0xcb   :  { %v1423_v30 = vsel %vm366_vm3, %v1421_v51, %v6443_v25  ;;  %v1542_v40 = vsub.f32 %v3265_v54, %v1507_v36  ;;  %v1544_v6 = vsub.f32 %v3266_v20, %v1510_v42  ;;  %v613_v47 = vmul.f32 0.125, %v6444_v8  ;;  %v6446_v26 = vld [vmem:[#allocation11_spill] sm:$0xff]  ;;  %v6448_v4 = vld [vmem:[#allocation13_spill] sm:$0xff]  ;;  %v6449_v36 = vld [vmem:[#allocation12_spill] sm:$0xff] }
  0xcc   :  { %v1455_v46 = vadd.f32 %v1423_v30, %v1383_v43  ;;  %v1511_v11 = vrot.slane %v1453_v33, 1  ;;  %v625_v5 = vmul.f32 0.75, %v6445_v32  ;;  %v6447_v52 = vrot.slane %v6446_v26, 1  ;;  %v3267_v25 = vld [vmem:[%s6266_s0 + $0x240] sm:$0xff]  ;;  %v6451_v54 = vld [vmem:[#allocation14_spill] sm:$0xff]  ;;  %v6454_v26 = vld [vmem:[#allocation17_spill] sm:$0xff] }
  0xcd   :  { %1559 = vst.msk [vmem:[#allocation3 + $0x220] sm:$0xfe] %vm925_vm6, %v1542_v40  ;;  %1561 = vst.msk [vmem:[#allocation3 + $0x230] sm:$0xfe] %vm925_vm6, %v1544_v6  ;;  %v611_v43 = vmul.f32 0.125, %v6445_v32  ;;  %v615_v27 = vmul.f32 0.125, %v6448_v4 }
  0xce   :  { %v1514_v51 = vrot.slane %v1455_v46, 1  ;;  %v1426_v10 = vsel %vm366_vm3, %v1424_v9, %v6447_v52  ;;  %v6450_v60 = vrot.slane %v6449_v36, 1  ;;  %v641_v33 = vadd.f32 %v625_v5, %v609_v19  ;;  %v6453_v6 = vld [vmem:[#allocation15_spill] sm:$0xff] }
  0xcf   :  { %v1457_v42 = vadd.f32 %v1426_v10, %v1385_v59  ;;  %v627_v49 = vmul.f32 0.75, %v6444_v8  ;;  %v6452_v40 = vrot.slane %v6451_v54, 1  ;;  %v617_v46 = vmul.f32 0.125, %v6453_v6  ;;  %v3268_v59 = vld [vmem:[%s6266_s0 + $0x250] sm:$0xff] }
  0xd0   :  { %v1513_v2 = vsel %vm366_vm3, %v1511_v11, %v6450_v60  ;;  %v629_v9 = vmul.f32 0.75, %v6448_v4  ;;  %v661_v8 = vadd.f32 %v641_v33, %v613_v47  ;;  %v619_v52 = vmul.f32 0.125, %v6454_v26  ;;  %v6456_v4 = vld [vmem:[#allocation16_spill] sm:$0xff] }
  0xd1   :  { %v1546_v30 = vsub.f32 %v3267_v25, %v1513_v2  ;;  %v1516_v20 = vsel %vm366_vm3, %v1514_v51, %v6452_v40  ;;  %v1517_v11 = vrot.slane %v1457_v42, 1  ;;  %v643_v32 = vadd.f32 %v627_v49, %v611_v43  ;;  %v6455_v51 = vld [vmem:[#allocation18_spill] sm:$0xff]  ;;  %v3269_v43 = vld [vmem:[%s6266_s0 + $0x260] sm:$0xff] }
  0xd2   :  { %v1548_v19 = vsub.f32 %v3268_v59, %v1516_v20  ;;  %v645_v5 = vadd.f32 %v629_v9, %v613_v47  ;;  %v631_v10 = vmul.f32 0.75, %v6453_v6  ;;  %v621_v36 = vmul.f32 0.125, %v6455_v51 }
  0xd3   :  { %1563 = vst.msk [vmem:[#allocation3 + $0x240] sm:$0xfe] %vm925_vm6, %v1546_v30  ;;  %v6457_v60 = vrot.slane %v6456_v4, 1  ;;  %v663_v25 = vadd.f32 %v643_v32, %v615_v27  ;;  %v633_v49 = vmul.f32 0.75, %v6454_v26  ;;  %v623_v20 = vmul.f32 0.125, %v4405_v58 }
  0xd4   :  { %1565 = vst.msk [vmem:[#allocation3 + $0x250] sm:$0xfe] %vm925_vm6, %v1548_v19  ;;  %v665_v33 = vadd.f32 %v645_v5, %v617_v46  ;;  %v647_v47 = vadd.f32 %v631_v10, %v615_v27  ;;  %v635_v6 = vmul.f32 0.75, %v6455_v51  ;;  %v637_v9 = vmul.f32 0.75, %v4405_v58 }
  0xd5   :  { %v1519_v2 = vsel %vm366_vm3, %v1517_v11, %v6457_v60  ;;  %v649_v54 = vadd.f32 %v633_v49, %v617_v46  ;;  %v657_v59 = vmul.f32 0.125, %v4407_v13  ;;  %v639_v11 = vmul.f32 0.75, %v4407_v13  ;;  %v587_v49 = vld [vmem:[#allocation2] sm:$0xff] }
  0xd6   :  { %v1550_v42 = vsub.f32 %v3269_v43, %v1519_v2  ;;  %v667_v30 = vadd.f32 %v647_v47, %v619_v52  ;;  %v651_v19 = vadd.f32 %v635_v6, %v619_v52  ;;  %v653_v32 = vadd.f32 %v637_v9, %v621_v36 }
  0xd7   :  { %v669_v40 = vadd.f32 %v649_v54, %v621_v36  ;;  %v659_v27 = vmul.f32 0.125, %v4409_v23  ;;  %v943_v5 = vmul.f32 0.5, %v661_v8  ;;  %v655_v10 = vadd.f32 %v639_v11, %v623_v20  ;;  %v3279_v54 = vld [vmem:[%s6266_s0 + $0xc0] sm:$0xff] }
  0xd8   :  { %1567 = vst.msk [vmem:[#allocation3 + $0x260] sm:$0xfe] %vm925_vm6, %v1550_v42  ;;  %v671_v26 = vadd.f32 %v651_v19, %v623_v20  ;;  %v945_v4 = vmul.f32 0.5, %v663_v25  ;;  %v673_v46 = vadd.f32 %v657_v59, %v653_v32  ;;  %v947_v2 = vmul.f32 0.5, %v665_v33  ;;  %v3275_v25 = vld [vmem:[%s6266_s0 + $0xb0] sm:$0xff] }
  0xd9   :  { %v975_v60 = vrot.slane %v943_v5, 1  ;;  %v675_v43 = vadd.f32 %v659_v27, %v655_v10  ;;  %v949_v47 = vmul.f32 0.5, %v667_v30  ;;  %v2521_v19 = vmul.f32 0.0625, %v587_v49  ;;  %v3289_v49 = vld [vmem:[%s6266_s0 + $0x120] sm:$0xff] }
  0xda   :  { %v978_v42 = vrot.slane %v945_v4, 1  ;;  %v981_v36 = vrot.slane %v947_v2, 1  ;;  %v953_v6 = vmul.f32 0.5, %v671_v26  ;;  %vm2701_vm7 = vcmask 59394  }
  0xdb   :  { %v977_v58 = vsel %vm366_vm3, %v975_v60, %v976_v28  ;;  %v951_v28 = vmul.f32 0.5, %v669_v40  ;;  %v955_v40 = vmul.f32 0.5, %v673_v46  ;;  %v957_v9 = vmul.f32 0.5, %v675_v43 }
  0xdc   :  { %v1015_v51 = vadd.f32 %v977_v58, %v943_v5  ;;  %v980_v13 = vsel %vm366_vm3, %v978_v42, %v979_v24  ;;  %v983_v16 = vsel %vm366_vm3, %v981_v36, %v982_v15  ;;  %v990_v59 = vrot.slane %v953_v6, 1  ;;  %v3283_v42 = vld [vmem:[#allocation2 + $0x30] sm:$0xff] }
  0xdd   :  { %v1017_v23 = vadd.f32 %v980_v13, %v945_v4  ;;  %v1019_v0 = vadd.f32 %v983_v16, %v947_v2  ;;  %v987_v30 = vrot.slane %v951_v28, 1  ;;  %v993_v27 = vrot.slane %v955_v40, 1  ;;  %v3281_v2 = vld [vmem:[#allocation2 + $0x20] sm:$0xff] }
  0xde   :  { %v1068_v52 = vrot.slane %v1015_v51, 1  ;;  %v996_v21 = vrot.slane %v957_v9, 1  ;;  %v992_v3 = vsel %vm366_vm3, %v990_v59, %v991_v55  ;;  %v6458_v46 = vrot.slane %v4534_v39, 1  ;;  %v3284_v39 = vld [vmem:[%s6266_s0 + $0xf0] sm:$0xff] }
  0xdf   :  { %v1071_v17 = vrot.slane %v1017_v23, 1  ;;  %v1074_v61 = vrot.slane %v1019_v0, 1  ;;  %v1025_v4 = vadd.f32 %v992_v3, %v953_v6  ;;  %v995_v38 = vsel %vm366_vm3, %v993_v27, %v994_v18  ;;  %v3288_v0 = vld [vmem:[%s6266_s0 + $0x110] sm:$0xff]  ;;  %v4834_v6 = vld [vmem:[#allocation2 + $0x48] sm:$0xf] }
  0xe0   :  { %v1070_v8 = vsel %vm366_vm3, %v1068_v52, %v1069_v12  ;;  %v984_v12 = vrot.slane %v949_v47, 1  ;;  %v1027_v60 = vadd.f32 %v995_v38, %v955_v40  ;;  %v6459_v18 = vrot.slane %v4546_v44, 1 }
  0xe1   :  { %v1108_v33 = vsub.f32 %v3275_v25, %v1070_v8  ;;  %v1073_v24 = vsel %vm366_vm3, %v1071_v17, %v1072_v53  ;;  %v989_v53 = vsel %vm366_vm3, %v987_v30, %v988_v7  ;;  %v1076_v11 = vsel %vm366_vm3, %v1074_v61, %v1075_v22  ;;  %v4802_v25 = vld [vmem:[#allocation2 + $0x40] sm:$0xff]  ;;  %v4807_v17 = vld [vmem:[#allocation2 + $0x28] sm:$0xf] }
  0xe2   :  { %v1110_v20 = vsub.f32 %v3279_v54, %v1073_v24  ;;  %v986_v15 = vsel %vm366_vm3, %v984_v12, %v985_v48  ;;  %v1023_v32 = vadd.f32 %v989_v53, %v951_v28  ;;  %v3280_v48 = vld [vmem:[%s6266_s0 + $0xd0] sm:$0xff]  ;;  %v2527_v7 = vadd.f32 %v4694_v63, %v2521_v19 }
  0xe3   :  { %1125 = vst.msk [vmem:[#allocation3 + $0xb0] sm:$0xfe] %vm925_vm6, %v1108_v33  ;;  %v1021_v34 = vadd.f32 %v986_v15, %v949_v47  ;;  %v1112_v5 = vsub.f32 %v3280_v48, %v1076_v11  ;;  %v998_v22 = vsel %vm366_vm3, %v996_v21, %v997_v37  ;;  %v2531_v63 = vmul.f32 0.375, %v3281_v2 }
  0xe4   :  { %1127 = vst.msk [vmem:[#allocation3 + $0xc0] sm:$0xfe] %vm925_vm6, %v1110_v20  ;;  %v1080_v10 = vrot.slane %v1023_v32, 1  ;;  %v1029_v55 = vadd.f32 %v998_v22, %v957_v9  ;;  %v1083_v37 = vrot.slane %v1025_v4, 1  ;;  %v4792_v58 = vmul.f32 0.25, %v3283_v42 }
  0xe5   :  { %v1077_v26 = vrot.slane %v1021_v34, 1  ;;  %1129 = vst.msk [vmem:[#allocation3 + $0xd0] sm:$0xfe] %vm925_vm6, %v1112_v5  ;;  %v1086_v13 = vrot.slane %v1027_v60, 1  ;;  %v2533_v23 = vadd.f32 %v2531_v63, %v2527_v7  ;;  %v2525_v8 = vmul.f32 -0.25, %v4662_v45  ;;  %v3287_v45 = vld [vmem:[%s6266_s0 + $0x100] sm:$0xff] }
  0xe6   :  { %v1082_v31 = vsel %vm366_vm3, %v1080_v10, %v6459_v18  ;;  %v1089_v52 = vrot.slane %v1029_v55, 1  ;;  %v6460_v44 = vrot.slane %v4579_v29, 1  ;;  %v4805_v33 = vmul.f32 0.0625, %v4802_v25  ;;  %v3290_v20 = vld [vmem:[#allocation2 + $0x38] sm:$0xf] }
  0xe7   :  { %v1079_v1 = vsel %vm366_vm3, %v1077_v26, %v6458_v46  ;;  %v1116_v51 = vsub.f32 %v3284_v39, %v1082_v31  ;;  %v2532_v47 = vmul.f32 0.375, %v4807_v17  ;;  %v1088_v29 = vsel %vm366_vm3, %v1086_v13, %v1087_v50 }
  0xe8   :  { %v1114_v43 = vsub.f32 %v3282_v57, %v1079_v1  ;;  %v1085_v36 = vsel %vm366_vm3, %v1083_v37, %v6460_v44  ;;  %v1091_v28 = vsel %vm366_vm3, %v1089_v52, %v1090_v56  ;;  %v2541_v24 = vadd.f32 %v4792_v58, %v2533_v23 }
  0xe9   :  { %1133 = vst.msk [vmem:[#allocation3 + $0xf0] sm:$0xfe] %vm925_vm6, %v1116_v51  ;;  %v1118_v16 = vsub.f32 %v3287_v45, %v1085_v36  ;;  %v1120_v12 = vsub.f32 %v3288_v0, %v1088_v29  ;;  %v1122_v54 = vsub.f32 %v3289_v49, %v1091_v28  ;;  %v2534_v62 = vadd.f32 %v2532_v47, %v4481_v35 }
  0xea   :  { %1131 = vst.msk [vmem:[#allocation3 + $0xe0] sm:$0xfe] %vm925_vm6, %v1114_v43  ;;  %v4828_v50 = vmul.f32 0.25, %v3290_v20  ;;  %v4830_v30 = vmul.f32 0.0625, %v3291_v41  ;;  %v2547_v56 = vadd.f32 %v4805_v33, %v2541_v24  ;;  %v4837_v61 = vmul.f32 0.0625, %v4834_v6 }
  0xeb   :  { %1135 = vst.msk [vmem:[#allocation3 + $0x100] sm:$0xfe] %vm925_vm6, %v1118_v16  ;;  %1137 = vst.msk [vmem:[#allocation3 + $0x110] sm:$0xfe] %vm925_vm6, %v1120_v12  ;;  %v2529_v15 = vadd.f32 %v2525_v8, %v2521_v19  ;;  %v4842_v40 = vmul.f32 -0.25, %v3283_v42  ;;  %v2536_v9 = vadd.f32 %v2532_v47, %v4666_v14  ;;  %vm2726_vm8 = vcmask 61444  }
  0xec   :  { %1139 = vst.msk [vmem:[#allocation3 + $0x120] sm:$0xfe] %vm925_vm6, %v1122_v54  ;;  %v2542_v35 = vadd.f32 %v4828_v50, %v2534_v62  ;;  %v2625_v34 = vmul.f32 0.0625, %v2547_v56  ;;  %v2629_v53 = vmul.f32 0.25, %v2547_v56  ;;  %v2649_v59 = vmul.f32 0.375, %v2547_v56 }
  0xed   :  { %v2780_v11 = vmul.f32 -0.25, %v2547_v56  ;;  %v2535_v27 = vadd.f32 %v2531_v63, %v2529_v15  ;;  %v4846_v21 = vmul.f32 -0.25, %v3290_v20  ;;  %v4848_v48 = vmul.f32 0.0625, %v3281_v2 }
  0xee   :  { %v2548_v32 = vadd.f32 %v4837_v61, %v2542_v35  ;;  %v2637_v5 = vrot.slane %v2629_v53, 1  ;;  %v2657_v26 = vrot.slane %v2649_v59, 2  ;;  %v2669_v19 = vrot.slane %v2629_v53, 3 }
  0xef   :  { %v2685_v3 = vrot.slane %v2625_v34, 4  ;;  %vm2775_vm9 = vcmask 63494   ;;  %v2788_v4 = vrot.slane %v2780_v11, 1  ;;  %v2804_v22 = vrot.slane %v2780_v11, 3  ;;  %v4895_v11 = vld [vmem:[#allocation2 + $0x50] sm:$0xff] }
  0xf0   :  { %v2706_v7 = vmul.f32 0.0625, %v2548_v32  ;;  %v2731_v14 = vmul.f32 0.375, %v2548_v32  ;;  %v2751_v10 = vmul.f32 0.25, %v2548_v32  ;;  %v2645_v38 = vadd.f32 %v2637_v5, %v2625_v34 }
  0xf1   :  { %v2840_v46 = vmul.f32 -0.25, %v2548_v32  ;;  %v2543_v1 = vadd.f32 %v4842_v40, %v2535_v27  ;;  %v2796_v57 = vadd.f32 %v2788_v4, %v2625_v34  ;;  %v2544_v31 = vadd.f32 %v4846_v21, %v2536_v9 }
  0xf2   :  { %v2714_v60 = vrot.slane %v2706_v7, 4  ;;  %v2739_v55 = vrot.slane %v2731_v14, 2  ;;  %v2759_v63 = vrot.slane %v2751_v10, 3  ;;  %v2665_v2 = vadd.f32 %v2657_v26, %v2645_v38  ;;  %v3294_v10 = vld [vmem:[#allocation2 + $0x60] sm:$0xff] }
  0xf3   :  { %v2848_v43 = vrot.slane %v2840_v46, 3  ;;  %v2549_v18 = vadd.f32 %v4805_v33, %v2543_v1  ;;  %v2800_v42 = vadd.f32 %v2796_v57, %v2657_v26  ;;  %v2553_v51 = vadd.f32 %v4848_v48, %v4792_v58 }
  0xf4   :  { %v2747_v37 = vadd.f32 %v2739_v55, %v2645_v38  ;;  %v2836_v39 = vadd.f32 %v2796_v57, %v2739_v55  ;;  %v2677_v13 = vadd.f32 %v2669_v19, %v2665_v2  ;;  %v2550_v45 = vadd.f32 %v4837_v61, %v2544_v31 }
  0xf5   :  { %v4855_v52 = vmul.f32 0.0625, %v2549_v18  ;;  %v2872_v23 = vmul.f32 0.25, %v2549_v18  ;;  %v2892_v8 = vmul.f32 0.375, %v2549_v18  ;;  %v2812_v36 = vadd.f32 %v2804_v22, %v2800_v42  ;;  %v3296_v42 = vld [vmem:[#allocation2 + $0x80] sm:$0xff] }
  0xf6   :  { %v2767_v44 = vadd.f32 %v2759_v63, %v2747_v37  ;;  %v2856_v47 = vadd.f32 %v2848_v43, %v2836_v39  ;;  %v2693_v16 = vadd.f32 %v2685_v3, %v2677_v13  ;;  %v2722_v29 = vadd.f32 %v2714_v60, %v2677_v13  ;;  %v4905_v63 = vld [vmem:[#allocation2 + $0x70] sm:$0xff] }
  0xf7   :  { %v2880_v28 = vrot.slane %v2872_v23, 1  ;;  %v2900_v24 = vrot.slane %v2892_v8, 2  ;;  %v2816_v12 = vadd.f32 %v2812_v36, %v2685_v3  ;;  %v2828_v49 = vadd.f32 %v2812_v36, %v2714_v60 }
  0xf8   :  { %v2771_v0 = vadd.f32 %v2767_v44, %v2714_v60  ;;  %v2860_v54 = vadd.f32 %v2856_v47, %v2714_v60  ;;  %2697 = vst.msk [vmem:[%s6267_s1] sm:$0x1] %vm927_vm5, %v2693_v16  ;;  %v2912_v62 = vrot.slane %v2872_v23, 3  ;;  %v2928_v20 = vrot.slane %v4855_v52, 4 }
  0xf9   :  { %2702 = vst.msk [vmem:[%s6267_s1 - $0x1] sm:$0x4] %vm2701_vm7, %v2693_v16  ;;  %v2888_v58 = vadd.f32 %v2880_v28, %v4855_v52  ;;  %v2949_v41 = vmul.f32 0.0625, %v2550_v45  ;;  %2824 = vst.msk [vmem:[%s6268_s2 - $0x1] sm:$0x4] %vm2701_vm7, %v2816_v12  ;;  %v2973_v56 = vmul.f32 0.375, %v2550_v45 }
  0xfa   :  { %2727 = vst.msk [vmem:[%s6267_s1 - $0x2] sm:$0x10] %vm2726_vm8, %v2722_v29  ;;  %2832 = vst.msk [vmem:[%s6268_s2 - $0x2] sm:$0x10] %vm2726_vm8, %v2828_v49  ;;  %v2993_v35 = vmul.f32 0.25, %v2550_v45  ;;  %v3021_v15 = vmul.f32 -0.25, %v2549_v18 }
  0xfb   :  { %2776 = vst.msk [vmem:[%s6267_s1 - $0x3] sm:$0x40] %vm2775_vm9, %v2771_v0  ;;  %2864 = vst.msk [vmem:[%s6268_s2 - $0x3] sm:$0x40] %vm2775_vm9, %v2860_v54  ;;  %v3082_v9 = vmul.f32 -0.25, %v2550_v45  ;;  %v2908_v34 = vadd.f32 %v2900_v24, %v2888_v58  ;;  %v2957_v53 = vrot.slane %v2949_v41, 4 }
  0xfc   :  { %2820 = vst.msk [vmem:[%s6268_s2] sm:$0x1] %vm927_vm5, %v2816_v12  ;;  %v4893_v59 = vmul.f32 0.375, %v4802_v25  ;;  %v2563_v32 = vmul.f32 0.25, %v4895_v11  ;;  %v2981_v27 = vrot.slane %v2973_v56, 2  ;;  %v3001_v5 = vrot.slane %v2993_v35, 3 }
  0xfd   :  { %v3029_v26 = vrot.slane %v3021_v15, 1  ;;  %v3045_v19 = vrot.slane %v3021_v15, 3  ;;  %v2920_v3 = vadd.f32 %v2912_v62, %v2908_v34  ;;  %v3090_v7 = vrot.slane %v3082_v9, 3  ;;  %v4969_v56 = vld [vmem:[#allocation2 + $0x90] sm:$0xff]  ;;  %v3298_v9 = vld [vmem:[#allocation2 + $0xa0] sm:$0xff] }
  0xfe   :  { %v2559_v14 = vadd.f32 %v4893_v59, %v2553_v51  ;;  %v4899_v4 = vmul.f32 0.0625, %v3294_v10  ;;  %v2989_v38 = vadd.f32 %v2981_v27, %v2888_v58  ;;  %v2577_v25 = vadd.f32 %v2563_v32, %v4805_v33 }
  0xff   :  { %v3037_v22 = vadd.f32 %v3029_v26, %v4855_v52  ;;  %v4903_v46 = vmul.f32 0.375, %v3294_v10  ;;  %v2936_v1 = vadd.f32 %v2928_v20, %v2920_v3  ;;  %v2965_v60 = vadd.f32 %v2957_v53, %v2920_v3  ;;  %v4990_v10 = vld [vmem:[#allocation2 + $0x58] sm:$0xf] }
 0x100   :  { %v2567_v55 = vadd.f32 %v2563_v32, %v2559_v14  ;;  %v2587_v57 = vmul.f32 0.25, %v4905_v63  ;;  %v3009_v2 = vadd.f32 %v3001_v5, %v2989_v38  ;;  %v4924_v39 = vmul.f32 0.0625, %v3296_v42  ;;  %v3300_v38 = vld [vmem:[#allocation2 + $0x68] sm:$0xf] }
 0x101   :  { %v3041_v43 = vadd.f32 %v3037_v22, %v2900_v24  ;;  %v3078_v18 = vadd.f32 %v3037_v22, %v2981_v27  ;;  %v2583_v31 = vadd.f32 %v4903_v46, %v2577_v25  ;;  %3210 = vst.msk [vmem:[%s6268_s2 + $0x10] sm:$0x1] %vm927_vm5, %v2936_v1  ;;  %v4927_v13 = vmul.f32 0.375, %v3296_v42 }
 0x102   :  { %3214 = vst.msk [vmem:[%s6268_s2 + $0xf] sm:$0x4] %vm2701_vm7, %v2936_v1  ;;  %v4922_v37 = vadd.f32 %v4899_v4, %v2567_v55  ;;  %v2601_v51 = vadd.f32 %v2587_v57, %v4899_v4  ;;  %v3013_v52 = vadd.f32 %v3009_v2, %v2957_v53  ;;  %v2611_v35 = vmul.f32 0.25, %v4969_v56  ;;  %v5000_v1 = vld [vmem:[#allocation2 + $0x78] sm:$0xf] }
 0x103   :  { %3218 = vst.msk [vmem:[%s6268_s2 + $0xe] sm:$0x10] %vm2726_vm8, %v2965_v60  ;;  %v3053_v23 = vadd.f32 %v3045_v19, %v3041_v43  ;;  %v3098_v8 = vadd.f32 %v3090_v7, %v3078_v18  ;;  %v2591_v44 = vadd.f32 %v2587_v57, %v2583_v31  ;;  %v4975_v34 = vmul.f32 0.0625, %v3298_v9  ;;  %v3302_v18 = vld [vmem:[#allocation2 + $0x88] sm:$0xf] }
 0x104   :  { %v4930_v36 = vmul.f32 0.0625, %v4922_v37  ;;  %v2630_v47 = vmul.f32 0.25, %v4922_v37  ;;  %v4934_v45 = vmul.f32 0.375, %v4922_v37  ;;  %v2607_v16 = vadd.f32 %v4927_v13, %v2601_v51  ;;  %3222 = vst.msk [vmem:[%s6268_s2 + $0xd] sm:$0x40] %vm2775_vm9, %v3013_v52 }
 0x105   :  { %v3057_v29 = vadd.f32 %v3053_v23, %v2928_v20  ;;  %v3070_v28 = vadd.f32 %v3053_v23, %v2957_v53  ;;  %v3102_v24 = vadd.f32 %v3098_v8, %v2957_v53  ;;  %v4942_v0 = vadd.f32 %v4924_v39, %v2591_v44 }
 0x106   :  { %v2638_v12 = vrot.slane %v2630_v47, 1  ;;  %v2658_v49 = vrot.slane %v4934_v45, 2  ;;  %v2670_v54 = vrot.slane %v2630_v47, 3  ;;  %v6326_v58 = vrot.slane %v4930_v36, 4 }
 0x107   :  { %3226 = vst.msk [vmem:[%s6268_s2 + $0x20] sm:$0x1] %vm927_vm5, %v3057_v29  ;;  %v4963_v62 = vmul.f32 0.0625, %v4942_v0  ;;  %v2631_v20 = vmul.f32 0.25, %v4942_v0  ;;  %v4967_v41 = vmul.f32 0.375, %v4942_v0  ;;  %v4978_v53 = vmul.f32 0.0625, %v4807_v17 }
 0x108   :  { %3230 = vst.msk [vmem:[%s6268_s2 + $0x1f] sm:$0x4] %vm2701_vm7, %v3057_v29  ;;  %v4973_v15 = vadd.f32 %v2638_v12, %v4930_v36  ;;  %v4981_v32 = vmul.f32 0.375, %v4834_v6  ;;  %v2615_v7 = vadd.f32 %v2611_v35, %v2607_v16  ;;  %v2564_v17 = vmul.f32 0.25, %v4990_v10 }
 0x109   :  { %3234 = vst.msk [vmem:[%s6268_s2 + $0x1e] sm:$0x10] %vm2726_vm8, %v3070_v28  ;;  %v2639_v27 = vrot.slane %v2631_v20, 1  ;;  %v2659_v5 = vrot.slane %v4967_v41, 2  ;;  %v2671_v26 = vrot.slane %v2631_v20, 3  ;;  %v6324_v19 = vrot.slane %v4963_v62, 4 }
 0x10a   :  { %3238 = vst.msk [vmem:[%s6268_s2 + $0x1d] sm:$0x40] %vm2775_vm9, %v3102_v24  ;;  %v2666_v3 = vadd.f32 %v2658_v49, %v4973_v15  ;;  %v2554_v14 = vadd.f32 %v4978_v53, %v4828_v50  ;;  %v4996_v22 = vmul.f32 0.0625, %v3300_v38  ;;  %v4998_v25 = vmul.f32 0.375, %v3300_v38 }
 0x10b   :  { %v4994_v6 = vadd.f32 %v2639_v27, %v4963_v62  ;;  %v2588_v60 = vmul.f32 0.25, %v5000_v1  ;;  %v2621_v57 = vadd.f32 %v4975_v34, %v2615_v7  ;;  %v2578_v2 = vadd.f32 %v2564_v17, %v4837_v61 }
 0x10c   :  { %v2678_v55 = vadd.f32 %v2670_v54, %v2666_v3  ;;  %v2560_v50 = vadd.f32 %v4981_v32, %v2554_v14  ;;  %v5009_v31 = vmul.f32 0.0625, %v3302_v18  ;;  %v5012_v51 = vmul.f32 0.375, %v3302_v18 }
 0x10d   :  { %v2667_v43 = vadd.f32 %v2659_v5, %v4994_v6  ;;  %v2602_v42 = vadd.f32 %v2588_v60, %v4996_v22  ;;  %v5016_v23 = vmul.f32 0.0625, %v2621_v57  ;;  %v2632_v8 = vmul.f32 0.25, %v2621_v57 }
 0x10e   :  { %v2694_v52 = vadd.f32 %v6326_v58, %v2678_v55  ;;  %v5018_v44 = vmul.f32 0.375, %v2621_v57  ;;  %v2568_v16 = vadd.f32 %v2564_v17, %v2560_v50  ;;  %v2584_v29 = vadd.f32 %v4998_v25, %v2578_v2 }
 0x10f   :  { %v2679_v47 = vadd.f32 %v2671_v26, %v2667_v43  ;;  %v2608_v28 = vadd.f32 %v5012_v51, %v2602_v42  ;;  %v2640_v24 = vrot.slane %v2632_v8, 1  ;;  %v2672_v54 = vrot.slane %v2632_v8, 3  ;;  %v5035_v26 = vld [vmem:[#allocation2 + $0x98] sm:$0xf] }
 0x110   :  { %2698 = vst.msk [vmem:[%s6267_s1 + $0x4] sm:$0x1] %vm927_vm5, %v2694_v52  ;;  %v6325_v12 = vrot.slane %v5018_v44, 2  ;;  %v2688_v20 = vrot.slane %v5016_v23, 4  ;;  %v2574_v9 = vadd.f32 %v4996_v22, %v2568_v16  ;;  %v2592_v27 = vadd.f32 %v2588_v60, %v2584_v29 }
 0x111   :  { %2703 = vst.msk [vmem:[%s6267_s1 + $0x3] sm:$0x4] %vm2701_vm7, %v2694_v52  ;;  %v2695_v35 = vadd.f32 %v6324_v19, %v2679_v47  ;;  %v2612_v3 = vmul.f32 0.25, %v5035_v26  ;;  %v2648_v7 = vadd.f32 %v2640_v24, %v5016_v23  ;;  %v2781_v14 = vmul.f32 -0.25, %v4922_v37 }
 0x112   :  { %v5041_v17 = vmul.f32 -0.25, %v4942_v0  ;;  %v5043_v38 = vmul.f32 -0.25, %v2621_v57  ;;  %v2707_v60 = vmul.f32 0.0625, %v2574_v9  ;;  %v2598_v50 = vadd.f32 %v5009_v31, %v2592_v27 }
 0x113   :  { %2699 = vst.msk [vmem:[%s6267_s1 + $0x8] sm:$0x1] %vm927_vm5, %v2695_v35  ;;  %v2616_v2 = vadd.f32 %v2612_v3, %v2608_v28  ;;  %v2732_v37 = vmul.f32 0.375, %v2574_v9  ;;  %v2668_v0 = vadd.f32 %v6325_v12, %v2648_v7  ;;  %v2752_v57 = vmul.f32 0.25, %v2574_v9 }
 0x114   :  { %2704 = vst.msk [vmem:[%s6267_s1 + $0x7] sm:$0x4] %vm2701_vm7, %v2695_v35  ;;  %v2789_v43 = vrot.slane %v2781_v14, 1  ;;  %v2805_v18 = vrot.slane %v2781_v14, 3  ;;  %v5056_v42 = vrot.slane %v2707_v60, 4  ;;  %v2708_v52 = vmul.f32 0.0625, %v2598_v50 }
 0x115   :  { %v5059_v8 = vadd.f32 %v4830_v30, %v2616_v2  ;;  %v2740_v16 = vrot.slane %v2732_v37, 2  ;;  %v2680_v29 = vadd.f32 %v2672_v54, %v2668_v0  ;;  %v2760_v24 = vrot.slane %v2752_v57, 3 }
 0x116   :  { %v2733_v35 = vmul.f32 0.375, %v2598_v50  ;;  %v2753_v19 = vmul.f32 0.25, %v2598_v50  ;;  %v2723_v28 = vadd.f32 %v5056_v42, %v2678_v55  ;;  %v5062_v27 = vrot.slane %v2708_v52, 4 }
 0x117   :  { %v2709_v3 = vmul.f32 0.0625, %v5059_v8  ;;  %v2748_v12 = vadd.f32 %v2740_v16, %v4973_v15  ;;  %v2696_v14 = vadd.f32 %v2688_v20, %v2680_v29  ;;  %v2734_v2 = vmul.f32 0.375, %v5059_v8 }
 0x118   :  { %v2741_v60 = vrot.slane %v2733_v35, 2  ;;  %v2761_v58 = vrot.slane %v2753_v19, 3  ;;  %2728 = vst.msk [vmem:[%s6267_s1 + $0x2] sm:$0x10] %vm2726_vm8, %v2723_v28  ;;  %v2724_v55 = vadd.f32 %v5062_v27, %v2679_v47  ;;  %v2754_v0 = vmul.f32 0.25, %v5059_v8 }
 0x119   :  { %v5074_v54 = vrot.slane %v2709_v3, 4  ;;  %v2768_v37 = vadd.f32 %v2760_v24, %v2748_v12  ;;  %2700 = vst.msk [vmem:[%s6267_s1 + $0xc] sm:$0x1] %vm927_vm5, %v2696_v14  ;;  %v2742_v19 = vrot.slane %v2734_v2, 2  ;;  %v2797_v47 = vadd.f32 %v2789_v43, %v4930_v36 }
 0x11a   :  { %2705 = vst.msk [vmem:[%s6267_s1 + $0xb] sm:$0x4] %vm2701_vm7, %v2696_v14  ;;  %v2749_v15 = vadd.f32 %v2741_v60, %v4994_v6  ;;  %v2790_v57 = vrot.slane %v5041_v17, 1  ;;  %v2762_v24 = vrot.slane %v2754_v0, 3  ;;  %v2806_v35 = vrot.slane %v5041_v17, 3 }
 0x11b   :  { %2729 = vst.msk [vmem:[%s6267_s1 + $0x6] sm:$0x10] %vm2726_vm8, %v2724_v55  ;;  %v2725_v12 = vadd.f32 %v5074_v54, %v2680_v29  ;;  %v2772_v52 = vadd.f32 %v2768_v37, %v5056_v42  ;;  %v2750_v3 = vadd.f32 %v2742_v19, %v2648_v7  ;;  %v2801_v6 = vadd.f32 %v2797_v47, %v2658_v49 }
 0x11c   :  { %v2769_v28 = vadd.f32 %v2761_v58, %v2749_v15  ;;  %v2798_v43 = vadd.f32 %v2790_v57, %v4963_v62  ;;  %v2791_v29 = vrot.slane %v5043_v38, 1  ;;  %v2807_v58 = vrot.slane %v5043_v38, 3 }
 0x11d   :  { %2730 = vst.msk [vmem:[%s6267_s1 + $0xa] sm:$0x10] %vm2726_vm8, %v2725_v12  ;;  %v2837_v7 = vadd.f32 %v2797_v47, %v2740_v16  ;;  %v2841_v17 = vmul.f32 -0.25, %v2574_v9  ;;  %v2770_v49 = vadd.f32 %v2762_v24, %v2750_v3  ;;  %v2813_v14 = vadd.f32 %v2805_v18, %v2801_v6 }
 0x11e   :  { %2777 = vst.msk [vmem:[%s6267_s1 + $0x1] sm:$0x40] %vm2775_vm9, %v2772_v52  ;;  %v2773_v45 = vadd.f32 %v2769_v28, %v5062_v27  ;;  %v2802_v2 = vadd.f32 %v2798_v43, %v2659_v5  ;;  %v2799_v55 = vadd.f32 %v2791_v29, %v5016_v23  ;;  %v2838_v0 = vadd.f32 %v2798_v43, %v2741_v60  ;;  %v5173_v23 = vld [vmem:[#allocation3 + $0x1e0] sm:$0xff] }
 0x11f   :  { %v2849_v37 = vrot.slane %v2841_v17, 3  ;;  %v2842_v15 = vmul.f32 -0.25, %v2598_v50  ;;  %v2774_v38 = vadd.f32 %v2770_v49, %v5074_v54  ;;  %v6461_v9 = vrot.slane %v4930_v36, 4 }
 0x120   :  { %2778 = vst.msk [vmem:[%s6267_s1 + $0x5] sm:$0x40] %vm2775_vm9, %v2773_v45  ;;  %v2814_v47 = vadd.f32 %v2806_v35, %v2802_v2  ;;  %v2829_v18 = vadd.f32 %v2813_v14, %v5056_v42  ;;  %v6462_v41 = vrot.slane %v5018_v44, 2  ;;  %v2839_v60 = vadd.f32 %v2799_v55, %v2742_v19 }
 0x121   :  { %v2817_v16 = vadd.f32 %v2813_v14, %v6461_v9  ;;  %v2857_v57 = vadd.f32 %v2849_v37, %v2837_v7  ;;  %v2850_v12 = vrot.slane %v2842_v15, 3  ;;  %2779 = vst.msk [vmem:[%s6267_s1 + $0x9] sm:$0x40] %vm2775_vm9, %v2774_v38  ;;  %v6463_v36 = vrot.slane %v4963_v62, 4 }
 0x122   :  { %v2803_v5 = vadd.f32 %v2799_v55, %v6462_v41  ;;  %2833 = vst.msk [vmem:[%s6268_s2 + $0x2] sm:$0x10] %vm2726_vm8, %v2829_v18  ;;  %v2830_v50 = vadd.f32 %v2814_v47, %v5062_v27  ;;  %v2843_v19 = vmul.f32 -0.25, %v5059_v8  ;;  %v2555_v52 = vadd.f32 %v4848_v48, %v4842_v40 }
 0x123   :  { %2821 = vst.msk [vmem:[%s6268_s2 + $0x4] sm:$0x1] %vm927_vm5, %v2817_v16  ;;  %v2818_v44 = vadd.f32 %v2814_v47, %v6463_v36  ;;  %v2861_v35 = vadd.f32 %v2857_v57, %v5056_v42  ;;  %v2858_v28 = vadd.f32 %v2850_v12, %v2838_v0  ;;  %v2565_v3 = vmul.f32 -0.25, %v4895_v11 }
 0x124   :  { %2825 = vst.msk [vmem:[%s6268_s2 + $0x3] sm:$0x4] %vm2701_vm7, %v2817_v16  ;;  %v2815_v24 = vadd.f32 %v2807_v58, %v2803_v5  ;;  %v2851_v40 = vrot.slane %v2843_v19, 3  ;;  %v2561_v48 = vadd.f32 %v4893_v59, %v2555_v52  ;;  %v2589_v11 = vmul.f32 -0.25, %v4905_v63 }
 0x125   :  { %2822 = vst.msk [vmem:[%s6268_s2 + $0x8] sm:$0x1] %vm927_vm5, %v2818_v44  ;;  %v2613_v62 = vmul.f32 -0.25, %v4969_v56  ;;  %v2862_v6 = vadd.f32 %v2858_v28, %v5062_v27  ;;  %v2579_v43 = vadd.f32 %v2565_v3, %v4805_v33  ;;  %v2556_v56 = vadd.f32 %v4978_v53, %v4846_v21 }
 0x126   :  { %2826 = vst.msk [vmem:[%s6268_s2 + $0x7] sm:$0x4] %vm2701_vm7, %v2818_v44  ;;  %v2819_v42 = vadd.f32 %v2815_v24, %v2688_v20  ;;  %v2831_v8 = vadd.f32 %v2815_v24, %v5074_v54  ;;  %v2859_v29 = vadd.f32 %v2851_v40, %v2839_v60  ;;  %v2569_v59 = vadd.f32 %v2565_v3, %v2561_v48 }
 0x127   :  { %2834 = vst.msk [vmem:[%s6268_s2 + $0x6] sm:$0x10] %vm2726_vm8, %v2830_v50  ;;  %v2603_v63 = vadd.f32 %v2589_v11, %v4899_v4  ;;  %v2585_v33 = vadd.f32 %v4903_v46, %v2579_v43  ;;  %v2566_v21 = vmul.f32 -0.25, %v4990_v10  ;;  %v2590_v53 = vmul.f32 -0.25, %v5000_v1 }
 0x128   :  { %2865 = vst.msk [vmem:[%s6268_s2 + $0x1] sm:$0x40] %vm2775_vm9, %v2861_v35  ;;  %2866 = vst.msk [vmem:[%s6268_s2 + $0x5] sm:$0x40] %vm2775_vm9, %v2862_v6  ;;  %v2614_v20 = vmul.f32 -0.25, %v5035_v26  ;;  %v2863_v27 = vadd.f32 %v2859_v29, %v5074_v54  ;;  %v5197_v58 = vadd.f32 %v4899_v4, %v2569_v59  ;;  %v2562_v17 = vadd.f32 %v4981_v32, %v2556_v56 }
 0x129   :  { %2823 = vst.msk [vmem:[%s6268_s2 + $0xc] sm:$0x1] %vm927_vm5, %v2819_v42  ;;  %v2609_v7 = vadd.f32 %v4927_v13, %v2603_v63  ;;  %v2593_v45 = vadd.f32 %v2589_v11, %v2585_v33  ;;  %v2580_v49 = vadd.f32 %v2566_v21, %v4837_v61  ;;  %v2604_v46 = vadd.f32 %v2590_v53, %v4996_v22 }
 0x12a   :  { %2827 = vst.msk [vmem:[%s6268_s2 + $0xb] sm:$0x4] %vm2701_vm7, %v2819_v42  ;;  %v5204_v10 = vmul.f32 -0.25, %v5173_v23  ;;  %v5211_v4 = vmul.f32 0.0625, %v5197_v58  ;;  %v2873_v13 = vmul.f32 0.25, %v5197_v58  ;;  %v5215_v32 = vmul.f32 0.375, %v5197_v58 }
 0x12b   :  { %2835 = vst.msk [vmem:[%s6268_s2 + $0xa] sm:$0x10] %vm2726_vm8, %v2831_v8  ;;  %v2617_v1 = vadd.f32 %v2613_v62, %v2609_v7  ;;  %v5218_v61 = vadd.f32 %v4924_v39, %v2593_v45  ;;  %v2570_v26 = vadd.f32 %v2566_v21, %v2562_v17  ;;  %v2586_v54 = vadd.f32 %v4998_v25, %v2580_v49 }
 0x12c   :  { %2867 = vst.msk [vmem:[%s6268_s2 + $0x9] sm:$0x40] %vm2775_vm9, %v2863_v27  ;;  %v2610_v14 = vadd.f32 %v5012_v51, %v2604_v46  ;;  %v2881_v2 = vrot.slane %v2873_v13, 1  ;;  %v2901_v55 = vrot.slane %v5215_v32, 2  ;;  %v2913_v37 = vrot.slane %v2873_v13, 3 }
 0x12d   :  { %v2929_v0 = vrot.slane %v5211_v4, 4  ;;  %v5225_v15 = vmul.f32 0.0625, %v5218_v61  ;;  %v2874_v38 = vmul.f32 0.25, %v5218_v61  ;;  %v5229_v9 = vmul.f32 0.375, %v5218_v61 }
 0x12e   :  { %v5232_v39 = vadd.f32 %v4975_v34, %v2617_v1  ;;  %v2889_v25 = vadd.f32 %v2881_v2, %v5211_v4  ;;  %v5236_v51 = vadd.f32 %v4996_v22, %v2570_v26  ;;  %v2594_v16 = vadd.f32 %v2590_v53, %v2586_v54 }
 0x12f   :  { %v2618_v47 = vadd.f32 %v2614_v20, %v2610_v14  ;;  %v2882_v18 = vrot.slane %v2874_v38, 1  ;;  %v2902_v41 = vrot.slane %v5229_v9, 2  ;;  %v2914_v5 = vrot.slane %v2874_v38, 3 }
 0x130   :  { %v2930_v57 = vrot.slane %v5225_v15, 4  ;;  %v2909_v12 = vadd.f32 %v2901_v55, %v2889_v25  ;;  %v5243_v60 = vmul.f32 0.0625, %v5232_v39  ;;  %v2875_v34 = vmul.f32 0.25, %v5232_v39 }
 0x131   :  { %v5247_v36 = vmul.f32 0.375, %v5232_v39  ;;  %v2890_v22 = vadd.f32 %v2882_v18, %v5225_v15  ;;  %v2950_v44 = vmul.f32 0.0625, %v5236_v51  ;;  %v2600_v50 = vadd.f32 %v5009_v31, %v2594_v16 }
 0x132   :  { %v2624_v19 = vadd.f32 %v4830_v30, %v2618_v47  ;;  %v2921_v52 = vadd.f32 %v2913_v37, %v2909_v12  ;;  %v2883_v24 = vrot.slane %v2875_v34, 1  ;;  %v2915_v28 = vrot.slane %v2875_v34, 3 }
 0x133   :  { %v2903_v35 = vrot.slane %v5247_v36, 2  ;;  %v2910_v3 = vadd.f32 %v2902_v41, %v2890_v22  ;;  %v2931_v40 = vrot.slane %v5243_v60, 4  ;;  %v5257_v48 = vrot.slane %v2950_v44, 4 }
 0x134   :  { %v2951_v11 = vmul.f32 0.0625, %v2600_v50  ;;  %v2937_v62 = vadd.f32 %v2929_v0, %v2921_v52  ;;  %v2891_v31 = vadd.f32 %v2883_v24, %v5243_v60  ;;  %v2952_v42 = vmul.f32 0.0625, %v2624_v19 }
 0x135   :  { %v2974_v30 = vmul.f32 0.375, %v5236_v51  ;;  %v2922_v8 = vadd.f32 %v2914_v5, %v2910_v3  ;;  %v2966_v6 = vadd.f32 %v5257_v48, %v2921_v52  ;;  %v2994_v29 = vmul.f32 0.25, %v5236_v51 }
 0x136   :  { %v5264_v43 = vrot.slane %v2951_v11, 4  ;;  %3211 = vst.msk [vmem:[%s6268_s2 + $0x14] sm:$0x1] %vm927_vm5, %v2937_v62  ;;  %v2911_v59 = vadd.f32 %v2903_v35, %v2891_v31  ;;  %v5277_v63 = vrot.slane %v2952_v42, 4  ;;  %v2975_v33 = vmul.f32 0.375, %v2600_v50 }
 0x137   :  { %3215 = vst.msk [vmem:[%s6268_s2 + $0x13] sm:$0x4] %vm2701_vm7, %v2937_v62  ;;  %v2982_v56 = vrot.slane %v2974_v30, 2  ;;  %v2938_v21 = vadd.f32 %v2930_v57, %v2922_v8  ;;  %v3002_v20 = vrot.slane %v2994_v29, 3  ;;  %v2995_v27 = vmul.f32 0.25, %v2600_v50 }
 0x138   :  { %3219 = vst.msk [vmem:[%s6268_s2 + $0x12] sm:$0x10] %vm2726_vm8, %v2966_v6  ;;  %v2967_v53 = vadd.f32 %v5264_v43, %v2922_v8  ;;  %v2923_v7 = vadd.f32 %v2915_v28, %v2911_v59  ;;  %v2983_v45 = vrot.slane %v2975_v33, 2  ;;  %v2976_v49 = vmul.f32 0.375, %v2624_v19 }
 0x139   :  { %v2990_v17 = vadd.f32 %v2982_v56, %v2889_v25  ;;  %3212 = vst.msk [vmem:[%s6268_s2 + $0x18] sm:$0x1] %vm927_vm5, %v2938_v21  ;;  %v3003_v46 = vrot.slane %v2995_v27, 3  ;;  %v2996_v13 = vmul.f32 0.25, %v2624_v19  ;;  %v3022_v1 = vmul.f32 -0.25, %v5197_v58 }
 0x13a   :  { %3216 = vst.msk [vmem:[%s6268_s2 + $0x17] sm:$0x4] %vm2701_vm7, %v2938_v21  ;;  %v3023_v26 = vmul.f32 -0.25, %v5218_v61  ;;  %v2939_v54 = vadd.f32 %v2931_v40, %v2923_v7  ;;  %v2968_v14 = vadd.f32 %v5277_v63, %v2923_v7  ;;  %v2991_v37 = vadd.f32 %v2983_v45, %v2890_v22  ;;  %v5337_v21 = vld [vmem:[#allocation3 + $0x140] sm:$0xff]  ;;  %v1604_v7 = vld [vmem:[#allocation3 + $0x1e8] sm:$0x3] }
 0x13b   :  { %3220 = vst.msk [vmem:[%s6268_s2 + $0x16] sm:$0x10] %vm2726_vm8, %v2967_v53  ;;  %v3010_v2 = vadd.f32 %v3002_v20, %v2990_v17  ;;  %v2984_v38 = vrot.slane %v2976_v49, 2  ;;  %v3004_v25 = vrot.slane %v2996_v13, 3  ;;  %v3030_v16 = vrot.slane %v3022_v1, 1 }
 0x13c   :  { %v3046_v47 = vrot.slane %v3022_v1, 3  ;;  %3213 = vst.msk [vmem:[%s6268_s2 + $0x1c] sm:$0x1] %vm927_vm5, %v2939_v54  ;;  %v3011_v61 = vadd.f32 %v3003_v46, %v2991_v37  ;;  %v3031_v18 = vrot.slane %v3023_v26, 1  ;;  %v3047_v5 = vrot.slane %v3023_v26, 3 }
 0x13d   :  { %3217 = vst.msk [vmem:[%s6268_s2 + $0x1b] sm:$0x4] %vm2701_vm7, %v2939_v54  ;;  %v3014_v58 = vadd.f32 %v3010_v2, %v5257_v48  ;;  %v2992_v12 = vadd.f32 %v2984_v38, %v2891_v31  ;;  %v3038_v34 = vadd.f32 %v3030_v16, %v5211_v4  ;;  %v3024_v22 = vmul.f32 -0.25, %v5232_v39  ;;  %v5327_v39 = vld [vmem:[#allocation3 + $0x1f0] sm:$0xff]  ;;  %v5339_v53 = vld [vmem:[#allocation3 + $0x148] sm:$0x3] }
 0x13e   :  { %3221 = vst.msk [vmem:[%s6268_s2 + $0x1a] sm:$0x10] %vm2726_vm8, %v2968_v14  ;;  %v3083_v44 = vmul.f32 -0.25, %v5236_v51  ;;  %v3015_v52 = vadd.f32 %v3011_v61, %v5264_v43  ;;  %v3039_v24 = vadd.f32 %v3031_v18, %v5225_v15  ;;  %v3084_v28 = vmul.f32 -0.25, %v2600_v50  ;;  %v5370_v15 = vld [vmem:[#allocation3 + $0x150] sm:$0xff] }
 0x13f   :  { %3223 = vst.msk [vmem:[%s6268_s2 + $0x11] sm:$0x40] %vm2775_vm9, %v3014_v58  ;;  %v3085_v3 = vmul.f32 -0.25, %v2624_v19  ;;  %v3012_v11 = vadd.f32 %v3004_v25, %v2992_v12  ;;  %v3042_v62 = vadd.f32 %v3038_v34, %v2901_v55  ;;  %v3032_v31 = vrot.slane %v3024_v22, 1  ;;  %v1569_v58 = vld [vmem:[#allocation3 + $0xb0] sm:$0xff] }
 0x140   :  { %v3048_v42 = vrot.slane %v3024_v22, 3  ;;  %3224 = vst.msk [vmem:[%s6268_s2 + $0x15] sm:$0x40] %vm2775_vm9, %v3015_v52  ;;  %v3043_v51 = vadd.f32 %v3039_v24, %v2902_v41  ;;  %v3079_v30 = vadd.f32 %v3038_v34, %v2982_v56  ;;  %v3091_v8 = vrot.slane %v3083_v44, 3  ;;  %v5420_v61 = vld [vmem:[#allocation3 + $0xb8] sm:$0x3] }
 0x141   :  { %v3080_v50 = vadd.f32 %v3039_v24, %v2983_v45  ;;  %v3016_v19 = vadd.f32 %v3012_v11, %v5277_v63  ;;  %v3054_v6 = vadd.f32 %v3046_v47, %v3042_v62  ;;  %v3040_v32 = vadd.f32 %v3032_v31, %v5243_v60 }
 0x142   :  { %v3092_v55 = vrot.slane %v3084_v28, 3  ;;  %v3055_v29 = vadd.f32 %v3047_v5, %v3043_v51  ;;  %v3099_v59 = vadd.f32 %v3091_v8, %v3079_v30  ;;  %v3093_v33 = vrot.slane %v3085_v3, 3 }
 0x143   :  { %v5342_v20 = vmul.f32 -0.25, %v5327_v39  ;;  %3225 = vst.msk [vmem:[%s6268_s2 + $0x19] sm:$0x40] %vm2775_vm9, %v3016_v19  ;;  %v3058_v9 = vadd.f32 %v3054_v6, %v2929_v0  ;;  %v3044_v41 = vadd.f32 %v3040_v32, %v2903_v35  ;;  %v3071_v56 = vadd.f32 %v3054_v6, %v5257_v48 }
 0x144   :  { %v3100_v27 = vadd.f32 %v3092_v55, %v3080_v50  ;;  %v3059_v17 = vadd.f32 %v3055_v29, %v2930_v57  ;;  %v3072_v45 = vadd.f32 %v3055_v29, %v5264_v43  ;;  %v3103_v49 = vadd.f32 %v3099_v59, %v5257_v48  ;;  %v5372_v57 = vld [vmem:[#allocation3 + $0x158] sm:$0x3] }
 0x145   :  { %v3081_v46 = vadd.f32 %v3040_v32, %v2984_v38  ;;  %3227 = vst.msk [vmem:[%s6268_s2 + $0x24] sm:$0x1] %vm927_vm5, %v3058_v9  ;;  %v3056_v4 = vadd.f32 %v3048_v42, %v3044_v41  ;;  %v1629_v36 = vmul.f32 -0.5, %v5337_v21  ;;  %v1630_v35 = vmul.f32 -0.5, %v5339_v53 }
 0x146   :  { %3231 = vst.msk [vmem:[%s6268_s2 + $0x23] sm:$0x4] %vm2701_vm7, %v3058_v9  ;;  %v3104_v0 = vadd.f32 %v3100_v27, %v5264_v43  ;;  %3232 = vst.msk [vmem:[%s6268_s2 + $0x27] sm:$0x4] %vm2701_vm7, %v3059_v17  ;;  %v5392_v43 = vld [vmem:[#allocation3 + $0x1f8] sm:$0x3] }
 0x147   :  { %3235 = vst.msk [vmem:[%s6268_s2 + $0x22] sm:$0x10] %vm2726_vm8, %v3071_v56  ;;  %3236 = vst.msk [vmem:[%s6268_s2 + $0x26] sm:$0x10] %vm2726_vm8, %v3072_v45  ;;  %v3101_v48 = vadd.f32 %v3093_v33, %v3081_v46  ;;  %v1701_v13 = vmul.f32 -0.25, %v1604_v7  ;;  %v1725_v1 = vrot.slane %v5204_v10, 1  ;;  %v3060_v54 = vadd.f32 %v3056_v4, %v2931_v40 }
 0x148   :  { %3228 = vst.msk [vmem:[%s6268_s2 + $0x28] sm:$0x1] %vm927_vm5, %v3059_v17  ;;  %v1765_v26 = vmul.f32 0.25, %v5327_v39  ;;  %v3073_v14 = vadd.f32 %v3056_v4, %v5277_v63  ;;  %v1661_v2 = vrot.slane %v1629_v36, 1  ;;  %v1662_v37 = vrot.slane %v1630_v35, 1  ;;  %v5464_v46 = vld [vmem:[#allocation3 + $0x200] sm:$0xff] }
 0x149   :  { %3239 = vst.msk [vmem:[%s6268_s2 + $0x21] sm:$0x40] %vm2775_vm9, %v3103_v49  ;;  %3240 = vst.msk [vmem:[%s6268_s2 + $0x25] sm:$0x40] %vm2775_vm9, %v3104_v0  ;;  %v3105_v38 = vadd.f32 %v3101_v48, %v5277_v63  ;;  %v1726_v25 = vrot.slane %v1701_v13, 1  ;;  %v1781_v16 = vmul.f32 0.5, %v5370_v15 }
 0x14a   :  { %v1782_v47 = vmul.f32 0.5, %v5372_v57  ;;  %3229 = vst.msk [vmem:[%s6268_s2 + $0x2c] sm:$0x1] %vm927_vm5, %v3060_v54  ;;  %v1663_v60 = vsel %vm366_vm3, %v1661_v2, %v1662_v37  ;;  %v1853_v40 = vmul.f32 0.25, %v5392_v43  ;;  %v1877_v63 = vrot.slane %v1765_v26, 1 }
 0x14b   :  { %3233 = vst.msk [vmem:[%s6268_s2 + $0x2b] sm:$0x4] %vm2701_vm7, %v3060_v54  ;;  %v1925_v18 = vmul.f32 0.25, %v5173_v23  ;;  %v1693_v5 = vadd.f32 %v1663_v60, %v5204_v10  ;;  %v1727_v12 = vsel %vm366_vm3, %v1725_v1, %v1726_v25  ;;  %v1813_v34 = vrot.slane %v1781_v16, 1  ;;  %v5478_v2 = vld [vmem:[#allocation3 + $0x168] sm:$0x3] }
 0x14c   :  { %3237 = vst.msk [vmem:[%s6268_s2 + $0x2a] sm:$0x10] %vm2726_vm8, %v3073_v14  ;;  %v1814_v22 = vrot.slane %v1782_v47, 1  ;;  %v1878_v44 = vrot.slane %v1853_v40, 1  ;;  %v1926_v52 = vmul.f32 0.25, %v1604_v7  ;;  %v1941_v28 = vmul.f32 -0.5, %v1569_v58 }
 0x14d   :  { %3241 = vst.msk [vmem:[%s6268_s2 + $0x29] sm:$0x40] %vm2775_vm9, %v3105_v38  ;;  %v1929_v24 = vrot.slane %v1925_v18, 1  ;;  %v1757_v3 = vadd.f32 %v1727_v12, %v1693_v5  ;;  %v1957_v62 = vmul.f32 0.5, %v1569_v58  ;;  %v1958_v31 = vmul.f32 0.5, %v5420_v61 }
 0x14e   :  { %v1815_v11 = vsel %vm366_vm3, %v1813_v34, %v1814_v22  ;;  %v1879_v42 = vsel %vm366_vm3, %v1877_v63, %v1878_v44  ;;  %v1930_v51 = vrot.slane %v1926_v52, 1  ;;  %v5433_v30 = vmul.f32 -0.5, %v5173_v23  ;;  %v5488_v60 = vld [vmem:[#allocation3 + $0x208] sm:$0x3]  ;;  %v5494_v34 = vld [vmem:[#allocation3 + $0x210] sm:$0xff] }
 0x14f   :  { %v5436_v8 = vmul.f32 -0.25, %v5337_v21  ;;  %v1773_v50 = vadd.f32 %v1765_v26, %v1757_v3  ;;  %v5439_v19 = vadd.f32 %v1879_v42, %v5342_v20  ;;  %v1989_v6 = vrot.slane %v1957_v62, 1 }
 0x150   :  { %v1990_v32 = vrot.slane %v1958_v31, 1  ;;  %v1931_v55 = vsel %vm366_vm3, %v1929_v24, %v1930_v51  ;;  %v5443_v29 = vmul.f32 -0.25, %v5339_v53  ;;  %v5446_v33 = vmul.f32 -0.25, %v1569_v58 }
 0x151   :  { %6464 = vst [vmem:[#allocation4_spill] sm:$0xff] %v5439_v19  ;;  %v2095_v59 = vrot.slane %v5436_v8, 1  ;;  %v1845_v23 = vadd.f32 %v1815_v11, %v1773_v50  ;;  %v1933_v9 = vadd.f32 %v1931_v55, %v5204_v10  ;;  %v5450_v41 = vmul.f32 0.25, %v1569_v58  ;;  %v5486_v58 = vld [vmem:[#allocation3 + $0x160] sm:$0xff]  ;;  %v5760_v19 = vld [vmem:[#allocation3 + $0xd8] sm:$0x3] }
 0x152   :  { %v1991_v21 = vsel %vm366_vm3, %v1989_v6, %v1990_v32  ;;  %v2096_v56 = vrot.slane %v5443_v29, 1  ;;  %v2152_v27 = vmul.f32 0.25, %v5420_v61  ;;  %v5455_v7 = vmul.f32 0.25, %v5370_v15  ;;  %6496 = vst [vmem:[#allocation36_spill] sm:$0xff] %v5760_v19 }
 0x153   :  { %v5458_v53 = vmul.f32 0.25, %v5372_v57  ;;  %v1909_v17 = vadd.f32 %v1879_v42, %v1845_v23  ;;  %v1949_v45 = vadd.f32 %v1941_v28, %v1933_v9  ;;  %v2183_v49 = vrot.slane %v5450_v41, 1  ;;  %v5510_v9 = vld [vmem:[#allocation3 + $0x170] sm:$0xff] }
 0x154   :  { %6465 = vst [vmem:[#allocation6_spill] sm:$0xff] %v5455_v7  ;;  %v5462_v10 = vmul.f32 0.5, %v5327_v39  ;;  %v2097_v4 = vsel %vm366_vm3, %v2095_v59, %v2096_v56  ;;  %v2184_v0 = vrot.slane %v2152_v27, 1  ;;  %v2255_v36 = vrot.slane %v5455_v7, 1 }
 0x155   :  { %6466 = vst [vmem:[#allocation5_spill] sm:$0xff] %v5458_v53  ;;  %v2256_v35 = vrot.slane %v5458_v53, 1  ;;  %1917 = vst.msk [vmem:[%s6269_s3] sm:$0xff] %vm552_vm0, %v1909_v17  ;;  %v2021_v48 = vadd.f32 %v1991_v21, %v1949_v45  ;;  %v2127_v13 = vadd.f32 %v2097_v4, %v5433_v30  ;;  %v2296_v1 = vmul.f32 0.5, %v5392_v43  ;;  %v5515_v45 = vld [vmem:[#allocation3 + $0x178] sm:$0x3] }
 0x156   :  { %v2327_v26 = vrot.slane %v5462_v10, 1  ;;  %v2185_v54 = vsel %vm366_vm3, %v2183_v49, %v2184_v0  ;;  %v5481_v37 = vmul.f32 -0.25, %v5464_v46  ;;  %v1631_v38 = vmul.f32 -0.5, %v5370_v15  ;;  %v5517_v49 = vld [vmem:[#allocation3 + $0x218] sm:$0x3] }
 0x157   :  { %v2257_v14 = vsel %vm366_vm3, %v2255_v36, %v2256_v35  ;;  %v2030_v25 = vadd.f32 %v2021_v48, %v5342_v20  ;;  %v2143_v16 = vadd.f32 %v5446_v33, %v2127_v13  ;;  %v2328_v47 = vrot.slane %v2296_v1, 1  ;;  %6469 = vst [vmem:[#allocation9_spill] sm:$0xff] %v5517_v49 }
 0x158   :  { %6467 = vst [vmem:[#allocation10_spill] sm:$0xff] %v5481_v37  ;;  %v1632_v40 = vmul.f32 -0.5, %v5372_v57  ;;  %v1664_v63 = vrot.slane %v1631_v38, 1  ;;  %v1702_v18 = vmul.f32 -0.25, %v5392_v43  ;;  %v1728_v5 = vrot.slane %v5342_v20, 1 }
 0x159   :  { %v1766_v12 = vmul.f32 0.25, %v5464_v46  ;;  %v2038_v22 = vadd.f32 %v2030_v25, %v1879_v42  ;;  %v2215_v44 = vadd.f32 %v2185_v54, %v2143_v16  ;;  %v2329_v52 = vsel %vm366_vm3, %v2327_v26, %v2328_v47 }
 0x15a   :  { %v1665_v24 = vrot.slane %v1632_v40, 1  ;;  %v1729_v28 = vrot.slane %v1702_v18, 1  ;;  %v1783_v3 = vmul.f32 0.5, %v5486_v58  ;;  %v1784_v11 = vmul.f32 0.5, %v5478_v2 }
 0x15b   :  { %v1854_v62 = vmul.f32 0.25, %v5488_v60  ;;  %3178 = vst.msk [vmem:[%s6269_s3 + $0x40] sm:$0xff] %vm552_vm0, %v2038_v22  ;;  %v2287_v43 = vadd.f32 %v2257_v14, %v2215_v44  ;;  %v1880_v42 = vrot.slane %v1766_v12, 1  ;;  %v5506_v51 = vmul.f32 -0.25, %v5494_v34  ;;  %v5534_v14 = vld [vmem:[#allocation3 + $0x220] sm:$0xff] }
 0x15c   :  { %v1666_v31 = vsel %vm366_vm3, %v1664_v63, %v1665_v24  ;;  %v1730_v6 = vsel %vm366_vm3, %v1728_v5, %v1729_v28  ;;  %v1816_v32 = vrot.slane %v1783_v3, 1  ;;  %v1817_v55 = vrot.slane %v1784_v11, 1  ;;  %v5541_v44 = vld [vmem:[#allocation3 + $0x188] sm:$0x3]  ;;  %v5548_v11 = vld [vmem:[#allocation3 + $0x180] sm:$0xff] }
 0x15d   :  { %6468 = vst [vmem:[#allocation8_spill] sm:$0xff] %v5506_v51  ;;  %v1694_v50 = vadd.f32 %v1666_v31, %v5342_v20  ;;  %v2359_v59 = vadd.f32 %v2329_v52, %v2287_v43  ;;  %v1881_v23 = vrot.slane %v1854_v62, 1  ;;  %v1633_v21 = vmul.f32 -0.5, %v5486_v58  ;;  %v5550_v62 = vld [vmem:[#allocation3 + $0x228] sm:$0x3] }
 0x15e   :  { %v1634_v56 = vmul.f32 -0.5, %v5478_v2  ;;  %v1818_v17 = vsel %vm366_vm3, %v1816_v32, %v1817_v55  ;;  %v1703_v20 = vmul.f32 -0.25, %v5488_v60  ;;  %v1731_v4 = vrot.slane %v5481_v37, 1  ;;  %6473 = vst [vmem:[#allocation12_spill] sm:$0xff] %v5550_v62  ;;  %v5559_v55 = vld [vmem:[#allocation3 + $0x230] sm:$0xff] }
 0x15f   :  { %v1758_v27 = vadd.f32 %v1730_v6, %v1694_v50  ;;  %3186 = vst.msk [vmem:[%s6269_s3 + $0x80] sm:$0xff] %vm552_vm0, %v2359_v59  ;;  %v5526_v0 = vsel %vm366_vm3, %v1880_v42, %v1881_v23  ;;  %v1667_v36 = vrot.slane %v1633_v21, 1  ;;  %v1767_v48 = vmul.f32 0.25, %v5494_v34 }
 0x160   :  { %6470 = vst [vmem:[#allocation7_spill] sm:$0xff] %v5526_v0  ;;  %v1668_v35 = vrot.slane %v1634_v56, 1  ;;  %v5531_v1 = vadd.f32 %v5526_v0, %v5481_v37  ;;  %v1732_v26 = vrot.slane %v1703_v20, 1  ;;  %v1785_v54 = vmul.f32 0.5, %v5510_v9 }
 0x161   :  { %v1774_v13 = vadd.f32 %v1766_v12, %v1758_v27  ;;  %v1786_v25 = vmul.f32 0.5, %v5515_v45  ;;  %v1855_v16 = vmul.f32 0.25, %v5517_v49  ;;  %v1883_v47 = vrot.slane %v1767_v48, 1 }
 0x162   :  { %6471 = vst [vmem:[#allocation11_spill] sm:$0xff] %v5531_v1  ;;  %v1669_v38 = vsel %vm366_vm3, %v1667_v36, %v1668_v35  ;;  %v1733_v18 = vsel %vm366_vm3, %v1731_v4, %v1732_v26  ;;  %v1819_v5 = vrot.slane %v1785_v54, 1  ;;  %v5544_v52 = vmul.f32 -0.25, %v5534_v14 }
 0x163   :  { %v1846_v40 = vadd.f32 %v1818_v17, %v1774_v13  ;;  %v1695_v63 = vadd.f32 %v1669_v38, %v5481_v37  ;;  %v1820_v12 = vrot.slane %v1786_v25, 1  ;;  %v1884_v22 = vrot.slane %v1855_v16, 1 }
 0x164   :  { %6472 = vst [vmem:[#allocation13_spill] sm:$0xff] %v5544_v52  ;;  %v1635_v24 = vmul.f32 -0.5, %v5510_v9  ;;  %v1636_v43 = vmul.f32 -0.5, %v5515_v45  ;;  %v1704_v31 = vmul.f32 -0.25, %v5517_v49  ;;  %v1734_v32 = vrot.slane %v5506_v51, 1 }
 0x165   :  { %v1910_v28 = vadd.f32 %v5526_v0, %v1846_v40  ;;  %v1759_v3 = vadd.f32 %v1733_v18, %v1695_v63  ;;  %v1821_v42 = vsel %vm366_vm3, %v1819_v5, %v1820_v12  ;;  %v5556_v50 = vsel %vm366_vm3, %v1883_v47, %v1884_v22  ;;  %v5580_v40 = vld [vmem:[#allocation3 + $0x190] sm:$0xff]  ;;  %v5585_v22 = vld [vmem:[#allocation3 + $0x198] sm:$0x3] }
 0x166   :  { %6474 = vst [vmem:[#allocation14_spill] sm:$0xff] %v5556_v50  ;;  %v1670_v6 = vrot.slane %v1635_v24, 1  ;;  %v5567_v23 = vadd.f32 %v5556_v50, %v5506_v51  ;;  %v1671_v21 = vrot.slane %v1636_v43, 1  ;;  %v1735_v56 = vrot.slane %v1704_v31, 1  ;;  %v5587_v24 = vld [vmem:[#allocation3 + $0x238] sm:$0x3] }
 0x167   :  { %1918 = vst.msk [vmem:[%s6269_s3 + $0x8] sm:$0xff] %vm552_vm0, %v1910_v28  ;;  %v1775_v59 = vadd.f32 %v1767_v48, %v1759_v3  ;;  %v1768_v27 = vmul.f32 0.25, %v5534_v14  ;;  %v1787_v17 = vmul.f32 0.5, %v5548_v11  ;;  %v1788_v20 = vmul.f32 0.5, %v5541_v44  ;;  %6477 = vst [vmem:[#allocation18_spill] sm:$0xff] %v5587_v24 }
 0x168   :  { %6475 = vst [vmem:[#allocation15_spill] sm:$0xff] %v5567_v23  ;;  %v1856_v4 = vmul.f32 0.25, %v5550_v62  ;;  %v1672_v35 = vsel %vm366_vm3, %v1670_v6, %v1671_v21  ;;  %v1736_v13 = vsel %vm366_vm3, %v1734_v32, %v1735_v56  ;;  %v5576_v48 = vmul.f32 -0.25, %v5559_v55  ;;  %v5686_v23 = vld [vmem:[#allocation3 + $0x1c0] sm:$0xff] }
 0x169   :  { %v1847_v36 = vadd.f32 %v1821_v42, %v1775_v59  ;;  %v1696_v26 = vadd.f32 %v1672_v35, %v5506_v51  ;;  %v1822_v54 = vrot.slane %v1787_v17, 1  ;;  %v1823_v38 = vrot.slane %v1788_v20, 1  ;;  %v5604_v17 = vld [vmem:[#allocation3 + $0x240] sm:$0xff] }
 0x16a   :  { %6476 = vst [vmem:[#allocation17_spill] sm:$0xff] %v5576_v48  ;;  %v1886_v25 = vrot.slane %v1768_v27, 1  ;;  %v1887_v47 = vrot.slane %v1856_v4, 1  ;;  %v1637_v63 = vmul.f32 -0.5, %v5548_v11  ;;  %v1638_v18 = vmul.f32 -0.5, %v5541_v44 }
 0x16b   :  { %v1911_v16 = vadd.f32 %v5556_v50, %v1847_v36  ;;  %v1760_v5 = vadd.f32 %v1736_v13, %v1696_v26  ;;  %v1824_v12 = vsel %vm366_vm3, %v1822_v54, %v1823_v38  ;;  %v1705_v28 = vmul.f32 -0.25, %v5550_v62  ;;  %v5650_v50 = vld [vmem:[#allocation3 + $0x1b0] sm:$0xff] }
 0x16c   :  { %v1737_v3 = vrot.slane %v5544_v52, 1  ;;  %v5596_v43 = vsel %vm366_vm3, %v1886_v25, %v1887_v47  ;;  %v1673_v31 = vrot.slane %v1637_v63, 1  ;;  %v1674_v42 = vrot.slane %v1638_v18, 1 }
 0x16d   :  { %1919 = vst.msk [vmem:[%s6269_s3 + $0x10] sm:$0xff] %vm552_vm0, %v1911_v16  ;;  %6478 = vst [vmem:[#allocation16_spill] sm:$0xff] %v5596_v43  ;;  %v1769_v6 = vmul.f32 0.25, %v5559_v55  ;;  %v1776_v32 = vadd.f32 %v1768_v27, %v1760_v5  ;;  %v5601_v59 = vadd.f32 %v5596_v43, %v5544_v52  ;;  %v1738_v21 = vrot.slane %v1705_v28, 1  ;;  %v5611_v16 = vld [vmem:[#allocation3 + $0x1a8] sm:$0x3] }
 0x16e   :  { %v1789_v56 = vmul.f32 0.5, %v5580_v40  ;;  %v1675_v20 = vsel %vm366_vm3, %v1673_v31, %v1674_v42  ;;  %v1790_v4 = vmul.f32 0.5, %v5585_v22  ;;  %v1857_v36 = vmul.f32 0.25, %v5587_v24  ;;  %v5618_v28 = vld [vmem:[#allocation3 + $0x1a0] sm:$0xff] }
 0x16f   :  { %6479 = vst [vmem:[#allocation19_spill] sm:$0xff] %v5601_v59  ;;  %v1889_v35 = vrot.slane %v1769_v6, 1  ;;  %v1848_v13 = vadd.f32 %v1824_v12, %v1776_v32  ;;  %v1697_v26 = vadd.f32 %v1675_v20, %v5544_v52  ;;  %v1739_v27 = vsel %vm366_vm3, %v1737_v3, %v1738_v21  ;;  %v5620_v12 = vld [vmem:[#allocation3 + $0x248] sm:$0x3]  ;;  %v5629_v20 = vld [vmem:[#allocation3 + $0x250] sm:$0xff] }
 0x170   :  { %v1825_v54 = vrot.slane %v1789_v56, 1  ;;  %v1826_v38 = vrot.slane %v1790_v4, 1  ;;  %v1890_v25 = vrot.slane %v1857_v36, 1  ;;  %v5614_v47 = vmul.f32 -0.25, %v5604_v17  ;;  %6481 = vst [vmem:[#allocation21_spill] sm:$0xff] %v5620_v12 }
 0x171   :  { %v1639_v63 = vmul.f32 -0.5, %v5580_v40  ;;  %v1912_v18 = vadd.f32 %v5596_v43, %v1848_v13  ;;  %v1761_v5 = vadd.f32 %v1739_v27, %v1697_v26  ;;  %v1640_v31 = vmul.f32 -0.5, %v5585_v22 }
 0x172   :  { %6480 = vst [vmem:[#allocation20_spill] sm:$0xff] %v5614_v47  ;;  %v1706_v3 = vmul.f32 -0.25, %v5587_v24  ;;  %v1827_v42 = vsel %vm366_vm3, %v1825_v54, %v1826_v38  ;;  %v5626_v32 = vsel %vm366_vm3, %v1889_v35, %v1890_v25  ;;  %v1740_v56 = vrot.slane %v5576_v48, 1 }
 0x173   :  { %6482 = vst [vmem:[#allocation22_spill] sm:$0xff] %v5626_v32  ;;  %v1676_v21 = vrot.slane %v1639_v63, 1  ;;  %1920 = vst.msk [vmem:[%s6269_s3 + $0x18] sm:$0xff] %vm552_vm0, %v1912_v18  ;;  %v1777_v4 = vadd.f32 %v1769_v6, %v1761_v5  ;;  %v5637_v36 = vadd.f32 %v5626_v32, %v5576_v48  ;;  %v1677_v13 = vrot.slane %v1640_v31, 1 }
 0x174   :  { %v1741_v26 = vrot.slane %v1706_v3, 1  ;;  %v1770_v35 = vmul.f32 0.25, %v5604_v17  ;;  %v1791_v27 = vmul.f32 0.5, %v5618_v28  ;;  %v1792_v54 = vmul.f32 0.5, %v5611_v16 }
 0x175   :  { %6483 = vst [vmem:[#allocation23_spill] sm:$0xff] %v5637_v36  ;;  %v1858_v38 = vmul.f32 0.25, %v5620_v12  ;;  %v1849_v25 = vadd.f32 %v1827_v42, %v1777_v4  ;;  %v1678_v63 = vsel %vm366_vm3, %v1676_v21, %v1677_v13  ;;  %v5646_v6 = vmul.f32 -0.25, %v5629_v20  ;;  %v5655_v4 = vld [vmem:[#allocation3 + $0x1b8] sm:$0x3] }
 0x176   :  { %v1742_v18 = vsel %vm366_vm3, %v1740_v56, %v1741_v26  ;;  %v1698_v5 = vadd.f32 %v1678_v63, %v5576_v48  ;;  %v1828_v31 = vrot.slane %v1791_v27, 1  ;;  %v1829_v3 = vrot.slane %v1792_v54, 1  ;;  %v5657_v13 = vld [vmem:[#allocation3 + $0x258] sm:$0x3] }
 0x177   :  { %6484 = vst [vmem:[#allocation24_spill] sm:$0xff] %v5646_v6  ;;  %v1892_v43 = vrot.slane %v1770_v35, 1  ;;  %v1913_v52 = vadd.f32 %v5626_v32, %v1849_v25  ;;  %v1893_v36 = vrot.slane %v1858_v38, 1  ;;  %v1641_v51 = vmul.f32 -0.5, %v5618_v28  ;;  %6485 = vst [vmem:[#allocation25_spill] sm:$0xff] %v5657_v13 }
 0x178   :  { %v1642_v42 = vmul.f32 -0.5, %v5611_v16  ;;  %v1762_v21 = vadd.f32 %v1742_v18, %v1698_v5  ;;  %v1830_v56 = vsel %vm366_vm3, %v1828_v31, %v1829_v3  ;;  %v1707_v26 = vmul.f32 -0.25, %v5620_v12 }
 0x179   :  { %v1743_v27 = vrot.slane %v5614_v47, 1  ;;  %1921 = vst.msk [vmem:[%s6269_s3 + $0x20] sm:$0xff] %vm552_vm0, %v1913_v52  ;;  %v5666_v54 = vsel %vm366_vm3, %v1892_v43, %v1893_v36  ;;  %v1679_v38 = vrot.slane %v1641_v51, 1  ;;  %v1771_v63 = vmul.f32 0.25, %v5629_v20 }
 0x17a   :  { %6486 = vst [vmem:[#allocation26_spill] sm:$0xff] %v5666_v54  ;;  %v1680_v25 = vrot.slane %v1642_v42, 1  ;;  %v1778_v18 = vadd.f32 %v1770_v35, %v1762_v21  ;;  %v5671_v5 = vadd.f32 %v5666_v54, %v5614_v47  ;;  %v1744_v31 = vrot.slane %v1707_v26, 1  ;;  %v5679_v21 = vld [vmem:[#allocation3 + $0x1c8] sm:$0x3]  ;;  %v5681_v26 = vld [vmem:[#allocation3 + $0x260] sm:$0xff] }
 0x17b   :  { %v1793_v3 = vmul.f32 0.5, %v5650_v50  ;;  %v1794_v48 = vmul.f32 0.5, %v5655_v4  ;;  %v1859_v52 = vmul.f32 0.25, %v5657_v13  ;;  %v1895_v43 = vrot.slane %v1771_v63, 1  ;;  %6488 = vst [vmem:[#allocation28_spill] sm:$0xff] %v5681_v26 }
 0x17c   :  { %6487 = vst [vmem:[#allocation27_spill] sm:$0xff] %v5671_v5  ;;  %v1681_v32 = vsel %vm366_vm3, %v1679_v38, %v1680_v25  ;;  %v1850_v36 = vadd.f32 %v1830_v56, %v1778_v18  ;;  %v1745_v42 = vsel %vm366_vm3, %v1743_v27, %v1744_v31  ;;  %v1643_v59 = vmul.f32 -0.5, %v5650_v50  ;;  %v5688_v56 = vld [vmem:[#allocation3 + $0x268] sm:$0x3] }
 0x17d   :  { %v1699_v51 = vadd.f32 %v1681_v32, %v5614_v47  ;;  %v1831_v35 = vrot.slane %v1793_v3, 1  ;;  %v1832_v0 = vrot.slane %v1794_v48, 1  ;;  %v1896_v5 = vrot.slane %v1859_v52, 1 }
 0x17e   :  { %v1644_v38 = vmul.f32 -0.5, %v5655_v4  ;;  %v1914_v25 = vadd.f32 %v5666_v54, %v1850_v36  ;;  %v1708_v32 = vmul.f32 -0.25, %v5657_v13  ;;  %v1746_v27 = vrot.slane %v5646_v6, 1 }
 0x17f   :  { %v1763_v37 = vadd.f32 %v1745_v42, %v1699_v51  ;;  %v1833_v48 = vsel %vm366_vm3, %v1831_v35, %v1832_v0  ;;  %v5694_v18 = vsel %vm366_vm3, %v1895_v43, %v1896_v5  ;;  %v1682_v31 = vrot.slane %v1643_v59, 1 }
 0x180   :  { %6489 = vst [vmem:[#allocation29_spill] sm:$0xff] %v5694_v18  ;;  %v1683_v3 = vrot.slane %v1644_v38, 1  ;;  %1922 = vst.msk [vmem:[%s6269_s3 + $0x28] sm:$0xff] %vm552_vm0, %v1914_v25  ;;  %v5702_v36 = vadd.f32 %v5694_v18, %v5646_v6  ;;  %v1747_v51 = vrot.slane %v1708_v32, 1  ;;  %v1772_v42 = vmul.f32 0.25, %v5681_v26  ;;  %v5711_v25 = vld [vmem:[#allocation3 + $0xc0] sm:$0xff] }
 0x181   :  { %v1779_v52 = vadd.f32 %v1771_v63, %v1763_v37  ;;  %v1795_v5 = vmul.f32 0.5, %v5686_v23  ;;  %v1796_v59 = vmul.f32 0.5, %v5679_v21  ;;  %v1860_v43 = vmul.f32 0.25, %v5688_v56  ;;  %6491 = vst [vmem:[#allocation31_spill] sm:$0xff] %v5711_v25 }
 0x182   :  { %6490 = vst [vmem:[#allocation30_spill] sm:$0xff] %v5702_v36  ;;  %v1684_v0 = vsel %vm366_vm3, %v1682_v31, %v1683_v3  ;;  %v1748_v37 = vsel %vm366_vm3, %v1746_v27, %v1747_v51  ;;  %v1898_v63 = vrot.slane %v1772_v42, 1  ;;  %v5713_v36 = vld [vmem:[#allocation3 + $0xc8] sm:$0x3]  ;;  %v5716_v31 = vmul.f32 -0.5, %v5327_v39 }
 0x183   :  { %v1851_v35 = vadd.f32 %v1833_v48, %v1779_v52  ;;  %v1700_v38 = vadd.f32 %v1684_v0, %v5646_v6  ;;  %v1834_v54 = vrot.slane %v1795_v5, 1  ;;  %v1835_v32 = vrot.slane %v1796_v59, 1  ;;  %v5758_v6 = vld [vmem:[#allocation3 + $0xd0] sm:$0xff] }
 0x184   :  { %v1899_v47 = vrot.slane %v1860_v43, 1  ;;  %v5720_v48 = vmul.f32 -0.25, %v5370_v15  ;;  %v5723_v52 = vmul.f32 -0.25, %v5372_v57  ;;  %v5730_v0 = vmul.f32 -0.25, %v5711_v25  ;;  %6495 = vst [vmem:[#allocation35_spill] sm:$0xff] %v5758_v6 }
 0x185   :  { %v1915_v3 = vadd.f32 %v5694_v18, %v1851_v35  ;;  %v1764_v1 = vadd.f32 %v1748_v37, %v1700_v38  ;;  %v1836_v27 = vsel %vm366_vm3, %v1834_v54, %v1835_v32  ;;  %v5733_v39 = vmul.f32 0.25, %v5711_v25 }
 0x186   :  { %v5727_v51 = vsel %vm366_vm3, %v1898_v63, %v1899_v47  ;;  %v2098_v57 = vrot.slane %v5720_v48, 1  ;;  %v2099_v5 = vrot.slane %v5723_v52, 1  ;;  %v2154_v54 = vmul.f32 0.25, %v5713_v36 }
 0x187   :  { %6492 = vst [vmem:[#allocation32_spill] sm:$0xff] %v5727_v51  ;;  %1923 = vst.msk [vmem:[%s6269_s3 + $0x30] sm:$0xff] %vm552_vm0, %v1915_v3  ;;  %v1780_v15 = vadd.f32 %v1772_v42, %v1764_v1  ;;  %v2186_v47 = vrot.slane %v5733_v39, 1  ;;  %v5744_v59 = vmul.f32 0.25, %v5486_v58  ;;  %v5747_v43 = vmul.f32 0.25, %v5478_v2 }
 0x188   :  { %v5750_v35 = vmul.f32 0.5, %v5464_v46  ;;  %v2100_v1 = vsel %vm366_vm3, %v2098_v57, %v2099_v5  ;;  %v2187_v42 = vrot.slane %v2154_v54, 1  ;;  %v2298_v37 = vmul.f32 0.5, %v5488_v60 }
 0x189   :  { %6493 = vst [vmem:[#allocation33_spill] sm:$0xff] %v5744_v59  ;;  %6494 = vst [vmem:[#allocation34_spill] sm:$0xff] %v5747_v43  ;;  %v1852_v38 = vadd.f32 %v1836_v27, %v1780_v15  ;;  %v2128_v63 = vadd.f32 %v2100_v1, %v5716_v31  ;;  %v2258_v32 = vrot.slane %v5744_v59, 1  ;;  %v2259_v3 = vrot.slane %v5747_v43, 1 }
 0x18a   :  { %v2330_v18 = vrot.slane %v5750_v35, 1  ;;  %v2188_v27 = vsel %vm366_vm3, %v2186_v47, %v2187_v42  ;;  %v2331_v15 = vrot.slane %v2298_v37, 1  ;;  %v5765_v57 = vmul.f32 -0.5, %v5464_v46 }
 0x18b   :  { %v1916_v25 = vadd.f32 %v5727_v51, %v1852_v38  ;;  %v2144_v5 = vadd.f32 %v5730_v0, %v2128_v63  ;;  %v2260_v54 = vsel %vm366_vm3, %v2258_v32, %v2259_v3  ;;  %v5770_v1 = vmul.f32 -0.25, %v5486_v58 }
 0x18c   :  { %v5773_v43 = vmul.f32 -0.25, %v5478_v2  ;;  %v2332_v47 = vsel %vm366_vm3, %v2330_v18, %v2331_v15  ;;  %v5781_v46 = vmul.f32 -0.25, %v5758_v6  ;;  %v5784_v38 = vmul.f32 0.25, %v5758_v6  ;;  %v5802_v6 = vld [vmem:[#allocation3 + $0xe0] sm:$0xff] }
 0x18d   :  { %1924 = vst.msk [vmem:[%s6269_s3 + $0x38] sm:$0xff] %vm552_vm0, %v1916_v25  ;;  %v2156_v42 = vmul.f32 0.25, %v5760_v19  ;;  %v2216_v58 = vadd.f32 %v2188_v27, %v2144_v5  ;;  %v2101_v37 = vrot.slane %v5770_v1, 1  ;;  %v5790_v63 = vmul.f32 0.25, %v5510_v9  ;;  %6500 = vst [vmem:[#allocation40_spill] sm:$0xff] %v5802_v6 }
 0x18e   :  { %6497 = vst [vmem:[#allocation37_spill] sm:$0xff] %v5773_v43  ;;  %v2102_v2 = vrot.slane %v5773_v43, 1  ;;  %v2189_v25 = vrot.slane %v5784_v38, 1  ;;  %v5794_v18 = vmul.f32 0.25, %v5515_v45  ;;  %v5797_v3 = vmul.f32 0.5, %v5494_v34 }
 0x18f   :  { %6498 = vst [vmem:[#allocation38_spill] sm:$0xff] %v5790_v63  ;;  %v2190_v32 = vrot.slane %v2156_v42, 1  ;;  %v2288_v15 = vadd.f32 %v2260_v54, %v2216_v58  ;;  %v2261_v27 = vrot.slane %v5790_v63, 1  ;;  %v2300_v5 = vmul.f32 0.5, %v5517_v49  ;;  %v5808_v43 = vld [vmem:[#allocation3 + $0xe8] sm:$0x3] }
 0x190   :  { %6499 = vst [vmem:[#allocation39_spill] sm:$0xff] %v5794_v18  ;;  %v2103_v51 = vsel %vm366_vm3, %v2101_v37, %v2102_v2  ;;  %v2262_v42 = vrot.slane %v5794_v18, 1  ;;  %v2333_v19 = vrot.slane %v5797_v3, 1  ;;  %6501 = vst [vmem:[#allocation41_spill] sm:$0xff] %v5808_v43  ;;  %v5811_v58 = vmul.f32 -0.5, %v5494_v34 }
 0x191   :  { %v2129_v53 = vadd.f32 %v2103_v51, %v5765_v57  ;;  %v2191_v59 = vsel %vm366_vm3, %v2189_v25, %v2190_v32  ;;  %v2360_v7 = vadd.f32 %v2332_v47, %v2288_v15  ;;  %v2334_v54 = vrot.slane %v2300_v5, 1 }
 0x192   :  { %v5814_v37 = vmul.f32 -0.25, %v5510_v9  ;;  %v2263_v51 = vsel %vm366_vm3, %v2261_v27, %v2262_v42  ;;  %v5819_v25 = vmul.f32 -0.25, %v5515_v45  ;;  %v5822_v32 = vmul.f32 -0.25, %v5802_v6 }
 0x193   :  { %v2145_v2 = vadd.f32 %v5781_v46, %v2129_v53  ;;  %3187 = vst.msk [vmem:[%s6269_s3 + $0x88] sm:$0xff] %vm552_vm0, %v2360_v7  ;;  %v2335_v34 = vsel %vm366_vm3, %v2333_v19, %v2334_v54  ;;  %v5831_v47 = vmul.f32 0.25, %v5802_v6  ;;  %v2158_v53 = vmul.f32 0.25, %v5808_v43 }
 0x194   :  { %6502 = vst [vmem:[#allocation42_spill] sm:$0xff] %v5814_v37  ;;  %6503 = vst [vmem:[#allocation43_spill] sm:$0xff] %v5819_v25  ;;  %v2104_v9 = vrot.slane %v5814_v37, 1  ;;  %v2105_v45 = vrot.slane %v5819_v25, 1  ;;  %v5836_v27 = vmul.f32 0.25, %v5548_v11  ;;  %v5839_v5 = vmul.f32 0.25, %v5541_v44 }
 0x195   :  { %6504 = vst [vmem:[#allocation44_spill] sm:$0xff] %v5822_v32  ;;  %6505 = vst [vmem:[#allocation45_spill] sm:$0xff] %v5831_v47  ;;  %v2217_v15 = vadd.f32 %v2191_v59, %v2145_v2  ;;  %v2192_v7 = vrot.slane %v5831_v47, 1  ;;  %v2193_v42 = vrot.slane %v2158_v53, 1  ;;  %v5843_v19 = vmul.f32 0.5, %v5534_v14  ;;  %v5849_v25 = vld [vmem:[#allocation3 + $0xf0] sm:$0xff] }
 0x196   :  { %6506 = vst [vmem:[#allocation46_spill] sm:$0xff] %v5836_v27  ;;  %6507 = vst [vmem:[#allocation47_spill] sm:$0xff] %v5839_v5  ;;  %v2302_v54 = vmul.f32 0.5, %v5550_v62  ;;  %v2106_v18 = vsel %vm366_vm3, %v2104_v9, %v2105_v45  ;;  %v2264_v59 = vrot.slane %v5836_v27, 1  ;;  %v2265_v2 = vrot.slane %v5839_v5, 1  ;;  %v5896_v27 = vld [vmem:[#allocation3 + $0x100] sm:$0xff] }
 0x197   :  { %v2289_v6 = vadd.f32 %v2263_v51, %v2217_v15  ;;  %6508 = vst [vmem:[#allocation48_spill] sm:$0xff] %v5849_v25  ;;  %v2130_v63 = vadd.f32 %v2106_v18, %v5811_v58  ;;  %v2194_v43 = vsel %vm366_vm3, %v2192_v7, %v2193_v42  ;;  %v2336_v53 = vrot.slane %v5843_v19, 1  ;;  %v5854_v47 = vld [vmem:[#allocation3 + $0xf8] sm:$0x3]  ;;  %6514 = vst [vmem:[#allocation54_spill] sm:$0xff] %v5896_v27 }
 0x198   :  { %v2337_v49 = vrot.slane %v2302_v54, 1  ;;  %6509 = vst [vmem:[#allocation49_spill] sm:$0xff] %v5854_v47  ;;  %v2266_v51 = vsel %vm366_vm3, %v2264_v59, %v2265_v2  ;;  %v5858_v9 = vmul.f32 -0.5, %v5534_v14  ;;  %v5861_v15 = vmul.f32 -0.25, %v5548_v11 }
 0x199   :  { %v2361_v37 = vadd.f32 %v2335_v34, %v2289_v6  ;;  %v2146_v45 = vadd.f32 %v5822_v32, %v2130_v63  ;;  %v5866_v7 = vmul.f32 -0.25, %v5541_v44  ;;  %v5869_v42 = vmul.f32 -0.25, %v5849_v25  ;;  %v5900_v32 = vld [vmem:[#allocation3 + $0x108] sm:$0x3] }
 0x19a   :  { %v2338_v18 = vsel %vm366_vm3, %v2336_v53, %v2337_v49  ;;  %v2107_v14 = vrot.slane %v5861_v15, 1  ;;  %v5877_v11 = vmul.f32 0.25, %v5849_v25  ;;  %v2160_v6 = vmul.f32 0.25, %v5854_v47  ;;  %6515 = vst [vmem:[#allocation55_spill] sm:$0xff] %v5900_v32 }
 0x19b   :  { %6510 = vst [vmem:[#allocation50_spill] sm:$0xff] %v5866_v7  ;;  %6511 = vst [vmem:[#allocation51_spill] sm:$0xff] %v5869_v42  ;;  %v5881_v49 = vmul.f32 0.25, %v5580_v40  ;;  %v2218_v44 = vadd.f32 %v2194_v43, %v2146_v45  ;;  %v2108_v63 = vrot.slane %v5866_v7, 1  ;;  %v5885_v34 = vmul.f32 0.25, %v5585_v22 }
 0x19c   :  { %3188 = vst.msk [vmem:[%s6269_s3 + $0x90] sm:$0xff] %vm552_vm0, %v2361_v37  ;;  %v5888_v54 = vmul.f32 0.5, %v5559_v55  ;;  %v2195_v37 = vrot.slane %v5877_v11, 1  ;;  %v2196_v59 = vrot.slane %v2160_v6, 1  ;;  %v2304_v53 = vmul.f32 0.5, %v5587_v24 }
 0x19d   :  { %6512 = vst [vmem:[#allocation52_spill] sm:$0xff] %v5881_v49  ;;  %6513 = vst [vmem:[#allocation53_spill] sm:$0xff] %v5885_v34  ;;  %v2267_v2 = vrot.slane %v5881_v49, 1  ;;  %v2290_v25 = vadd.f32 %v2266_v51, %v2218_v44  ;;  %v2109_v5 = vsel %vm366_vm3, %v2107_v14, %v2108_v63  ;;  %v2268_v43 = vrot.slane %v5885_v34, 1 }
 0x19e   :  { %v2339_v45 = vrot.slane %v5888_v54, 1  ;;  %v2131_v7 = vadd.f32 %v2109_v5, %v5858_v9  ;;  %v2197_v47 = vsel %vm366_vm3, %v2195_v37, %v2196_v59  ;;  %v2340_v62 = vrot.slane %v2304_v53, 1 }
 0x19f   :  { %v5903_v6 = vmul.f32 -0.5, %v5559_v55  ;;  %v2362_v49 = vadd.f32 %v2338_v18, %v2290_v25  ;;  %v2269_v51 = vsel %vm366_vm3, %v2267_v2, %v2268_v43  ;;  %v5907_v14 = vmul.f32 -0.25, %v5580_v40 }
 0x1a0   :  { %v5910_v44 = vmul.f32 -0.25, %v5585_v22  ;;  %v2147_v63 = vadd.f32 %v5869_v42, %v2131_v7  ;;  %v2341_v5 = vsel %vm366_vm3, %v2339_v45, %v2340_v62  ;;  %v5915_v37 = vmul.f32 -0.25, %v5896_v27  ;;  %v5946_v42 = vld [vmem:[#allocation3 + $0x118] sm:$0x3] }
 0x1a1   :  { %v5918_v59 = vmul.f32 0.25, %v5896_v27  ;;  %3189 = vst.msk [vmem:[%s6269_s3 + $0x98] sm:$0xff] %vm552_vm0, %v2362_v49  ;;  %v2110_v55 = vrot.slane %v5907_v14, 1  ;;  %v2162_v22 = vmul.f32 0.25, %v5900_v32  ;;  %v5928_v25 = vmul.f32 0.25, %v5618_v28  ;;  %6520 = vst [vmem:[#allocation60_spill] sm:$0xff] %v5946_v42 }
 0x1a2   :  { %6516 = vst [vmem:[#allocation56_spill] sm:$0xff] %v5910_v44  ;;  %v2111_v40 = vrot.slane %v5910_v44, 1  ;;  %v2219_v62 = vadd.f32 %v2197_v47, %v2147_v63  ;;  %v5932_v7 = vmul.f32 0.25, %v5611_v16  ;;  %v5935_v2 = vmul.f32 0.5, %v5604_v17  ;;  %v5943_v44 = vld [vmem:[#allocation3 + $0x110] sm:$0xff] }
 0x1a3   :  { %6517 = vst [vmem:[#allocation57_spill] sm:$0xff] %v5928_v25  ;;  %v2198_v18 = vrot.slane %v5918_v59, 1  ;;  %v2199_v53 = vrot.slane %v2162_v22, 1  ;;  %v2270_v43 = vrot.slane %v5928_v25, 1  ;;  %v2306_v45 = vmul.f32 0.5, %v5620_v12  ;;  %6519 = vst [vmem:[#allocation59_spill] sm:$0xff] %v5943_v44 }
 0x1a4   :  { %6518 = vst [vmem:[#allocation58_spill] sm:$0xff] %v5932_v7  ;;  %v2112_v49 = vsel %vm366_vm3, %v2110_v55, %v2111_v40  ;;  %v2291_v27 = vadd.f32 %v2269_v51, %v2219_v62  ;;  %v2271_v47 = vrot.slane %v5932_v7, 1  ;;  %v2342_v63 = vrot.slane %v5935_v2, 1  ;;  %v5991_v12 = vld [vmem:[#allocation3 + $0x128] sm:$0x3] }
 0x1a5   :  { %v2132_v34 = vadd.f32 %v2112_v49, %v5903_v6  ;;  %v2200_v32 = vsel %vm366_vm3, %v2198_v18, %v2199_v53  ;;  %v2343_v24 = vrot.slane %v2306_v45, 1  ;;  %v5949_v55 = vmul.f32 -0.5, %v5604_v17 }
 0x1a6   :  { %v5952_v40 = vmul.f32 -0.25, %v5618_v28  ;;  %v2363_v51 = vadd.f32 %v2341_v5, %v2291_v27  ;;  %v2272_v62 = vsel %vm366_vm3, %v2270_v43, %v2271_v47  ;;  %v5957_v49 = vmul.f32 -0.25, %v5611_v16 }
 0x1a7   :  { %v2148_v22 = vadd.f32 %v5915_v37, %v2132_v34  ;;  %v2344_v7 = vsel %vm366_vm3, %v2342_v63, %v2343_v24  ;;  %v5962_v53 = vmul.f32 -0.25, %v5943_v44  ;;  %v5965_v17 = vmul.f32 0.25, %v5943_v44 }
 0x1a8   :  { %6521 = vst [vmem:[#allocation61_spill] sm:$0xff] %v5957_v49  ;;  %v2113_v18 = vrot.slane %v5952_v40, 1  ;;  %3190 = vst.msk [vmem:[%s6269_s3 + $0xa0] sm:$0xff] %vm552_vm0, %v2363_v51  ;;  %v2114_v27 = vrot.slane %v5957_v49, 1  ;;  %v2164_v16 = vmul.f32 0.25, %v5946_v42  ;;  %v5974_v24 = vmul.f32 0.25, %v5650_v50 }
 0x1a9   :  { %6522 = vst [vmem:[#allocation62_spill] sm:$0xff] %v5965_v17  ;;  %v2220_v28 = vadd.f32 %v2200_v32, %v2148_v22  ;;  %v2201_v34 = vrot.slane %v5965_v17, 1  ;;  %v5978_v5 = vmul.f32 0.25, %v5655_v4  ;;  %v5981_v43 = vmul.f32 0.5, %v5629_v20  ;;  %v5989_v42 = vld [vmem:[#allocation3 + $0x120] sm:$0xff] }
 0x1aa   :  { %v2308_v45 = vmul.f32 0.5, %v5657_v13  ;;  %v2115_v32 = vsel %vm366_vm3, %v2113_v18, %v2114_v27  ;;  %v2202_v63 = vrot.slane %v2164_v16, 1  ;;  %v2273_v51 = vrot.slane %v5974_v24, 1  ;;  %6524 = vst [vmem:[#allocation64_spill] sm:$0xff] %v5989_v42 }
 0x1ab   :  { %6523 = vst [vmem:[#allocation63_spill] sm:$0xff] %v5978_v5  ;;  %v2292_v47 = vadd.f32 %v2272_v62, %v2220_v28  ;;  %v2133_v22 = vadd.f32 %v2115_v32, %v5949_v55  ;;  %v2274_v44 = vrot.slane %v5978_v5, 1  ;;  %v2345_v25 = vrot.slane %v5981_v43, 1 }
 0x1ac   :  { %v2346_v49 = vrot.slane %v2308_v45, 1  ;;  %v2203_v13 = vsel %vm366_vm3, %v2201_v34, %v2202_v63  ;;  %v5995_v62 = vmul.f32 -0.5, %v5629_v20  ;;  %v5998_v18 = vmul.f32 -0.25, %v5650_v50 }
 0x1ad   :  { %v2364_v17 = vadd.f32 %v2344_v7, %v2292_v47  ;;  %v2149_v28 = vadd.f32 %v5962_v53, %v2133_v22  ;;  %v2275_v27 = vsel %vm366_vm3, %v2273_v51, %v2274_v44  ;;  %v6004_v45 = vmul.f32 -0.25, %v5655_v4 }
 0x1ae   :  { %v2347_v16 = vsel %vm366_vm3, %v2345_v25, %v2346_v49  ;;  %v2116_v20 = vrot.slane %v5998_v18, 1  ;;  %v6012_v7 = vmul.f32 -0.25, %v5989_v42  ;;  %v6015_v50 = vmul.f32 0.25, %v5989_v42 }
 0x1af   :  { %3191 = vst.msk [vmem:[%s6269_s3 + $0xa8] sm:$0xff] %vm552_vm0, %v2364_v17  ;;  %v2166_v44 = vmul.f32 0.25, %v5991_v12  ;;  %v2221_v34 = vadd.f32 %v2203_v13, %v2149_v28  ;;  %v2117_v25 = vrot.slane %v6004_v45, 1  ;;  %v6020_v4 = vmul.f32 0.25, %v5686_v23 }
 0x1b0   :  { %v6023_v49 = vmul.f32 0.25, %v5679_v21  ;;  %v2204_v17 = vrot.slane %v6015_v50, 1  ;;  %v6027_v32 = vmul.f32 0.5, %v5681_v26  ;;  %v2310_v63 = vmul.f32 0.5, %v5688_v56 }
 0x1b1   :  { %v2205_v47 = vrot.slane %v2166_v44, 1  ;;  %v2293_v51 = vadd.f32 %v2275_v27, %v2221_v34  ;;  %v2118_v22 = vsel %vm366_vm3, %v2116_v20, %v2117_v25  ;;  %v2276_v13 = vrot.slane %v6020_v4, 1 }
 0x1b2   :  { %6525 = vst [vmem:[#allocation65_spill] sm:$0xff] %v6023_v49  ;;  %v2277_v28 = vrot.slane %v6023_v49, 1  ;;  %v2134_v23 = vadd.f32 %v2118_v22, %v5995_v62  ;;  %v2348_v42 = vrot.slane %v6027_v32, 1  ;;  %v2349_v5 = vrot.slane %v2310_v63, 1  ;;  %v3304_v22 = vld [vmem:[#allocation3 + $0x1e8] sm:$0x3] }
 0x1b3   :  { %v2206_v21 = vsel %vm366_vm3, %v2204_v17, %v2205_v47  ;;  %v2365_v44 = vadd.f32 %v2347_v16, %v2293_v51  ;;  %v2384_v56 = vadd.f32 %v5436_v8, %v5433_v30  ;;  %v2400_v27 = vrot.slane %v5450_v41, 7 }
 0x1b4   :  { %v2278_v26 = vsel %vm366_vm3, %v2276_v13, %v2277_v28  ;;  %v2150_v20 = vadd.f32 %v6012_v7, %v2134_v23  ;;  %v2350_v34 = vsel %vm366_vm3, %v2348_v42, %v2349_v5  ;;  %v2456_v25 = vrot.slane %v5462_v10, 7  ;;  %v3305_v5 = vld [vmem:[#allocation3 + $0x1f8] sm:$0x3] }
 0x1b5   :  { %v2376_v49 = vmul.f32 -0.5, %v3304_v22  ;;  %3192 = vst.msk [vmem:[%s6269_s3 + $0xb0] sm:$0xff] %vm552_vm0, %v2365_v44  ;;  %v2416_v16 = vadd.f32 %v2400_v27, %v2384_v56  ;;  %v2432_v17 = vmul.f32 -0.25, %v5420_v61  ;;  %v2386_v30 = vadd.f32 %v5720_v48, %v5716_v31 }
 0x1b6   :  { %v2401_v8 = vrot.slane %v5733_v39, 7  ;;  %v2222_v41 = vadd.f32 %v2206_v21, %v2150_v20  ;;  %v2457_v10 = vrot.slane %v5750_v35, 7  ;;  %v2377_v47 = vmul.f32 -0.5, %v3305_v5  ;;  %v6526_v20 = vld [vmem:[#allocation6_spill] sm:$0xff]  ;;  %v6532_v5 = vld [vmem:[#allocation5_spill] sm:$0xff] }
 0x1b7   :  { %v2385_v42 = vadd.f32 %v2376_v49, %v5443_v29  ;;  %v2440_v63 = vadd.f32 %v2416_v16, %v5446_v33  ;;  %v2433_v13 = vmul.f32 -0.25, %v5713_v36  ;;  %v2388_v61 = vadd.f32 %v5770_v1, %v5765_v57  ;;  %v6530_v16 = vld [vmem:[#allocation33_spill] sm:$0xff] }
 0x1b8   :  { %v2418_v51 = vadd.f32 %v2401_v8, %v2386_v30  ;;  %v2294_v28 = vadd.f32 %v2278_v26, %v2222_v41  ;;  %v2387_v31 = vadd.f32 %v2377_v47, %v5723_v52  ;;  %v2402_v48 = vrot.slane %v5784_v38, 7  ;;  %v6527_v26 = vld [vmem:[#allocation37_spill] sm:$0xff] }
 0x1b9   :  { %v2417_v23 = vadd.f32 %v2400_v27, %v2385_v42  ;;  %v2472_v39 = vadd.f32 %v2456_v25, %v2440_v63  ;;  %v2458_v35 = vrot.slane %v5797_v3, 7  ;;  %v2378_v49 = vmul.f32 -0.5, %v5488_v60  ;;  %v6528_v27 = vld [vmem:[#allocation36_spill] sm:$0xff]  ;;  %v6529_v3 = vld [vmem:[#allocation42_spill] sm:$0xff] }
 0x1ba   :  { %v2442_v29 = vadd.f32 %v2418_v51, %v5730_v0  ;;  %v2366_v33 = vadd.f32 %v2350_v34, %v2294_v28  ;;  %v2419_v44 = vadd.f32 %v2401_v8, %v2387_v31  ;;  %v2420_v56 = vadd.f32 %v2402_v48, %v2388_v61  ;;  %v6531_v8 = vld [vmem:[#allocation45_spill] sm:$0xff]  ;;  %v6536_v31 = vld [vmem:[#allocation38_spill] sm:$0xff] }
 0x1bb   :  { %v2441_v21 = vadd.f32 %v2432_v17, %v2417_v23  ;;  %v2488_v22 = vadd.f32 %v2472_v39, %v6526_v20  ;;  %v2389_v1 = vadd.f32 %v2378_v49, %v6527_v26  ;;  %v2434_v52 = vmul.f32 -0.25, %v6528_v27  ;;  %v6534_v61 = vld [vmem:[#allocation41_spill] sm:$0xff]  ;;  %v6537_v39 = vld [vmem:[#allocation43_spill] sm:$0xff]  ;;  %v6539_v20 = vld [vmem:[#allocation12_spill] sm:$0xff] }
 0x1bc   :  { %v2474_v57 = vadd.f32 %v2457_v10, %v2442_v29  ;;  %3193 = vst.msk [vmem:[%s6269_s3 + $0xb8] sm:$0xff] %vm552_vm0, %v2366_v33  ;;  %v2443_v38 = vadd.f32 %v2433_v13, %v2419_v44  ;;  %v2444_v60 = vadd.f32 %v2420_v56, %v5781_v46  ;;  %v2390_v34 = vadd.f32 %v6529_v3, %v5811_v58  ;;  %v6533_v46 = vld [vmem:[#allocation9_spill] sm:$0xff]  ;;  %v6543_v3 = vld [vmem:[#allocation51_spill] sm:$0xff] }
 0x1bd   :  { %v2473_v0 = vadd.f32 %v2456_v25, %v2441_v21  ;;  %3194 = vst.msk [vmem:[%s6269_s3 + $0xbf] sm:$0xfe] %vm925_vm6, %v2488_v22  ;;  %v2421_v30 = vadd.f32 %v2402_v48, %v2389_v1  ;;  %v2403_v41 = vrot.slane %v6531_v8, 7  ;;  %v2459_v42 = vrot.slane %v5843_v19, 7  ;;  %v6535_v19 = vld [vmem:[#allocation34_spill] sm:$0xff]  ;;  %v6538_v21 = vld [vmem:[#allocation44_spill] sm:$0xff] }
 0x1be   :  { %v2490_v17 = vadd.f32 %v2474_v57, %v6530_v16  ;;  %v2475_v47 = vadd.f32 %v2457_v10, %v2443_v38  ;;  %v2476_v63 = vadd.f32 %v2458_v35, %v2444_v60  ;;  %v2379_v51 = vmul.f32 -0.5, %v6533_v46 }
 0x1bf   :  { %v2489_v25 = vadd.f32 %v2473_v0, %v6532_v5  ;;  %v2445_v58 = vadd.f32 %v2434_v52, %v2421_v30  ;;  %v2422_v13 = vadd.f32 %v2403_v41, %v2390_v34  ;;  %v2435_v28 = vmul.f32 -0.25, %v6534_v61  ;;  %v6542_v52 = vld [vmem:[#allocation50_spill] sm:$0xff]  ;;  %v6546_v5 = vld [vmem:[#allocation55_spill] sm:$0xff] }
 0x1c0   :  { %3196 = vst.msk [vmem:[%s6269_s3 + $0xc7] sm:$0xfe] %vm925_vm6, %v2490_v17  ;;  %v2392_v23 = vadd.f32 %v5861_v15, %v5858_v9  ;;  %v2491_v10 = vadd.f32 %v2475_v47, %v6535_v19  ;;  %v2492_v48 = vadd.f32 %v2476_v63, %v6536_v31  ;;  %v2391_v29 = vadd.f32 %v2379_v51, %v6537_v39  ;;  %v6544_v17 = vld [vmem:[#allocation18_spill] sm:$0xff]  ;;  %v6547_v63 = vld [vmem:[#allocation56_spill] sm:$0xff]  ;;  %v6549_v19 = vld [vmem:[#allocation47_spill] sm:$0xff] }
 0x1c1   :  { %3195 = vst.msk [vmem:[%s6269_s3 + $0xc7] sm:$0x1] %vm927_vm5, %v2489_v25  ;;  %v2404_v49 = vrot.slane %v5877_v11, 7  ;;  %v2477_v33 = vadd.f32 %v2458_v35, %v2445_v58  ;;  %v2446_v44 = vadd.f32 %v2422_v13, %v6538_v21  ;;  %v2460_v56 = vrot.slane %v5888_v54, 7  ;;  %v6540_v11 = vld [vmem:[#allocation49_spill] sm:$0xff]  ;;  %v6541_v54 = vld [vmem:[#allocation39_spill] sm:$0xff] }
 0x1c2   :  { %v2380_v9 = vmul.f32 -0.5, %v6539_v20  ;;  %3197 = vst.msk [vmem:[%s6269_s3 + $0xcf] sm:$0x1] %vm927_vm5, %v2491_v10  ;;  %v2423_v15 = vadd.f32 %v2403_v41, %v2391_v29  ;;  %v2436_v35 = vmul.f32 -0.25, %v6540_v11  ;;  %v2394_v57 = vadd.f32 %v5907_v14, %v5903_v6  ;;  %v6545_v6 = vld [vmem:[#allocation46_spill] sm:$0xff]  ;;  %v6550_v10 = vld [vmem:[#allocation52_spill] sm:$0xff] }
 0x1c3   :  { %3198 = vst.msk [vmem:[%s6269_s3 + $0xcf] sm:$0xfe] %vm925_vm6, %v2492_v48  ;;  %v2424_v22 = vadd.f32 %v2404_v49, %v2392_v23  ;;  %v2493_v26 = vadd.f32 %v2477_v33, %v6541_v54  ;;  %v2478_v1 = vadd.f32 %v2459_v42, %v2446_v44  ;;  %v2405_v38 = vrot.slane %v5918_v59, 7  ;;  %v6548_v13 = vld [vmem:[#allocation62_spill] sm:$0xff]  ;;  %v6551_v39 = vld [vmem:[#allocation21_spill] sm:$0xff]  ;;  %v6552_v33 = vld [vmem:[#allocation60_spill] sm:$0xff] }
 0x1c4   :  { %v2393_v0 = vadd.f32 %v2380_v9, %v6542_v52  ;;  %v2447_v60 = vadd.f32 %v2435_v28, %v2423_v15  ;;  %v2461_v16 = vrot.slane %v5935_v2, 7  ;;  %v2381_v30 = vmul.f32 -0.5, %v6544_v17  ;;  %v6554_v9 = vld [vmem:[#allocation53_spill] sm:$0xff] }
 0x1c5   :  { %v2448_v34 = vadd.f32 %v2424_v22, %v6543_v3  ;;  %3199 = vst.msk [vmem:[%s6269_s3 + $0xd7] sm:$0x1] %vm927_vm5, %v2493_v26  ;;  %v2494_v14 = vadd.f32 %v2478_v1, %v6545_v6  ;;  %v2426_v41 = vadd.f32 %v2405_v38, %v2394_v57  ;;  %v2437_v25 = vmul.f32 -0.25, %v6546_v5  ;;  %v6555_v22 = vld [vmem:[#allocation57_spill] sm:$0xff]  ;;  %v6559_v6 = vld [vmem:[#allocation4_spill] sm:$0xff] }
 0x1c6   :  { %v2425_v8 = vadd.f32 %v2404_v49, %v2393_v0  ;;  %v2479_v47 = vadd.f32 %v2459_v42, %v2447_v60  ;;  %v2395_v46 = vadd.f32 %v2381_v30, %v6547_v63  ;;  %v2396_v2 = vadd.f32 %v5952_v40, %v5949_v55  ;;  %v6556_v0 = vld [vmem:[#allocation25_spill] sm:$0xff]  ;;  %v6558_v60 = vld [vmem:[#allocation58_spill] sm:$0xff]  ;;  %v6560_v63 = vld [vmem:[#allocation35_spill] sm:$0xff] }
 0x1c7   :  { %v2480_v59 = vadd.f32 %v2460_v56, %v2448_v34  ;;  %3200 = vst.msk [vmem:[%s6269_s3 + $0xd7] sm:$0xfe] %vm925_vm6, %v2494_v14  ;;  %v2450_v58 = vadd.f32 %v2426_v41, %v5915_v37  ;;  %v2406_v28 = vrot.slane %v6548_v13, 7  ;;  %v2462_v23 = vrot.slane %v5981_v43, 7  ;;  %v6553_v43 = vld [vmem:[#allocation61_spill] sm:$0xff] }
 0x1c8   :  { %v2449_v51 = vadd.f32 %v2436_v35, %v2425_v8  ;;  %v2495_v42 = vadd.f32 %v2479_v47, %v6549_v19  ;;  %v2427_v48 = vadd.f32 %v2405_v38, %v2395_v46  ;;  %v2382_v29 = vmul.f32 -0.5, %v6551_v39 }
 0x1c9   :  { %v2496_v31 = vadd.f32 %v2480_v59, %v6550_v10  ;;  %v2482_v40 = vadd.f32 %v2461_v16, %v2450_v58  ;;  %v2428_v49 = vadd.f32 %v2406_v28, %v2396_v2  ;;  %v2438_v21 = vmul.f32 -0.25, %v6552_v33 }
 0x1ca   :  { %v2481_v55 = vadd.f32 %v2460_v56, %v2449_v51  ;;  %3201 = vst.msk [vmem:[%s6269_s3 + $0xdf] sm:$0x1] %vm927_vm5, %v2495_v42  ;;  %v2451_v37 = vadd.f32 %v2437_v25, %v2427_v48  ;;  %v2397_v44 = vadd.f32 %v2382_v29, %v6553_v43  ;;  %v2398_v56 = vadd.f32 %v5998_v18, %v5995_v62  ;;  %v6557_v18 = vld [vmem:[#allocation31_spill] sm:$0xff] }
 0x1cb   :  { %3202 = vst.msk [vmem:[%s6269_s3 + $0xdf] sm:$0xfe] %vm925_vm6, %v2496_v31  ;;  %v2407_v20 = vrot.slane %v6015_v50, 7  ;;  %v2498_v35 = vadd.f32 %v2482_v40, %v6555_v22  ;;  %v2452_v57 = vadd.f32 %v2428_v49, %v5962_v53  ;;  %v2463_v54 = vrot.slane %v6027_v32, 7  ;;  %v6562_v51 = vld [vmem:[#allocation63_spill] sm:$0xff]  ;;  %v6565_v49 = vld [vmem:[#allocation48_spill] sm:$0xff] }
 0x1cc   :  { %v2497_v15 = vadd.f32 %v2481_v55, %v6554_v9  ;;  %v2483_v26 = vadd.f32 %v2461_v16, %v2451_v37  ;;  %v2429_v1 = vadd.f32 %v2406_v28, %v2397_v44  ;;  %v2383_v38 = vmul.f32 -0.5, %v6556_v0  ;;  %v6564_v48 = vld [vmem:[#allocation15_spill] sm:$0xff]  ;;  %v6566_v44 = vld [vmem:[#allocation65_spill] sm:$0xff]  ;;  %v6570_v0 = vld [vmem:[#allocation8_spill] sm:$0xff] }
 0x1cd   :  { %v2430_v52 = vadd.f32 %v2407_v20, %v2398_v56  ;;  %3204 = vst.msk [vmem:[%s6269_s3 + $0xe7] sm:$0xfe] %vm925_vm6, %v2498_v35  ;;  %v2484_v62 = vadd.f32 %v2462_v23, %v2452_v57  ;;  %v2439_v53 = vmul.f32 -0.25, %v5991_v12  ;;  %v1942_v50 = vmul.f32 -0.5, %v6557_v18  ;;  %v6568_v57 = vld [vmem:[#allocation19_spill] sm:$0xff] }
 0x1ce   :  { %3203 = vst.msk [vmem:[%s6269_s3 + $0xe7] sm:$0x1] %vm927_vm5, %v2497_v15  ;;  %v1959_v32 = vmul.f32 0.5, %v6557_v18  ;;  %v2499_v3 = vadd.f32 %v2483_v26, %v6558_v60  ;;  %v2453_v34 = vadd.f32 %v2438_v21, %v2429_v1  ;;  %v2399_v17 = vadd.f32 %v2383_v38, %v6004_v45  ;;  %v6571_v38 = vld [vmem:[#allocation54_spill] sm:$0xff]  ;;  %v6572_v60 = vld [vmem:[#allocation59_spill] sm:$0xff] }
 0x1cf   :  { %v2454_v16 = vadd.f32 %v2430_v52, %v6012_v7  ;;  %v2500_v30 = vadd.f32 %v2484_v62, %v5974_v24  ;;  %v1950_v14 = vadd.f32 %v1942_v50, %v6559_v6  ;;  %v1960_v8 = vmul.f32 0.5, %v5713_v36  ;;  %v6561_v7 = vld [vmem:[#allocation40_spill] sm:$0xff]  ;;  %v6574_v6 = vld [vmem:[#allocation23_spill] sm:$0xff] }
 0x1d0   :  { %v1992_v41 = vrot.slane %v1959_v32, 1  ;;  %3205 = vst.msk [vmem:[%s6269_s3 + $0xef] sm:$0x1] %vm927_vm5, %v2499_v3  ;;  %v2485_v25 = vadd.f32 %v2462_v23, %v2453_v34  ;;  %v2431_v59 = vadd.f32 %v2407_v20, %v2399_v17  ;;  %v1943_v46 = vmul.f32 -0.5, %v6560_v63  ;;  %v6563_v23 = vld [vmem:[#allocation11_spill] sm:$0xff]  ;;  %v6567_v20 = vld [vmem:[#allocation10_spill] sm:$0xff] }
 0x1d1   :  { %v2486_v47 = vadd.f32 %v2463_v54, %v2454_v16  ;;  %3206 = vst.msk [vmem:[%s6269_s3 + $0xef] sm:$0xfe] %vm925_vm6, %v2500_v30  ;;  %v1993_v24 = vrot.slane %v1960_v8, 1  ;;  %v1961_v45 = vmul.f32 0.5, %v6560_v63  ;;  %v1962_v36 = vmul.f32 0.5, %v6528_v27  ;;  %v6573_v34 = vld [vmem:[#allocation14_spill] sm:$0xff] }
 0x1d2   :  { %v1944_v2 = vmul.f32 -0.5, %v6561_v7  ;;  %v2501_v58 = vadd.f32 %v2485_v25, %v6562_v51  ;;  %v2455_v28 = vadd.f32 %v2439_v53, %v2431_v59  ;;  %v1951_v19 = vadd.f32 %v1943_v46, %v6563_v23  ;;  %v6575_v25 = vld [vmem:[#allocation27_spill] sm:$0xff]  ;;  %v6577_v46 = vld [vmem:[#allocation17_spill] sm:$0xff] }
 0x1d3   :  { %v2502_v13 = vadd.f32 %v2486_v47, %v6020_v4  ;;  %v1994_v42 = vsel %vm366_vm3, %v1992_v41, %v1993_v24  ;;  %v1995_v10 = vrot.slane %v1961_v45, 1  ;;  %v1996_v31 = vrot.slane %v1962_v36, 1  ;;  %v6578_v36 = vld [vmem:[#allocation64_spill] sm:$0xff] }
 0x1d4   :  { %v1952_v39 = vadd.f32 %v1944_v2, %v6564_v48  ;;  %3207 = vst.msk [vmem:[%s6269_s3 + $0xf7] sm:$0x1] %vm927_vm5, %v2501_v58  ;;  %v2487_v4 = vadd.f32 %v2463_v54, %v2455_v28  ;;  %v2022_v27 = vadd.f32 %v1994_v42, %v1950_v14  ;;  %v1963_v29 = vmul.f32 0.5, %v6561_v7  ;;  %v6579_v28 = vld [vmem:[#allocation16_spill] sm:$0xff]  ;;  %v6581_v48 = vld [vmem:[#allocation30_spill] sm:$0xff] }
 0x1d5   :  { %3208 = vst.msk [vmem:[%s6269_s3 + $0xf7] sm:$0xfe] %vm925_vm6, %v2502_v13  ;;  %v1964_v55 = vmul.f32 0.5, %v6534_v61  ;;  %v1997_v40 = vsel %vm366_vm3, %v1995_v10, %v1996_v31  ;;  %v1945_v21 = vmul.f32 -0.5, %v6565_v49  ;;  %v1965_v37 = vmul.f32 0.5, %v6565_v49  ;;  %v6569_v61 = vld [vmem:[#allocation7_spill] sm:$0xff] }
 0x1d6   :  { %v1966_v43 = vmul.f32 0.5, %v6540_v11  ;;  %v2503_v56 = vadd.f32 %v2487_v4, %v6566_v44  ;;  %v2031_v9 = vadd.f32 %v2022_v27, %v6567_v20  ;;  %v2023_v15 = vadd.f32 %v1997_v40, %v1951_v19  ;;  %v6580_v19 = vld [vmem:[#allocation22_spill] sm:$0xff] }
 0x1d7   :  { %v1998_v22 = vrot.slane %v1963_v29, 1  ;;  %v1999_v35 = vrot.slane %v1964_v55, 1  ;;  %v1953_v54 = vadd.f32 %v1945_v21, %v6568_v57  ;;  %v2001_v26 = vrot.slane %v1965_v37, 1  ;;  %v6583_v49 = vld [vmem:[#allocation26_spill] sm:$0xff] }
 0x1d8   :  { %v2002_v1 = vrot.slane %v1966_v43, 1  ;;  %3209 = vst.msk [vmem:[%s6269_s3 + $0xff] sm:$0x1] %vm927_vm5, %v2503_v56  ;;  %v2039_v52 = vadd.f32 %v2031_v9, %v6569_v61  ;;  %v2032_v11 = vadd.f32 %v2023_v15, %v6570_v0  ;;  %v1946_v62 = vmul.f32 -0.5, %v6571_v38  ;;  %v6584_v43 = vld [vmem:[#allocation28_spill] sm:$0xff]  ;;  %v6586_v15 = vld [vmem:[#allocation29_spill] sm:$0xff] }
 0x1d9   :  { %v1967_v53 = vmul.f32 0.5, %v6571_v38  ;;  %v2000_v18 = vsel %vm366_vm3, %v1998_v22, %v1999_v35  ;;  %v1968_v32 = vmul.f32 0.5, %v6546_v5  ;;  %v1947_v3 = vmul.f32 -0.5, %v6572_v60  ;;  %v6576_v5 = vld [vmem:[#allocation13_spill] sm:$0xff]  ;;  %v6585_v56 = vld [vmem:[#allocation24_spill] sm:$0xff] }
 0x1da   :  { %v2003_v50 = vsel %vm366_vm3, %v2001_v26, %v2002_v1  ;;  %3179 = vst.msk [vmem:[%s6269_s3 + $0x48] sm:$0xff] %vm552_vm0, %v2039_v52  ;;  %v2040_v16 = vadd.f32 %v2032_v11, %v6573_v34  ;;  %v2024_v17 = vadd.f32 %v2000_v18, %v1952_v39  ;;  %v1954_v14 = vadd.f32 %v1946_v62, %v6574_v6  ;;  %v6587_v35 = vld [vmem:[#allocation32_spill] sm:$0xff] }
 0x1db   :  { %v2025_v30 = vadd.f32 %v2003_v50, %v1953_v54  ;;  %v2004_v8 = vrot.slane %v1967_v53, 1  ;;  %v2005_v41 = vrot.slane %v1968_v32, 1  ;;  %v1955_v47 = vadd.f32 %v1947_v3, %v6575_v25 }
 0x1dc   :  { %v1969_v59 = vmul.f32 0.5, %v6572_v60  ;;  %3180 = vst.msk [vmem:[%s6269_s3 + $0x50] sm:$0xff] %vm552_vm0, %v2040_v16  ;;  %v2033_v63 = vadd.f32 %v2024_v17, %v6576_v5  ;;  %v1970_v45 = vmul.f32 0.5, %v6552_v33  ;;  %v1948_v7 = vmul.f32 -0.5, %v6578_v36 }
 0x1dd   :  { %v2034_v24 = vadd.f32 %v2025_v30, %v6577_v46  ;;  %v2006_v2 = vsel %vm366_vm3, %v2004_v8, %v2005_v41  ;;  %v1971_v58 = vmul.f32 0.5, %v6578_v36  ;;  %v1972_v13 = vmul.f32 0.5, %v5991_v12  ;;  %v6582_v12 = vld [vmem:[#allocation20_spill] sm:$0xff] }
 0x1de   :  { %v2007_v51 = vrot.slane %v1969_v59, 1  ;;  %v2041_v23 = vadd.f32 %v2033_v63, %v6579_v28  ;;  %v2026_v10 = vadd.f32 %v2006_v2, %v1954_v14  ;;  %v2008_v31 = vrot.slane %v1970_v45, 1 }
 0x1df   :  { %v2042_v42 = vadd.f32 %v2034_v24, %v6580_v19  ;;  %v1956_v39 = vadd.f32 %v1948_v7, %v6581_v48  ;;  %v2010_v4 = vrot.slane %v1971_v58, 1  ;;  %v2011_v27 = vrot.slane %v1972_v13, 1 }
 0x1e0   :  { %3181 = vst.msk [vmem:[%s6269_s3 + $0x58] sm:$0xff] %vm552_vm0, %v2041_v23  ;;  %v2035_v33 = vadd.f32 %v2026_v10, %v6582_v12  ;;  %v2009_v29 = vsel %vm366_vm3, %v2007_v51, %v2008_v31  ;;  %v2029_v44 = vmul.f32 -0.25, %v6584_v43 }
 0x1e1   :  { %3182 = vst.msk [vmem:[%s6269_s3 + $0x60] sm:$0xff] %vm552_vm0, %v2042_v42  ;;  %v2027_v55 = vadd.f32 %v2009_v29, %v1955_v47  ;;  %v2012_v40 = vsel %vm366_vm3, %v2010_v4, %v2011_v27 }
 0x1e2   :  { %v2043_v21 = vadd.f32 %v2035_v33, %v6583_v49  ;;  %v2028_v37 = vadd.f32 %v2012_v40, %v1956_v39 }
 0x1e3   :  { %v2036_v20 = vadd.f32 %v2027_v55, %v6585_v56 }
 0x1e4   :  { %3183 = vst.msk [vmem:[%s6269_s3 + $0x68] sm:$0xff] %vm552_vm0, %v2043_v21  ;;  %v2037_v9 = vadd.f32 %v2029_v44, %v2028_v37 }
 0x1e5   :  { %v2044_v22 = vadd.f32 %v2036_v20, %v6586_v15 }
 0x1e6   :  { %v2045_v57 = vadd.f32 %v2037_v9, %v6587_v35 }
 0x1e7   :  { %3184 = vst.msk [vmem:[%s6269_s3 + $0x70] sm:$0xff] %vm552_vm0, %v2044_v22 }
 0x1e8   :  { %3185 = vst.msk [vmem:[%s6269_s3 + $0x78] sm:$0xff] %vm552_vm0, %v2045_v57 }

</bundles_post_ra>
